<compile_context>
chip_gen: v6e
topology: v6e:2x2x1
jax: 0.10.0
libtpu: 0.0.40
codegen_flags: <defaults>
</compile_context>

<pallas_src>
import functools

import jax
import jax.numpy as jnp
from jax.experimental import pallas as pl
from jax.experimental.pallas import tpu as pltpu

BN_EPS = 1e-5
LANES = 128
DEFAULT_TILE_M = 512
VMEM_LIMIT = 48 * 1024 * 1024   # under v7x's 64 MiB physical VMEM


# ----------------------------------------------------------------------------
# Small helpers
# ----------------------------------------------------------------------------
def _round_up(x, m):
    return (x + m - 1) // m * m


def _pad_axis(x, target, axis):
    pad = target - x.shape[axis]
    if pad <= 0:
        return x
    widths = [(0, 0)] * x.ndim
    widths[axis] = (0, pad)
    return jnp.pad(x, widths)


# ----------------------------------------------------------------------------
# Pallas kernels
# ----------------------------------------------------------------------------
def _matmul_stats_kernel(cols_ref, w_ref, y_ref, stats_ref):
    # cols: (tm, K) bf16, w: (K, Cpad) bf16 -> y: (tm, Cpad) f32
    # stats: (1, 2, Cpad) per-tile [sum, sum_of_squares] over the tile's rows.
    y = jnp.dot(cols_ref[...], w_ref[...], preferred_element_type=jnp.float32)
    y_ref[...] = y
    s = jnp.sum(y, axis=0, keepdims=True)
    ss = jnp.sum(y * y, axis=0, keepdims=True)
    stats_ref[...] = jnp.concatenate([s, ss], axis=0)[None]


def _scale_shift_relu_kernel(y_ref, scale_ref, shift_ref, out_ref):
    # y: (tm, Cpad) f32, scale/shift: (1, Cpad) f32 -> out: (tm, Cpad) bf16
    out_ref[...] = jnp.maximum(
        y_ref[...] * scale_ref[...] + shift_ref[...], 0.0
    ).astype(out_ref.dtype)


def _matmul_tanh_kernel(cols_ref, w_ref, out_ref):
    y = jnp.dot(cols_ref[...], w_ref[...], preferred_element_type=jnp.float32)
    out_ref[...] = jnp.tanh(y).astype(out_ref.dtype)


# ----------------------------------------------------------------------------
# pallas_call wrappers (tiled over M, lane-dense Cpad, bf16 MXU inputs)
# ----------------------------------------------------------------------------
def _matmul_with_stats(cols, wmat, tile_m=DEFAULT_TILE_M):
    """(M, K) @ (K, Cpad) -> y (Mpad, Cpad) f32 + per-column [sum, sumsq]."""
    m, k = cols.shape
    cpad = wmat.shape[1]
    tm = min(tile_m, _round_up(m, 16))
    mp = _round_up(m, tm)
    cols = _pad_axis(cols, mp, 0).astype(jnp.bfloat16)   # zero rows -> y rows = 0
    wmat = wmat.astype(jnp.bfloat16)
    nt = mp // tm
    cost = pl.CostEstimate(
        flops=2 * mp * k * cpad,
        transcendentals=0,
        bytes_accessed=cols.size * 2 + wmat.size * 2 + mp * cpad * 4)
    y, part = pl.pallas_call(
        _matmul_stats_kernel,
        out_shape=(jax.ShapeDtypeStruct((mp, cpad), jnp.float32),
                   jax.ShapeDtypeStruct((nt, 2, cpad), jnp.float32)),
        grid=(nt,),
        in_specs=[
            pl.BlockSpec((tm, k), lambda i: (i, 0)),
            pl.BlockSpec((k, cpad), lambda i: (0, 0)),
        ],
        out_specs=(
            pl.BlockSpec((tm, cpad), lambda i: (i, 0)),
            pl.BlockSpec((1, 2, cpad), lambda i: (i, 0, 0)),
        ),
        compiler_params=pltpu.CompilerParams(
            dimension_semantics=("parallel",),
            vmem_limit_bytes=VMEM_LIMIT),
        cost_estimate=cost,
    )(cols, wmat)
    stats = jnp.sum(part, axis=0)      # (2, Cpad): cross-tile reduction (tiny)
    return y, stats, mp, tm


def _bn_relu_apply(y, scale_cols, shift_cols, tm):
    mp, cpad = y.shape
    nt = mp // tm
    scale2 = scale_cols.reshape(1, cpad).astype(jnp.float32)
    shift2 = shift_cols.reshape(1, cpad).astype(jnp.float32)
    cost = pl.CostEstimate(
        flops=2 * mp * cpad, transcendentals=0,
        bytes_accessed=mp * cpad * 4 + mp * cpad * 2)
    return pl.pallas_call(
        _scale_shift_relu_kernel,
        out_shape=jax.ShapeDtypeStruct((mp, cpad), jnp.bfloat16),
        grid=(nt,),
        in_specs=[
            pl.BlockSpec((tm, cpad), lambda i: (i, 0)),
            pl.BlockSpec((1, cpad), lambda i: (0, 0)),
            pl.BlockSpec((1, cpad), lambda i: (0, 0)),
        ],
        out_specs=pl.BlockSpec((tm, cpad), lambda i: (i, 0)),
        compiler_params=pltpu.CompilerParams(
            dimension_semantics=("parallel",),
            vmem_limit_bytes=VMEM_LIMIT),
        cost_estimate=cost,
    )(y, scale2, shift2)


def _matmul_tanh(cols, wmat, tile_m=DEFAULT_TILE_M):
    m, k = cols.shape
    cpad = wmat.shape[1]
    tm = min(tile_m, _round_up(m, 16))
    mp = _round_up(m, tm)
    cols = _pad_axis(cols, mp, 0).astype(jnp.bfloat16)
    wmat = wmat.astype(jnp.bfloat16)
    nt = mp // tm
    cost = pl.CostEstimate(
        flops=2 * mp * k * cpad,
        transcendentals=mp * cpad,
        bytes_accessed=cols.size * 2 + wmat.size * 2 + mp * cpad * 4)
    out = pl.pallas_call(
        _matmul_tanh_kernel,
        out_shape=jax.ShapeDtypeStruct((mp, cpad), jnp.float32),
        grid=(nt,),
        in_specs=[
            pl.BlockSpec((tm, k), lambda i: (i, 0)),
            pl.BlockSpec((k, cpad), lambda i: (0, 0)),
        ],
        out_specs=pl.BlockSpec((tm, cpad), lambda i: (i, 0)),
        compiler_params=pltpu.CompilerParams(
            dimension_semantics=("parallel",),
            vmem_limit_bytes=VMEM_LIMIT),
        cost_estimate=cost,
    )(cols, wmat)
    return out[:m]


# ----------------------------------------------------------------------------
# ConvTranspose2d -> matmul form (plain-JAX layout glue)
# ----------------------------------------------------------------------------
def _cols_stride1(x_nhwc, k, padding):
    # stride=1: no dilation zeros; im2col on the (k-1-p)-padded input.
    n, h, w, cin = x_nhwc.shape
    q = k - 1 - padding
    xp = jnp.pad(x_nhwc, ((0, 0), (q, q), (q, q), (0, 0)))
    oh = h - 1 - 2 * padding + k
    ow = w - 1 - 2 * padding + k
    patches = [xp[:, a:a + oh, b:b + ow, :] for a in range(k) for b in range(k)]
    cols = jnp.stack(patches, axis=3)                       # (N, OH, OW, K*K, Cin)
    return cols.reshape(n * oh * ow, k * k * cin), (n, oh, ow)


def _weight_stride1(w):
    # PyTorch ConvTranspose2d weight (Cin, Cout, K, K) -> (K*K*Cin, Cout),
    # spatially flipped so conv_transpose becomes a plain correlation.
    cin, cout, k, _ = w.shape
    wf = jnp.transpose(w[:, :, ::-1, ::-1], (2, 3, 0, 1))   # (K, K, Cin, Cout)
    return wf.reshape(k * k * cin, cout)


# Sub-pixel decomposition of ConvTranspose2d(k=4, stride=2, padding=1):
#   out[n, 2i+r, 2j+c, co] = sum_{dh,dw,ci} x_pad[n, i+dh+1, j+dw+1, ci]
#                                           * W[ci, co, kh(r,dh), kw(c,dw)]
# valid (phase, offset) -> kernel tap pairs:
_S2_TAPS = {(0, 0): 1, (0, -1): 3, (1, 1): 0, (1, 0): 2}


def _cols_stride2(x_nhwc):
    n, h, w, cin = x_nhwc.shape
    xp = jnp.pad(x_nhwc, ((0, 0), (1, 1), (1, 1), (0, 0)))
    patches = [xp[:, a:a + h, b:b + w, :] for a in range(3) for b in range(3)]
    cols = jnp.stack(patches, axis=3)                       # (N, H, W, 9, Cin)
    return cols.reshape(n * h * w, 9 * cin), (n, h, w)


def _weight_stride2(w):
    cin, cout, k, _ = w.shape
    wc = jnp.zeros((3, 3, cin, 2, 2, cout), w.dtype)
    for (r, dh), kh in _S2_TAPS.items():
        for (c, dw), kw in _S2_TAPS.items():
            wc = wc.at[dh + 1, dw + 1, :, r, c, :].set(w[:, :, kh, kw])
    return wc.reshape(9 * cin, 4 * cout)                    # columns = (r, c, co)


def _pixel_shuffle_2x(out, n, h, w, cout):
    out = out.reshape(n, h, w, 2, 2, cout)
    out = jnp.transpose(out, (0, 1, 3, 2, 4, 5))
    return out.reshape(n, 2 * h, 2 * w, cout)


# ----------------------------------------------------------------------------
# Layers
# ----------------------------------------------------------------------------
def conv_transpose_bn_relu(x_nhwc, w, gamma, stride, padding):
    cin, cout, k, _ = w.shape
    if stride == 1:
        cols, (n, oh, ow) = _cols_stride1(x_nhwc, k, padding)
        wmat = _weight_stride1(w)
        phases = 1
    else:
        assert stride == 2 and k == 4 and padding == 1
        cols, (n, h, wd) = _cols_stride2(x_nhwc)
        wmat = _weight_stride2(w)
        phases = 4
        oh, ow = 2 * h, 2 * wd

    m, kd = cols.shape
    ncols = wmat.shape[1]                                   # phases * Cout
    kp = _round_up(kd, 16)                                  # bf16 sublane alignment
    cpad = _round_up(ncols, LANES)                          # lane-dense output
    cols = _pad_axis(cols, kp, 1)
    wmat = _pad_axis(_pad_axis(wmat, kp, 0), cpad, 1)

    # Pass 1: tiled matmul + per-tile channel statistics.
    y, stats, _, tm = _matmul_with_stats(cols, wmat)

    # Fold phases -> per-output-channel BN statistics (over all N*OH*OW pixels).
    count = jnp.float32(m * phases)                         # == N * OH * OW
    s = stats[0, :ncols].reshape(phases, cout).sum(axis=0)
    sq = stats[1, :ncols].reshape(phases, cout).sum(axis=0)
    mean = s / count
    var = sq / count - mean * mean                          # biased var (PyTorch BN)
    scale = gamma.astype(jnp.float32) * jax.lax.rsqrt(var + BN_EPS)
    shift = -mean * scale                                   # beta == 0
    scale_cols = _pad_axis(jnp.tile(scale, phases), cpad, 0)
    shift_cols = _pad_axis(jnp.tile(shift, phases), cpad, 0)

    # Pass 2: tiled normalize + ReLU (f32 math, bf16 output for the next layer).
    out = _bn_relu_apply(y, scale_cols, shift_cols, tm)[:m, :ncols]

    if phases == 1:
        return out.reshape(n, oh, ow, cout)
    return _pixel_shuffle_2x(out, n, oh // 2, ow // 2, cout)


def conv_transpose_tanh(x_nhwc, w, stride, padding):
    cin, cout, k, _ = w.shape
    assert stride == 2 and k == 4 and padding == 1
    cols, (n, h, wd) = _cols_stride2(x_nhwc)
    wmat = _weight_stride2(w)
    m, kd = cols.shape
    ncols = wmat.shape[1]
    kp = _round_up(kd, 16)
    cpad = _round_up(ncols, LANES)
    cols = _pad_axis(cols, kp, 1)
    wmat = _pad_axis(_pad_axis(wmat, kp, 0), cpad, 1)
    out = _matmul_tanh(cols, wmat)[:, :ncols]
    return _pixel_shuffle_2x(out, n, h, wd, cout)


# ----------------------------------------------------------------------------
# Generator: parameter init (matching _init_weights) + forward
# ----------------------------------------------------------------------------
def init_generator_params(key, n_channels, n_latent, ngf):
    specs = [
        (n_latent, ngf * 8, 1, 0),
        (ngf * 8, ngf * 4, 2, 1),
        (ngf * 4, ngf * 2, 2, 1),
        (ngf * 2, ngf * 1, 2, 1),
        (ngf * 1, n_channels, 2, 1),
    ]
    params = []
    for cin, cout, stride, pad in specs:
        key, kw_, kg_ = jax.random.split(key, 3)
        w = 0.02 * jax.random.normal(kw_, (cin, cout, 4, 4), jnp.float32)   # N(0, 0.02)
        gamma = 1.0 + 0.02 * jax.random.normal(kg_, (cout,), jnp.float32)   # N(1, 0.02)
        params.append(dict(w=w, gamma=gamma, stride=stride, padding=pad))
    return params


def generator_forward(params, x_nchw):
    # TODO(synk): BatchNorm running_mean/running_var updates (training-mode side
    # effect) are not modeled; this is the forward pass only.
    x = jnp.transpose(x_nchw, (0, 2, 3, 1)).astype(jnp.float32)   # NCHW -> NHWC
    for layer in params[:-1]:
        x = conv_transpose_bn_relu(x, layer["w"], layer["gamma"],
                                   layer["stride"], layer["padding"])
    last = params[-1]
    x = conv_transpose_tanh(x, last["w"], last["stride"], last["padding"])
    return jnp.transpose(x, (0, 3, 1, 2)).astype(jnp.float32)     # NHWC -> NCHW


# ----------------------------------------------------------------------------
# Pure-JAX reference (f32) used as a correctness check in __main__
# ----------------------------------------------------------------------------
def _convT_ref(x_nchw, w, stride, padding):
    k = w.shape[-1]
    q = k - 1 - padding
    return jax.lax.conv_general_dilated(
        x_nchw, w[:, :, ::-1, ::-1],
        window_strides=(1, 1),
        padding=[(q, q), (q, q)],
        lhs_dilation=(stride, stride),
        dimension_numbers=("NCHW", "IOHW", "NCHW"))


def generator_reference(params, x_nchw):
    x = x_nchw.astype(jnp.float32)
    for layer in params[:-1]:
        y = _convT_ref(x, layer["w"], layer["stride"], layer["padding"])
        mean = jnp.mean(y, axis=(0, 2, 3), keepdims=True)
        var = jnp.mean((y - mean) ** 2, axis=(0, 2, 3), keepdims=True)
        yn = (y - mean) * jax.lax.rsqrt(var + BN_EPS)
        x = jnp.maximum(yn * layer["gamma"].reshape(1, -1, 1, 1), 0.0)
    last = params[-1]
    return jnp.tanh(_convT_ref(x, last["w"], last["stride"], last["padding"]))


if __name__ == "__main__":
    n_channels, n_latent, ngf = 3, 8, 8
    key = jax.random.PRNGKey(0)
    kp, kx = jax.random.split(key)
    params = init_generator_params(kp, n_channels, n_latent, ngf)
    z = jax.random.normal(kx, (2, n_latent, 1, 1), jnp.float32)   # DCGAN latent

    fwd = jax.jit(functools.partial(generator_forward, params))
    out = jax.block_until_ready(fwd(z))
    assert out.shape == (2, n_channels, 64, 64), out.shape
    assert bool(jnp.all(jnp.isfinite(out)))

    ref = generator_reference(params, z)
    max_err = float(jnp.max(jnp.abs(out - ref)))
    assert max_err < 0.1, f"max |pallas - reference| = {max_err}"
    print("KERNEL_OK")
</pallas_src>

<mosaic_0001>
module attributes {stable_mosaic.version = 11 : i64} {
  func.func @_matmul_stats_kernel(%arg0: i32, %arg1: memref<32x128xbf16, #tpu.memory_space<vmem>>, %arg2: memref<128x128xbf16, #tpu.memory_space<vmem>>, %arg3: memref<32x128xf32, #tpu.memory_space<vmem>>, %arg4: memref<1x2x128xf32, #tpu.memory_space<vmem>>) attributes {dimension_semantics = [#tpu.dimension_semantics<parallel>], iteration_bounds = array<i64: 1>, scalar_prefetch = 0 : i64, scratch_operands = 0 : i64, tpu.core_type = #tpu.core_type<tc>, window_params = [{transform_indices = @transform_0, window_bounds = array<i64: 32, 128>}, {pipeline_mode = #tpu.pipeline_mode<synchronous>, transform_indices = @transform_1, window_bounds = array<i64: 128, 128>}, {transform_indices = @transform_2, window_bounds = array<i64: 32, 128>}, {transform_indices = @transform_3, window_bounds = array<i64: 1, 2, 128>}]} {
    %c0 = arith.constant 0 : index
    %c0_0 = arith.constant 0 : index
    %0 = vector.load %arg1[%c0, %c0_0] : memref<32x128xbf16, #tpu.memory_space<vmem>>, vector<32x128xbf16>
    %c0_1 = arith.constant 0 : index
    %c0_2 = arith.constant 0 : index
    %1 = vector.load %arg2[%c0_1, %c0_2] : memref<128x128xbf16, #tpu.memory_space<vmem>>, vector<128x128xbf16>
    %cst = arith.constant dense<0.000000e+00> : vector<32x128xf32>
    %2 = tpu.matmul %0, %1, %cst {dimension_numbers = #tpu.dot_dimension_numbers<[1], [0], [0], [1], [0, 0, 1, 1], [], []>} : vector<32x128xbf16>, vector<128x128xbf16>, vector<32x128xf32> -> vector<32x128xf32>
    %c0_3 = arith.constant 0 : index
    %c0_4 = arith.constant 0 : index
    %3 = vector.load %arg3[%c0_3, %c0_4] : memref<32x128xf32, #tpu.memory_space<vmem>>, vector<32x128xf32>
    tpu.vector_store %arg3[%c0_3, %c0_4], %2 {strides = array<i32>} : memref<32x128xf32, #tpu.memory_space<vmem>>, vector<32x128xf32>,
    %cst_5 = arith.constant dense<0.000000e+00> : vector<128xf32>
    %4 = vector.multi_reduction <add>, %2, %cst_5 [0] : vector<32x128xf32> to vector<128xf32>
    %5 = vector.shape_cast %4 : vector<128xf32> to vector<1x128xf32>
    %6 = arith.mulf %2, %2 : vector<32x128xf32>
    %cst_6 = arith.constant dense<0.000000e+00> : vector<128xf32>
    %7 = vector.multi_reduction <add>, %6, %cst_6 [0] : vector<32x128xf32> to vector<128xf32>
    %8 = vector.shape_cast %7 : vector<128xf32> to vector<1x128xf32>
    %9 = tpu.concatenate %5, %8 in 0 : vector<1x128xf32>, vector<1x128xf32> -> vector<2x128xf32>
    %10 = vector.shape_cast %9 : vector<2x128xf32> to vector<1x2x128xf32>
    %c0_7 = arith.constant 0 : index
    %c0_8 = arith.constant 0 : index
    %c0_9 = arith.constant 0 : index
    %11 = vector.load %arg4[%c0_7, %c0_8, %c0_9] : memref<1x2x128xf32, #tpu.memory_space<vmem>>, vector<1x2x128xf32>
    tpu.vector_store %arg4[%c0_7, %c0_8, %c0_9], %10 {strides = array<i32>} : memref<1x2x128xf32, #tpu.memory_space<vmem>>, vector<1x2x128xf32>,
    return
  }
  func.func @transform_0(%arg0: i32) -> (i32, i32) {
    %c0_i32 = arith.constant 0 : i32
    %c0_i32_0 = arith.constant 0 : i32
    return %arg0, %c0_i32 : i32, i32
  }
  func.func @transform_1(%arg0: i32) -> (i32, i32) {
    %c0_i32 = arith.constant 0 : i32
    %c0_i32_0 = arith.constant 0 : i32
    %c0_i32_1 = arith.constant 0 : i32
    return %c0_i32, %c0_i32_0 : i32, i32
  }
  func.func @transform_2(%arg0: i32) -> (i32, i32) {
    %c0_i32 = arith.constant 0 : i32
    %c0_i32_0 = arith.constant 0 : i32
    return %arg0, %c0_i32 : i32, i32
  }
  func.func @transform_3(%arg0: i32) -> (i32, i32, i32) {
    %c0_i32 = arith.constant 0 : i32
    %c0_i32_0 = arith.constant 0 : i32
    %c0_i32_1 = arith.constant 0 : i32
    return %arg0, %c0_i32, %c0_i32_0 : i32, i32, i32
  }
}

module attributes {stable_mosaic.version = 11 : i64} {
  func.func @_scale_shift_relu_kernel(%arg0: i32, %arg1: memref<32x128xf32, #tpu.memory_space<vmem>>, %arg2: memref<1x128xf32, #tpu.memory_space<vmem>>, %arg3: memref<1x128xf32, #tpu.memory_space<vmem>>, %arg4: memref<32x128xbf16, #tpu.memory_space<vmem>>) attributes {dimension_semantics = [#tpu.dimension_semantics<parallel>], iteration_bounds = array<i64: 1>, scalar_prefetch = 0 : i64, scratch_operands = 0 : i64, tpu.core_type = #tpu.core_type<tc>, window_params = [{transform_indices = @transform_0, window_bounds = array<i64: 32, 128>}, {pipeline_mode = #tpu.pipeline_mode<synchronous>, transform_indices = @transform_1, window_bounds = array<i64: 1, 128>}, {pipeline_mode = #tpu.pipeline_mode<synchronous>, transform_indices = @transform_2, window_bounds = array<i64: 1, 128>}, {transform_indices = @transform_3, window_bounds = array<i64: 32, 128>}]} {
    %c0 = arith.constant 0 : index
    %c0_0 = arith.constant 0 : index
    %0 = vector.load %arg1[%c0, %c0_0] : memref<32x128xf32, #tpu.memory_space<vmem>>, vector<32x128xf32>
    %c0_1 = arith.constant 0 : index
    %c0_2 = arith.constant 0 : index
    %1 = vector.load %arg2[%c0_1, %c0_2] : memref<1x128xf32, #tpu.memory_space<vmem>>, vector<1x128xf32>
    %2 = vector.broadcast %1 : vector<1x128xf32> to vector<32x128xf32>
    %3 = arith.mulf %0, %2 : vector<32x128xf32>
    %c0_3 = arith.constant 0 : index
    %c0_4 = arith.constant 0 : index
    %4 = vector.load %arg3[%c0_3, %c0_4] : memref<1x128xf32, #tpu.memory_space<vmem>>, vector<1x128xf32>
    %5 = vector.broadcast %4 : vector<1x128xf32> to vector<32x128xf32>
    %6 = arith.addf %3, %5 : vector<32x128xf32>
    %cst = arith.constant 0.000000e+00 : f32
    %7 = vector.broadcast %cst : f32 to vector<32x128xf32>
    %8 = arith.maximumf %6, %7 : vector<32x128xf32>
    %9 = arith.truncf %8 : vector<32x128xf32> to vector<32x128xbf16>
    %c0_5 = arith.constant 0 : index
    %c0_6 = arith.constant 0 : index
    %10 = vector.load %arg4[%c0_5, %c0_6] : memref<32x128xbf16, #tpu.memory_space<vmem>>, vector<32x128xbf16>
    tpu.vector_store %arg4[%c0_5, %c0_6], %9 {strides = array<i32>} : memref<32x128xbf16, #tpu.memory_space<vmem>>, vector<32x128xbf16>,
    return
  }
  func.func @transform_0(%arg0: i32) -> (i32, i32) {
    %c0_i32 = arith.constant 0 : i32
    %c0_i32_0 = arith.constant 0 : i32
    return %arg0, %c0_i32 : i32, i32
  }
  func.func @transform_1(%arg0: i32) -> (i32, i32) {
    %c0_i32 = arith.constant 0 : i32
    %c0_i32_0 = arith.constant 0 : i32
    %c0_i32_1 = arith.constant 0 : i32
    return %c0_i32, %c0_i32_0 : i32, i32
  }
  func.func @transform_2(%arg0: i32) -> (i32, i32) {
    %c0_i32 = arith.constant 0 : i32
    %c0_i32_0 = arith.constant 0 : i32
    %c0_i32_1 = arith.constant 0 : i32
    return %c0_i32, %c0_i32_0 : i32, i32
  }
  func.func @transform_3(%arg0: i32) -> (i32, i32) {
    %c0_i32 = arith.constant 0 : i32
    %c0_i32_0 = arith.constant 0 : i32
    return %arg0, %c0_i32 : i32, i32
  }
}

module attributes {stable_mosaic.version = 11 : i64} {
  func.func @_matmul_stats_kernel(%arg0: i32, %arg1: memref<32x576xbf16, #tpu.memory_space<vmem>>, %arg2: memref<576x128xbf16, #tpu.memory_space<vmem>>, %arg3: memref<32x128xf32, #tpu.memory_space<vmem>>, %arg4: memref<1x2x128xf32, #tpu.memory_space<vmem>>) attributes {dimension_semantics = [#tpu.dimension_semantics<parallel>], iteration_bounds = array<i64: 1>, scalar_prefetch = 0 : i64, scratch_operands = 0 : i64, tpu.core_type = #tpu.core_type<tc>, window_params = [{transform_indices = @transform_0, window_bounds = array<i64: 32, 576>}, {pipeline_mode = #tpu.pipeline_mode<synchronous>, transform_indices = @transform_1, window_bounds = array<i64: 576, 128>}, {transform_indices = @transform_2, window_bounds = array<i64: 32, 128>}, {transform_indices = @transform_3, window_bounds = array<i64: 1, 2, 128>}]} {
    %c0 = arith.constant 0 : index
    %c0_0 = arith.constant 0 : index
    %0 = vector.load %arg1[%c0, %c0_0] : memref<32x576xbf16, #tpu.memory_space<vmem>>, vector<32x576xbf16>
    %c0_1 = arith.constant 0 : index
    %c0_2 = arith.constant 0 : index
    %1 = vector.load %arg2[%c0_1, %c0_2] : memref<576x128xbf16, #tpu.memory_space<vmem>>, vector<576x128xbf16>
    %cst = arith.constant dense<0.000000e+00> : vector<32x128xf32>
    %2 = tpu.matmul %0, %1, %cst {dimension_numbers = #tpu.dot_dimension_numbers<[1], [0], [0], [1], [0, 0, 1, 1], [], []>} : vector<32x576xbf16>, vector<576x128xbf16>, vector<32x128xf32> -> vector<32x128xf32>
    %c0_3 = arith.constant 0 : index
    %c0_4 = arith.constant 0 : index
    %3 = vector.load %arg3[%c0_3, %c0_4] : memref<32x128xf32, #tpu.memory_space<vmem>>, vector<32x128xf32>
    tpu.vector_store %arg3[%c0_3, %c0_4], %2 {strides = array<i32>} : memref<32x128xf32, #tpu.memory_space<vmem>>, vector<32x128xf32>,
    %cst_5 = arith.constant dense<0.000000e+00> : vector<128xf32>
    %4 = vector.multi_reduction <add>, %2, %cst_5 [0] : vector<32x128xf32> to vector<128xf32>
    %5 = vector.shape_cast %4 : vector<128xf32> to vector<1x128xf32>
    %6 = arith.mulf %2, %2 : vector<32x128xf32>
    %cst_6 = arith.constant dense<0.000000e+00> : vector<128xf32>
    %7 = vector.multi_reduction <add>, %6, %cst_6 [0] : vector<32x128xf32> to vector<128xf32>
    %8 = vector.shape_cast %7 : vector<128xf32> to vector<1x128xf32>
    %9 = tpu.concatenate %5, %8 in 0 : vector<1x128xf32>, vector<1x128xf32> -> vector<2x128xf32>
    %10 = vector.shape_cast %9 : vector<2x128xf32> to vector<1x2x128xf32>
    %c0_7 = arith.constant 0 : index
    %c0_8 = arith.constant 0 : index
    %c0_9 = arith.constant 0 : index
    %11 = vector.load %arg4[%c0_7, %c0_8, %c0_9] : memref<1x2x128xf32, #tpu.memory_space<vmem>>, vector<1x2x128xf32>
    tpu.vector_store %arg4[%c0_7, %c0_8, %c0_9], %10 {strides = array<i32>} : memref<1x2x128xf32, #tpu.memory_space<vmem>>, vector<1x2x128xf32>,
    return
  }
  func.func @transform_0(%arg0: i32) -> (i32, i32) {
    %c0_i32 = arith.constant 0 : i32
    %c0_i32_0 = arith.constant 0 : i32
    return %arg0, %c0_i32 : i32, i32
  }
  func.func @transform_1(%arg0: i32) -> (i32, i32) {
    %c0_i32 = arith.constant 0 : i32
    %c0_i32_0 = arith.constant 0 : i32
    %c0_i32_1 = arith.constant 0 : i32
    return %c0_i32, %c0_i32_0 : i32, i32
  }
  func.func @transform_2(%arg0: i32) -> (i32, i32) {
    %c0_i32 = arith.constant 0 : i32
    %c0_i32_0 = arith.constant 0 : i32
    return %arg0, %c0_i32 : i32, i32
  }
  func.func @transform_3(%arg0: i32) -> (i32, i32, i32) {
    %c0_i32 = arith.constant 0 : i32
    %c0_i32_0 = arith.constant 0 : i32
    %c0_i32_1 = arith.constant 0 : i32
    return %arg0, %c0_i32, %c0_i32_0 : i32, i32, i32
  }
}

module attributes {stable_mosaic.version = 11 : i64} {
  func.func @_matmul_stats_kernel(%arg0: i32, %arg1: memref<128x288xbf16, #tpu.memory_space<vmem>>, %arg2: memref<288x128xbf16, #tpu.memory_space<vmem>>, %arg3: memref<128x128xf32, #tpu.memory_space<vmem>>, %arg4: memref<1x2x128xf32, #tpu.memory_space<vmem>>) attributes {dimension_semantics = [#tpu.dimension_semantics<parallel>], iteration_bounds = array<i64: 1>, scalar_prefetch = 0 : i64, scratch_operands = 0 : i64, tpu.core_type = #tpu.core_type<tc>, window_params = [{transform_indices = @transform_0, window_bounds = array<i64: 128, 288>}, {pipeline_mode = #tpu.pipeline_mode<synchronous>, transform_indices = @transform_1, window_bounds = array<i64: 288, 128>}, {transform_indices = @transform_2, window_bounds = array<i64: 128, 128>}, {transform_indices = @transform_3, window_bounds = array<i64: 1, 2, 128>}]} {
    %c0 = arith.constant 0 : index
    %c0_0 = arith.constant 0 : index
    %0 = vector.load %arg1[%c0, %c0_0] : memref<128x288xbf16, #tpu.memory_space<vmem>>, vector<128x288xbf16>
    %c0_1 = arith.constant 0 : index
    %c0_2 = arith.constant 0 : index
    %1 = vector.load %arg2[%c0_1, %c0_2] : memref<288x128xbf16, #tpu.memory_space<vmem>>, vector<288x128xbf16>
    %cst = arith.constant dense<0.000000e+00> : vector<128x128xf32>
    %2 = tpu.matmul %0, %1, %cst {dimension_numbers = #tpu.dot_dimension_numbers<[1], [0], [0], [1], [0, 0, 1, 1], [], []>} : vector<128x288xbf16>, vector<288x128xbf16>, vector<128x128xf32> -> vector<128x128xf32>
    %c0_3 = arith.constant 0 : index
    %c0_4 = arith.constant 0 : index
    %3 = vector.load %arg3[%c0_3, %c0_4] : memref<128x128xf32, #tpu.memory_space<vmem>>, vector<128x128xf32>
    tpu.vector_store %arg3[%c0_3, %c0_4], %2 {strides = array<i32>} : memref<128x128xf32, #tpu.memory_space<vmem>>, vector<128x128xf32>,
    %cst_5 = arith.constant dense<0.000000e+00> : vector<128xf32>
    %4 = vector.multi_reduction <add>, %2, %cst_5 [0] : vector<128x128xf32> to vector<128xf32>
    %5 = vector.shape_cast %4 : vector<128xf32> to vector<1x128xf32>
    %6 = arith.mulf %2, %2 : vector<128x128xf32>
    %cst_6 = arith.constant dense<0.000000e+00> : vector<128xf32>
    %7 = vector.multi_reduction <add>, %6, %cst_6 [0] : vector<128x128xf32> to vector<128xf32>
    %8 = vector.shape_cast %7 : vector<128xf32> to vector<1x128xf32>
    %9 = tpu.concatenate %5, %8 in 0 : vector<1x128xf32>, vector<1x128xf32> -> vector<2x128xf32>
    %10 = vector.shape_cast %9 : vector<2x128xf32> to vector<1x2x128xf32>
    %c0_7 = arith.constant 0 : index
    %c0_8 = arith.constant 0 : index
    %c0_9 = arith.constant 0 : index
    %11 = vector.load %arg4[%c0_7, %c0_8, %c0_9] : memref<1x2x128xf32, #tpu.memory_space<vmem>>, vector<1x2x128xf32>
    tpu.vector_store %arg4[%c0_7, %c0_8, %c0_9], %10 {strides = array<i32>} : memref<1x2x128xf32, #tpu.memory_space<vmem>>, vector<1x2x128xf32>,
    return
  }
  func.func @transform_0(%arg0: i32) -> (i32, i32) {
    %c0_i32 = arith.constant 0 : i32
    %c0_i32_0 = arith.constant 0 : i32
    return %arg0, %c0_i32 : i32, i32
  }
  func.func @transform_1(%arg0: i32) -> (i32, i32) {
    %c0_i32 = arith.constant 0 : i32
    %c0_i32_0 = arith.constant 0 : i32
    %c0_i32_1 = arith.constant 0 : i32
    return %c0_i32, %c0_i32_0 : i32, i32
  }
  func.func @transform_2(%arg0: i32) -> (i32, i32) {
    %c0_i32 = arith.constant 0 : i32
    %c0_i32_0 = arith.constant 0 : i32
    return %arg0, %c0_i32 : i32, i32
  }
  func.func @transform_3(%arg0: i32) -> (i32, i32, i32) {
    %c0_i32 = arith.constant 0 : i32
    %c0_i32_0 = arith.constant 0 : i32
    %c0_i32_1 = arith.constant 0 : i32
    return %arg0, %c0_i32, %c0_i32_0 : i32, i32, i32
  }
}

module attributes {stable_mosaic.version = 11 : i64} {
  func.func @_scale_shift_relu_kernel(%arg0: i32, %arg1: memref<128x128xf32, #tpu.memory_space<vmem>>, %arg2: memref<1x128xf32, #tpu.memory_space<vmem>>, %arg3: memref<1x128xf32, #tpu.memory_space<vmem>>, %arg4: memref<128x128xbf16, #tpu.memory_space<vmem>>) attributes {dimension_semantics = [#tpu.dimension_semantics<parallel>], iteration_bounds = array<i64: 1>, scalar_prefetch = 0 : i64, scratch_operands = 0 : i64, tpu.core_type = #tpu.core_type<tc>, window_params = [{transform_indices = @transform_0, window_bounds = array<i64: 128, 128>}, {pipeline_mode = #tpu.pipeline_mode<synchronous>, transform_indices = @transform_1, window_bounds = array<i64: 1, 128>}, {pipeline_mode = #tpu.pipeline_mode<synchronous>, transform_indices = @transform_2, window_bounds = array<i64: 1, 128>}, {transform_indices = @transform_3, window_bounds = array<i64: 128, 128>}]} {
    %c0 = arith.constant 0 : index
    %c0_0 = arith.constant 0 : index
    %0 = vector.load %arg1[%c0, %c0_0] : memref<128x128xf32, #tpu.memory_space<vmem>>, vector<128x128xf32>
    %c0_1 = arith.constant 0 : index
    %c0_2 = arith.constant 0 : index
    %1 = vector.load %arg2[%c0_1, %c0_2] : memref<1x128xf32, #tpu.memory_space<vmem>>, vector<1x128xf32>
    %2 = vector.broadcast %1 : vector<1x128xf32> to vector<128x128xf32>
    %3 = arith.mulf %0, %2 : vector<128x128xf32>
    %c0_3 = arith.constant 0 : index
    %c0_4 = arith.constant 0 : index
    %4 = vector.load %arg3[%c0_3, %c0_4] : memref<1x128xf32, #tpu.memory_space<vmem>>, vector<1x128xf32>
    %5 = vector.broadcast %4 : vector<1x128xf32> to vector<128x128xf32>
    %6 = arith.addf %3, %5 : vector<128x128xf32>
    %cst = arith.constant 0.000000e+00 : f32
    %7 = vector.broadcast %cst : f32 to vector<128x128xf32>
    %8 = arith.maximumf %6, %7 : vector<128x128xf32>
    %9 = arith.truncf %8 : vector<128x128xf32> to vector<128x128xbf16>
    %c0_5 = arith.constant 0 : index
    %c0_6 = arith.constant 0 : index
    %10 = vector.load %arg4[%c0_5, %c0_6] : memref<128x128xbf16, #tpu.memory_space<vmem>>, vector<128x128xbf16>
    tpu.vector_store %arg4[%c0_5, %c0_6], %9 {strides = array<i32>} : memref<128x128xbf16, #tpu.memory_space<vmem>>, vector<128x128xbf16>,
    return
  }
  func.func @transform_0(%arg0: i32) -> (i32, i32) {
    %c0_i32 = arith.constant 0 : i32
    %c0_i32_0 = arith.constant 0 : i32
    return %arg0, %c0_i32 : i32, i32
  }
  func.func @transform_1(%arg0: i32) -> (i32, i32) {
    %c0_i32 = arith.constant 0 : i32
    %c0_i32_0 = arith.constant 0 : i32
    %c0_i32_1 = arith.constant 0 : i32
    return %c0_i32, %c0_i32_0 : i32, i32
  }
  func.func @transform_2(%arg0: i32) -> (i32, i32) {
    %c0_i32 = arith.constant 0 : i32
    %c0_i32_0 = arith.constant 0 : i32
    %c0_i32_1 = arith.constant 0 : i32
    return %c0_i32, %c0_i32_0 : i32, i32
  }
  func.func @transform_3(%arg0: i32) -> (i32, i32) {
    %c0_i32 = arith.constant 0 : i32
    %c0_i32_0 = arith.constant 0 : i32
    return %arg0, %c0_i32 : i32, i32
  }
}

module attributes {stable_mosaic.version = 11 : i64} {
  func.func @_matmul_stats_kernel(%arg0: i32, %arg1: memref<512x144xbf16, #tpu.memory_space<vmem>>, %arg2: memref<144x128xbf16, #tpu.memory_space<vmem>>, %arg3: memref<512x128xf32, #tpu.memory_space<vmem>>, %arg4: memref<1x2x128xf32, #tpu.memory_space<vmem>>) attributes {dimension_semantics = [#tpu.dimension_semantics<parallel>], iteration_bounds = array<i64: 1>, scalar_prefetch = 0 : i64, scratch_operands = 0 : i64, tpu.core_type = #tpu.core_type<tc>, window_params = [{transform_indices = @transform_0, window_bounds = array<i64: 512, 144>}, {pipeline_mode = #tpu.pipeline_mode<synchronous>, transform_indices = @transform_1, window_bounds = array<i64: 144, 128>}, {transform_indices = @transform_2, window_bounds = array<i64: 512, 128>}, {transform_indices = @transform_3, window_bounds = array<i64: 1, 2, 128>}]} {
    %c0 = arith.constant 0 : index
    %c0_0 = arith.constant 0 : index
    %0 = vector.load %arg1[%c0, %c0_0] : memref<512x144xbf16, #tpu.memory_space<vmem>>, vector<512x144xbf16>
    %c0_1 = arith.constant 0 : index
    %c0_2 = arith.constant 0 : index
    %1 = vector.load %arg2[%c0_1, %c0_2] : memref<144x128xbf16, #tpu.memory_space<vmem>>, vector<144x128xbf16>
    %cst = arith.constant dense<0.000000e+00> : vector<512x128xf32>
    %2 = tpu.matmul %0, %1, %cst {dimension_numbers = #tpu.dot_dimension_numbers<[1], [0], [0], [1], [0, 0, 1, 1], [], []>} : vector<512x144xbf16>, vector<144x128xbf16>, vector<512x128xf32> -> vector<512x128xf32>
    %c0_3 = arith.constant 0 : index
    %c0_4 = arith.constant 0 : index
    %3 = vector.load %arg3[%c0_3, %c0_4] : memref<512x128xf32, #tpu.memory_space<vmem>>, vector<512x128xf32>
    tpu.vector_store %arg3[%c0_3, %c0_4], %2 {strides = array<i32>} : memref<512x128xf32, #tpu.memory_space<vmem>>, vector<512x128xf32>,
    %cst_5 = arith.constant dense<0.000000e+00> : vector<128xf32>
    %4 = vector.multi_reduction <add>, %2, %cst_5 [0] : vector<512x128xf32> to vector<128xf32>
    %5 = vector.shape_cast %4 : vector<128xf32> to vector<1x128xf32>
    %6 = arith.mulf %2, %2 : vector<512x128xf32>
    %cst_6 = arith.constant dense<0.000000e+00> : vector<128xf32>
    %7 = vector.multi_reduction <add>, %6, %cst_6 [0] : vector<512x128xf32> to vector<128xf32>
    %8 = vector.shape_cast %7 : vector<128xf32> to vector<1x128xf32>
    %9 = tpu.concatenate %5, %8 in 0 : vector<1x128xf32>, vector<1x128xf32> -> vector<2x128xf32>
    %10 = vector.shape_cast %9 : vector<2x128xf32> to vector<1x2x128xf32>
    %c0_7 = arith.constant 0 : index
    %c0_8 = arith.constant 0 : index
    %c0_9 = arith.constant 0 : index
    %11 = vector.load %arg4[%c0_7, %c0_8, %c0_9] : memref<1x2x128xf32, #tpu.memory_space<vmem>>, vector<1x2x128xf32>
    tpu.vector_store %arg4[%c0_7, %c0_8, %c0_9], %10 {strides = array<i32>} : memref<1x2x128xf32, #tpu.memory_space<vmem>>, vector<1x2x128xf32>,
    return
  }
  func.func @transform_0(%arg0: i32) -> (i32, i32) {
    %c0_i32 = arith.constant 0 : i32
    %c0_i32_0 = arith.constant 0 : i32
    return %arg0, %c0_i32 : i32, i32
  }
  func.func @transform_1(%arg0: i32) -> (i32, i32) {
    %c0_i32 = arith.constant 0 : i32
    %c0_i32_0 = arith.constant 0 : i32
    %c0_i32_1 = arith.constant 0 : i32
    return %c0_i32, %c0_i32_0 : i32, i32
  }
  func.func @transform_2(%arg0: i32) -> (i32, i32) {
    %c0_i32 = arith.constant 0 : i32
    %c0_i32_0 = arith.constant 0 : i32
    return %arg0, %c0_i32 : i32, i32
  }
  func.func @transform_3(%arg0: i32) -> (i32, i32, i32) {
    %c0_i32 = arith.constant 0 : i32
    %c0_i32_0 = arith.constant 0 : i32
    %c0_i32_1 = arith.constant 0 : i32
    return %arg0, %c0_i32, %c0_i32_0 : i32, i32, i32
  }
}

module attributes {stable_mosaic.version = 11 : i64} {
  func.func @_scale_shift_relu_kernel(%arg0: i32, %arg1: memref<512x128xf32, #tpu.memory_space<vmem>>, %arg2: memref<1x128xf32, #tpu.memory_space<vmem>>, %arg3: memref<1x128xf32, #tpu.memory_space<vmem>>, %arg4: memref<512x128xbf16, #tpu.memory_space<vmem>>) attributes {dimension_semantics = [#tpu.dimension_semantics<parallel>], iteration_bounds = array<i64: 1>, scalar_prefetch = 0 : i64, scratch_operands = 0 : i64, tpu.core_type = #tpu.core_type<tc>, window_params = [{transform_indices = @transform_0, window_bounds = array<i64: 512, 128>}, {pipeline_mode = #tpu.pipeline_mode<synchronous>, transform_indices = @transform_1, window_bounds = array<i64: 1, 128>}, {pipeline_mode = #tpu.pipeline_mode<synchronous>, transform_indices = @transform_2, window_bounds = array<i64: 1, 128>}, {transform_indices = @transform_3, window_bounds = array<i64: 512, 128>}]} {
    %c0 = arith.constant 0 : index
    %c0_0 = arith.constant 0 : index
    %0 = vector.load %arg1[%c0, %c0_0] : memref<512x128xf32, #tpu.memory_space<vmem>>, vector<512x128xf32>
    %c0_1 = arith.constant 0 : index
    %c0_2 = arith.constant 0 : index
    %1 = vector.load %arg2[%c0_1, %c0_2] : memref<1x128xf32, #tpu.memory_space<vmem>>, vector<1x128xf32>
    %2 = vector.broadcast %1 : vector<1x128xf32> to vector<512x128xf32>
    %3 = arith.mulf %0, %2 : vector<512x128xf32>
    %c0_3 = arith.constant 0 : index
    %c0_4 = arith.constant 0 : index
    %4 = vector.load %arg3[%c0_3, %c0_4] : memref<1x128xf32, #tpu.memory_space<vmem>>, vector<1x128xf32>
    %5 = vector.broadcast %4 : vector<1x128xf32> to vector<512x128xf32>
    %6 = arith.addf %3, %5 : vector<512x128xf32>
    %cst = arith.constant 0.000000e+00 : f32
    %7 = vector.broadcast %cst : f32 to vector<512x128xf32>
    %8 = arith.maximumf %6, %7 : vector<512x128xf32>
    %9 = arith.truncf %8 : vector<512x128xf32> to vector<512x128xbf16>
    %c0_5 = arith.constant 0 : index
    %c0_6 = arith.constant 0 : index
    %10 = vector.load %arg4[%c0_5, %c0_6] : memref<512x128xbf16, #tpu.memory_space<vmem>>, vector<512x128xbf16>
    tpu.vector_store %arg4[%c0_5, %c0_6], %9 {strides = array<i32>} : memref<512x128xbf16, #tpu.memory_space<vmem>>, vector<512x128xbf16>,
    return
  }
  func.func @transform_0(%arg0: i32) -> (i32, i32) {
    %c0_i32 = arith.constant 0 : i32
    %c0_i32_0 = arith.constant 0 : i32
    return %arg0, %c0_i32 : i32, i32
  }
  func.func @transform_1(%arg0: i32) -> (i32, i32) {
    %c0_i32 = arith.constant 0 : i32
    %c0_i32_0 = arith.constant 0 : i32
    %c0_i32_1 = arith.constant 0 : i32
    return %c0_i32, %c0_i32_0 : i32, i32
  }
  func.func @transform_2(%arg0: i32) -> (i32, i32) {
    %c0_i32 = arith.constant 0 : i32
    %c0_i32_0 = arith.constant 0 : i32
    %c0_i32_1 = arith.constant 0 : i32
    return %c0_i32, %c0_i32_0 : i32, i32
  }
  func.func @transform_3(%arg0: i32) -> (i32, i32) {
    %c0_i32 = arith.constant 0 : i32
    %c0_i32_0 = arith.constant 0 : i32
    return %arg0, %c0_i32 : i32, i32
  }
}

module attributes {stable_mosaic.version = 11 : i64} {
  func.func @_matmul_tanh_kernel(%arg0: i32, %arg1: memref<512x80xbf16, #tpu.memory_space<vmem>>, %arg2: memref<80x128xbf16, #tpu.memory_space<vmem>>, %arg3: memref<512x128xf32, #tpu.memory_space<vmem>>) attributes {dimension_semantics = [#tpu.dimension_semantics<parallel>], iteration_bounds = array<i64: 4>, scalar_prefetch = 0 : i64, scratch_operands = 0 : i64, tpu.core_type = #tpu.core_type<tc>, window_params = [{transform_indices = @transform_0, window_bounds = array<i64: 512, 80>}, {pipeline_mode = #tpu.pipeline_mode<synchronous>, transform_indices = @transform_1, window_bounds = array<i64: 80, 128>}, {transform_indices = @transform_2, window_bounds = array<i64: 512, 128>}]} {
    %c0 = arith.constant 0 : index
    %c0_0 = arith.constant 0 : index
    %0 = vector.load %arg1[%c0, %c0_0] : memref<512x80xbf16, #tpu.memory_space<vmem>>, vector<512x80xbf16>
    %c0_1 = arith.constant 0 : index
    %c0_2 = arith.constant 0 : index
    %1 = vector.load %arg2[%c0_1, %c0_2] : memref<80x128xbf16, #tpu.memory_space<vmem>>, vector<80x128xbf16>
    %cst = arith.constant dense<0.000000e+00> : vector<512x128xf32>
    %2 = tpu.matmul %0, %1, %cst {dimension_numbers = #tpu.dot_dimension_numbers<[1], [0], [0], [1], [0, 0, 1, 1], [], []>} : vector<512x80xbf16>, vector<80x128xbf16>, vector<512x128xf32> -> vector<512x128xf32>
    %3 = math.tanh %2 : vector<512x128xf32>
    %c0_3 = arith.constant 0 : index
    %c0_4 = arith.constant 0 : index
    %4 = vector.load %arg3[%c0_3, %c0_4] : memref<512x128xf32, #tpu.memory_space<vmem>>, vector<512x128xf32>
    tpu.vector_store %arg3[%c0_3, %c0_4], %3 {strides = array<i32>} : memref<512x128xf32, #tpu.memory_space<vmem>>, vector<512x128xf32>,
    return
  }
  func.func @transform_0(%arg0: i32) -> (i32, i32) {
    %c0_i32 = arith.constant 0 : i32
    %c0_i32_0 = arith.constant 0 : i32
    return %arg0, %c0_i32 : i32, i32
  }
  func.func @transform_1(%arg0: i32) -> (i32, i32) {
    %c0_i32 = arith.constant 0 : i32
    %c0_i32_0 = arith.constant 0 : i32
    %c0_i32_1 = arith.constant 0 : i32
    return %c0_i32, %c0_i32_0 : i32, i32
  }
  func.func @transform_2(%arg0: i32) -> (i32, i32) {
    %c0_i32 = arith.constant 0 : i32
    %c0_i32_0 = arith.constant 0 : i32
    return %arg0, %c0_i32 : i32, i32
  }
}

</mosaic_0001>

<bundles_post_ra>
// kernel: generator_forward.9
= control target key start
LH: loop header
LB: loop body
LE: loop exit
PB: predicated region body
PF: predicated region fallthrough
CT: control target
= control target key end

     0   :  { %9 = vsyncpa [#allocation3], 0  ;;  %s270_s12 = smov [#allocation2]   ;;  %s317_s0 = inlined_call_operand.vmem [shape: bf16[32,128], index: 0, kind: input, shape index: {}]   ;;  %s318_s1 = inlined_call_operand.hbm [shape: bf16[128,128], index: 1, kind: input, shape index: {}]   ;;  %s319_s2 = inlined_call_operand.vmem [shape: f32[32,128], index: 2, kind: output, shape index: {0}]   ;;  %s320_s3 = inlined_call_operand.vmem [shape: f32[1,2,128], index: 3, kind: output, shape index: {1}]  }
   0x1   :  { %s17_s13 = sshll.u32 %s270_s12, 4  ;;  %s18_s13 = int_to_ptr.vmem [resolvable:$true] %s17_s13 }
   0x2   :  { %s256_s14 = scalar_lea.vmem %s18_s13, 1024  ;;  %p261_p1 = scmp.lt.s32.totalorder %s18_s13, %s18_s13 }
   0x3   :  { %p257_p0 = scmp.ne.s32.totalorder %s18_s13, %s256_s14  ;;  %p262_p2 = scmp.lt.s32.totalorder %s256_s14, %s256_s14 }
   0x5   :  { %p263_p3 = por %p262_p2, %p261_p1 }
   0x7   :  { %p264_p4 = pnand %p263_p3, %p257_p0 }
   0x9   :  { %267 = shalt.err (!%p264_p4)
}
   0xa   :  { %s271_s15 = smov 64   ;;  %s272_s16 = smov 4  }
   0xb   :  { %23 = dma.hbm_to_vmem [thread:$0]  %s318_s1, 1024, %s18_s13, [#allocation3], %s271_s15, %s271_s15, %s272_s16  }
   0xc   :  { %268 = dma.done.wait [#allocation3], 1024  }
   0xd   :  { %269 = vsyncadd [#allocation3], 4294966272  ;;  %v238_v0 = vld [vmem:[#allocation2 + $0x38] sm:$0xff]   ;;  %v239_v1 = vld [vmem:[#allocation2 + $0x30] sm:$0xff]   ;;  %vm183_vm0 = vcmask 1040384  }
   0xe   :  { %215 = vmatprep.subr.bf16.mxu0 %v238_v0  ;;  %v240_v2 = vld [vmem:[#allocation2 + $0x28] sm:$0xff]   ;;  %v241_v3 = vld [vmem:[#allocation2 + $0x20] sm:$0xff]   ;;  %v242_v5 = vld [vmem:[#allocation2 + $0x18] sm:$0xff]  }
   0xf   :  { %216 = vmatpush3.bf16.msra.mxu0 %v238_v0  ;;  %v246_v4 = vld [vmem:[%s317_s0] sm:$0xff]   ;;  %v243_v6 = vld [vmem:[#allocation2 + $0x10] sm:$0xff]   ;;  %v244_v7 = vld [vmem:[#allocation2 + $0x8] sm:$0xff]  }
  0x10   :  { %217 = vmatprep.subr.bf16.mxu0 %v239_v1  ;;  %231 = vmatprep.mubr.bf16.mxu0 %v246_v4  ;;  %v245_v8 = vld [vmem:[#allocation2] sm:$0xff]   ;;  %v247_v9 = vld [vmem:[%s317_s0 + $0x8] sm:$0xff]  }
  0x13   :  { %218 = vmatpush3.bf16.msra.mxu0 %v239_v1 }
  0x14   :  { %219 = vmatprep.subr.bf16.mxu0 %v240_v2 }
  0x17   :  { %220 = vmatpush3.bf16.msra.mxu0 %v240_v2 }
  0x18   :  { %221 = vmatprep.subr.bf16.mxu0 %v241_v3 }
  0x1b   :  { %222 = vmatpush3.bf16.msra.mxu0 %v241_v3 }
  0x1c   :  { %223 = vmatprep.subr.bf16.mxu0 %v242_v5 }
  0x1f   :  { %224 = vmatpush3.bf16.msra.mxu0 %v242_v5 }
  0x20   :  { %225 = vmatprep.subr.bf16.mxu0 %v243_v6 }
  0x23   :  { %226 = vmatpush3.bf16.msra.mxu0 %v243_v6 }
  0x24   :  { %227 = vmatprep.subr.bf16.mxu0 %v244_v7 }
  0x27   :  { %228 = vmatpush3.bf16.msra.mxu0 %v244_v7 }
  0x28   :  { %229 = vmatprep.subr.bf16.mxu0 %v245_v8 }
  0x2b   :  { %230 = vmatpush3.bf16.msra.mxu0 %v245_v8 }
  0x2e   :  { %232 = vmatmul.mubr.bf16.vlgmr.msra.gmra.mxu0 %v247_v9 }
  0xee   :  { %v233_v10 = vpop.f32.mrf.mxu0 }
  0xef   :  { %159 = vst [vmem:[%s319_s2 + $0x10] sm:$0xff] %v233_v10  ;;  %v172_v17 = vmul.f32 %v233_v10, %v233_v10 }
  0xf0   :  { %v142_v11 = vpop.f32.mrf.mxu0 }
  0xf1   :  { %157 = vst [vmem:[%s319_s2] sm:$0xff] %v142_v11  ;;  %v170_v14 = vmul.f32 %v142_v11, %v142_v11 }
  0xf2   :  { %v234_v12 = vpop.f32.mrf.mxu0 }
  0xf3   :  { %160 = vst [vmem:[%s319_s2 + $0x18] sm:$0xff] %v234_v12  ;;  %v173_v20 = vmul.f32 %v234_v12, %v234_v12 }
  0xf4   :  { %v145_v13 = vpop.f32.mrf.mxu0 }
  0xf5   :  { %158 = vst [vmem:[%s319_s2 + $0x8] sm:$0xff] %v145_v13  ;;  %v161_v15 = vadd.f32 %v145_v13, %v142_v11  ;;  %v171_v16 = vmul.f32 %v145_v13, %v145_v13 }
  0xf7   :  { %v162_v18 = vadd.f32 %v233_v10, %v161_v15  ;;  %v174_v19 = vadd.f32 %v171_v16, %v170_v14 }
  0xf9   :  { %v163_v21 = vadd.f32 %v234_v12, %v162_v18  ;;  %v175_v22 = vadd.f32 %v174_v19, %v172_v17 }
  0xfb   :  { %v164_v23 = vrot.slane %v163_v21, 4  ;;  %v176_v24 = vadd.f32 %v175_v22, %v173_v20 }
  0xfd   :  { %v165_v25 = vadd.f32 %v164_v23, %v163_v21  ;;  %v177_v26 = vrot.slane %v176_v24, 4 }
  0xff   :  { %v166_v27 = vrot.slane %v165_v25, 2  ;;  %v178_v28 = vadd.f32 %v177_v26, %v176_v24 }
 0x101   :  { %v167_v29 = vadd.f32 %v166_v27, %v165_v25  ;;  %v179_v30 = vrot.slane %v178_v28, 2 }
 0x103   :  { %v168_v31 = vrot.slane %v167_v29, 1  ;;  %v180_v32 = vadd.f32 %v179_v30, %v178_v28 }
 0x105   :  { %v181_v33 = vrot.slane %v180_v32, 1  ;;  %v169_v34 = vadd.f32 %v168_v31, %v167_v29 }
 0x107   :  { %v182_v35 = vadd.f32 %v181_v33, %v180_v32 }
 0x109   :  { %v184_v36 = vsel %vm183_vm0, %v169_v34, %v182_v35 }
 0x10a   :  { %185 = vst [vmem:[%s320_s3] sm:$0x3] %v184_v36 }
 0x10b   :  { %194 = vsyncpa [#allocation3], 1 }

// kernel: generator_forward.10
= control target key start
LH: loop header
LB: loop body
LE: loop exit
PB: predicated region body
PF: predicated region fallthrough
CT: control target
= control target key end

     0   :  { %s133_s0 = inlined_call_operand.vmem [shape: f32[32,128], index: 0, kind: input, shape index: {}]   ;;  %s134_s1 = inlined_call_operand.vmem [shape: f32[1,128], index: 1, kind: input, shape index: {}]   ;;  %s135_s2 = inlined_call_operand.vmem [shape: f32[1,128], index: 2, kind: input, shape index: {}]   ;;  %s136_s3 = inlined_call_operand.vmem [shape: bf16[32,128], index: 3, kind: output, shape index: {}]  }
   0x1   :  { %v14_v0 = vld [vmem:[%s133_s0] sm:$0xff]  ;;  %v15_v1 = vld [vmem:[%s133_s0 + $0x8] sm:$0xff]  ;;  %v16_v6 = vld [vmem:[%s133_s0 + $0x10] sm:$0xff] }
   0x2   :  { %v68_v2 = vld [vmem:[%s134_s1] ss:$0 sm:$0xff]  ;;  %v17_v7 = vld [vmem:[%s133_s0 + $0x18] sm:$0xff] }
   0x3   :  { %v25_v3 = vmul.f32 %v68_v2, %v14_v0  ;;  %v26_v4 = vmul.f32 %v68_v2, %v15_v1  ;;  %v69_v5 = vld [vmem:[%s135_s2] ss:$0 sm:$0xff]  ;;  %v27_v8 = vmul.f32 %v68_v2, %v16_v6  ;;  %v28_v9 = vmul.f32 %v68_v2, %v17_v7 }
   0x5   :  { %v36_v10 = vadd.f32 %v69_v5, %v25_v3  ;;  %v37_v11 = vadd.f32 %v69_v5, %v26_v4  ;;  %v38_v12 = vadd.f32 %v69_v5, %v27_v8  ;;  %v39_v13 = vadd.f32 %v69_v5, %v28_v9 }
   0x7   :  { %v40_v14 = vmax.f32 %v36_v10, 0.0  ;;  %v41_v15 = vmax.f32 %v37_v11, 0.0  ;;  %v42_v16 = vmax.f32 %v38_v12, 0.0  ;;  %v43_v17 = vmax.f32 %v39_v13, 0.0 }
   0x9   :  { %v81_v18 = vpack.c.bf16 %v41_v15, %v40_v14  ;;  %v86_v19 = vpack.c.bf16 %v43_v17, %v42_v16 }
   0xb   :  { %82 = vst [vmem:[%s136_s3] sm:$0xff] %v81_v18   ;;  %88 = vst [vmem:[%s136_s3 + $0x8] sm:$0xff] %v86_v19  }

// kernel: squeeze.6
= control target key start
LH: loop header
LB: loop body
LE: loop exit
PB: predicated region body
PF: predicated region fallthrough
CT: control target
= control target key end

     0   :  { %s40_s8 = smov 32   ;;  %vm8_vm0 = vcmask 261120   ;;  %s41_s9 = smov 64   ;;  %s58_s0 = inlined_call_operand.vmem [shape: f32[128], index: 0, kind: input, shape index: {}]   ;;  %s59_s1 = inlined_call_operand.vmem [shape: f32[4,32], index: 1, kind: output, shape index: {}]  }
   0x1   :  { %v5_v0 = vld [vmem:[%s58_s0] sm:$0x1]  ;;  %s39_s0 = smov 96  }
   0x2   :  { %6 = vst [vmem:[#allocation1] sm:$0x1] %v5_v0 }
   0x9   :  { %v10_v1 = vld [vmem:[#allocation1] sm:$0x1]  }
   0xa   :  { %v22_v2 = vld [vmem:[#allocation1] sm:$0x1]   ;;  %11 = vrot.lane.b32.xlu0 %v10_v1, %s39_s0 }
   0xb   :  { %23 = vrot.lane.b32.xlu1 %v22_v2, %s40_s8  ;;  %v7_v3 = vld [vmem:[#allocation1] sm:$0x1]  }
   0xc   :  { %v16_v4 = vld [vmem:[#allocation1] sm:$0x1]   ;;  %9 = vst.msk [vmem:[#allocation0] sm:$0x1] %vm8_vm0, %v7_v3  }
   0xe   :  { %17 = vrot.lane.b32.xlu0 %v16_v4, %s41_s9 }
  0x7c   :  { %v12_v5 = vpop.permute.xlu0 %11  }
  0x7d   :  { %v24_v6 = vpop.permute.xlu1 %23   ;;  %15 = vst.msk [vmem:[#allocation0 + $0x1] sm:$0x1] %vm8_vm0, %v12_v5  }
  0x7e   :  { %27 = vst.msk [vmem:[#allocation0 + $0x3] sm:$0x1] %vm8_vm0, %v24_v6  }
  0x80   :  { %v18_v7 = vpop.permute.xlu0 %17  }
  0x81   :  { %21 = vst.msk [vmem:[#allocation0 + $0x2] sm:$0x1] %vm8_vm0, %v18_v7  }
  0x88   :  { %v32_v8 = vld [vmem:[#allocation0] sm:$0xf] }
  0x89   :  { %35 = vst [vmem:[%s59_s1] sm:$0xf] %v32_v8 }

// kernel: tile.37
= control target key start
LH: loop header
LB: loop body
LE: loop exit
PB: predicated region body
PF: predicated region fallthrough
CT: control target
= control target key end

     0   :  { %s22_s0 = inlined_call_operand.vmem [shape: f32[32], index: 0, kind: input, shape index: {}]   ;;  %s23_s1 = inlined_call_operand.vmem [shape: f32[4,32], index: 1, kind: output, shape index: {}]  }
   0x1   :  { %v4_v0 = vld [vmem:[%s22_s0] ss:$0 sm:$0xff] }
   0x2   :  { %5 = vst [vmem:[%s23_s1] sm:$0xf] %v4_v0 }

// kernel: tile.39
= control target key start
LH: loop header
LB: loop body
LE: loop exit
PB: predicated region body
PF: predicated region fallthrough
CT: control target
= control target key end

     0   :  { %vm8_vm0 = vcmask 261120   ;;  %s40_s8 = smov 32   ;;  %s41_s9 = smov 64   ;;  %vm14_vm1 = vcmask 1048320   ;;  %vm20_vm2 = vcmask 785920   ;;  %vm26_vm3 = vcmask 523520   ;;  %s58_s0 = inlined_call_operand.vmem [shape: f32[4,32], index: 0, kind: input, shape index: {}]   ;;  %s59_s1 = inlined_call_operand.vmem [shape: f32[1,128], index: 1, kind: output, shape index: {}]  }
   0x1   :  { %v5_v0 = vld [vmem:[%s58_s0] sm:$0xf]  ;;  %s39_s0 = smov 96  }
   0x2   :  { %6 = vst [vmem:[#allocation1] sm:$0xf] %v5_v0 }
   0x9   :  { %v11_v1 = vld [vmem:[#allocation1 + $0x3] sm:$0x1]   ;;  %v23_v2 = vld [vmem:[#allocation1 + $0x1] sm:$0x1]   ;;  %v7_v3 = vld [vmem:[#allocation1] sm:$0x1]  }
   0xa   :  { %12 = vrot.lane.b32.xlu0 %v11_v1, %s39_s0  ;;  %24 = vrot.lane.b32.xlu1 %v23_v2, %s40_s8  ;;  %v17_v4 = vld [vmem:[#allocation1 + $0x2] sm:$0x1]   ;;  %9 = vst.msk [vmem:[#allocation0] sm:$0x1] %vm8_vm0, %v7_v3  }
   0xe   :  { %18 = vrot.lane.b32.xlu0 %v17_v4, %s41_s9 }
  0x7c   :  { %v13_v5 = vpop.permute.xlu0 %12   ;;  %v25_v6 = vpop.permute.xlu1 %24  }
  0x7d   :  { %15 = vst.msk [vmem:[#allocation0] sm:$0x1] %vm14_vm1, %v13_v5  }
  0x80   :  { %v19_v7 = vpop.permute.xlu0 %18  }
  0x81   :  { %21 = vst.msk [vmem:[#allocation0] sm:$0x1] %vm20_vm2, %v19_v7  }
  0x82   :  { %27 = vst.msk [vmem:[#allocation0] sm:$0x1] %vm26_vm3, %v25_v6  }
  0x89   :  { %v32_v8 = vld [vmem:[#allocation0] sm:$0x1] }
  0x8a   :  { %35 = vst [vmem:[%s59_s1] sm:$0x1] %v32_v8 }

// kernel: generator_forward.11
= control target key start
LH: loop header
LB: loop body
LE: loop exit
PB: predicated region body
PF: predicated region fallthrough
CT: control target
= control target key end

     0   :  { %vm364_vm0 = vcmask 523264   ;;  %vm544_vm1 = vcmask 1040384   ;;  %s900_s1 = inlined_call_operand.vmem [shape: bf16[576,128], index: 1, kind: input, shape index: {}]   ;;  %s901_s0 = inlined_call_operand.vmem [shape: bf16[32,576], index: 0, kind: input, shape index: {}]   ;;  %s902_s2 = inlined_call_operand.vmem [shape: f32[32,128], index: 2, kind: output, shape index: {0}]   ;;  %s903_s3 = inlined_call_operand.vmem [shape: f32[1,2,128], index: 3, kind: output, shape index: {1}]  }
   0x1   :  { %v677_v0 = vld [vmem:[%s900_s1 + $0x78] sm:$0xff]   ;;  %v681_v4 = vld [vmem:[%s900_s1 + $0x70] sm:$0xff]   ;;  %v685_v8 = vld [vmem:[%s900_s1 + $0x68] sm:$0xff]  }
   0x2   :  { %v678_v1 = vld [vmem:[%s900_s1 + $0xf8] sm:$0xff]   ;;  %603 = vmatprep.subr.bf16.mxu0 %v677_v0  ;;  %v682_v5 = vld [vmem:[%s900_s1 + $0xf0] sm:$0xff]   ;;  %v686_v9 = vld [vmem:[%s900_s1 + $0xe8] sm:$0xff]  }
   0x3   :  { %v679_v2 = vld [vmem:[%s900_s1 + $0x38] sm:$0xff]   ;;  %631 = vmatprep.subr.bf16.mxu1 %v678_v1  ;;  %v683_v6 = vld [vmem:[%s900_s1 + $0x30] sm:$0xff]   ;;  %v687_v10 = vld [vmem:[%s900_s1 + $0x28] sm:$0xff]  }
   0x4   :  { %v680_v3 = vld [vmem:[%s900_s1 + $0xb8] sm:$0xff]   ;;  %604 = vmatpush3.bf16.msra.mxu0 %v679_v2  ;;  %v684_v7 = vld [vmem:[%s900_s1 + $0xb0] sm:$0xff]   ;;  %v688_v11 = vld [vmem:[%s900_s1 + $0xa8] sm:$0xff]  }
   0x5   :  { %632 = vmatpush3.bf16.msra.mxu1 %v680_v3  ;;  %605 = vmatprep.subr.bf16.mxu0 %v681_v4  ;;  %v689_v12 = vld [vmem:[%s900_s1 + $0x60] sm:$0xff]   ;;  %v693_v16 = vld [vmem:[%s900_s1 + $0x58] sm:$0xff]   ;;  %v697_v20 = vld [vmem:[%s900_s1 + $0x50] sm:$0xff]  }
   0x6   :  { %633 = vmatprep.subr.bf16.mxu1 %v682_v5  ;;  %v690_v13 = vld [vmem:[%s900_s1 + $0xe0] sm:$0xff]   ;;  %v694_v17 = vld [vmem:[%s900_s1 + $0xd8] sm:$0xff]   ;;  %v698_v21 = vld [vmem:[%s900_s1 + $0xd0] sm:$0xff]  }
   0x7   :  { %v691_v14 = vld [vmem:[%s900_s1 + $0x20] sm:$0xff]   ;;  %v695_v18 = vld [vmem:[%s900_s1 + $0x18] sm:$0xff]   ;;  %v699_v22 = vld [vmem:[%s900_s1 + $0x10] sm:$0xff]  }
   0x8   :  { %606 = vmatpush3.bf16.msra.mxu0 %v683_v6  ;;  %v692_v15 = vld [vmem:[%s900_s1 + $0xa0] sm:$0xff]   ;;  %v696_v19 = vld [vmem:[%s900_s1 + $0x98] sm:$0xff]   ;;  %v700_v23 = vld [vmem:[%s900_s1 + $0x90] sm:$0xff]  }
   0x9   :  { %634 = vmatpush3.bf16.msra.mxu1 %v684_v7  ;;  %607 = vmatprep.subr.bf16.mxu0 %v685_v8  ;;  %v701_v24 = vld [vmem:[%s900_s1 + $0x48] sm:$0xff]   ;;  %v705_v28 = vld [vmem:[%s900_s1 + $0x40] sm:$0xff]   ;;  %v715_v36 = vld [vmem:[%s900_s1 + $0x118] sm:$0xff]  }
   0xa   :  { %635 = vmatprep.subr.bf16.mxu1 %v686_v9  ;;  %v702_v25 = vld [vmem:[%s900_s1 + $0xc8] sm:$0xff]   ;;  %v706_v29 = vld [vmem:[%s900_s1 + $0xc0] sm:$0xff]   ;;  %v716_v37 = vld [vmem:[%s900_s1 + $0x110] sm:$0xff]  }
   0xb   :  { %v703_v26 = vld [vmem:[%s900_s1 + $0x8] sm:$0xff]   ;;  %v707_v30 = vld [vmem:[%s900_s1] sm:$0xff]  }
   0xc   :  { %608 = vmatpush3.bf16.msra.mxu0 %v687_v10  ;;  %v704_v27 = vld [vmem:[%s900_s1 + $0x88] sm:$0xff]   ;;  %v708_v31 = vld [vmem:[%s900_s1 + $0x80] sm:$0xff]  }
   0xd   :  { %636 = vmatpush3.bf16.msra.mxu1 %v688_v11  ;;  %609 = vmatprep.subr.bf16.mxu0 %v689_v12  ;;  %v709_v32 = vld [vmem:[%s901_s0] ss:$20 sps:$4 sm:$0xff]   ;;  %v711_v33 = vld [vmem:[%s901_s0 + $0x4] ss:$20 sps:$4 sm:$0xff]   ;;  %v712_v34 = vld [vmem:[%s901_s0 + $0x8] ss:$20 sps:$4 sm:$0xff]  }
   0xe   :  { %637 = vmatprep.subr.bf16.mxu1 %v690_v13  ;;  %v714_v35 = vld [vmem:[%s901_s0 + $0xc] ss:$20 sps:$4 sm:$0xff]   ;;  %403 = vmatprep.mubr.bf16.mxu0 %v711_v33  ;;  %v719_v39 = vld [vmem:[%s901_s0 + $0x34] ss:$20 sps:$4 sm:$0xff]   ;;  %v722_v42 = vld [vmem:[%s901_s0 + $0x30] ss:$20 sps:$4 sm:$0xff]  }
   0xf   :  { %452 = vmatprep.mubr.bf16.mxu1 %v714_v35  ;;  %v717_v38 = vld [vmem:[%s901_s0 + $0x2c] ss:$20 sps:$4 sm:$0xff]   ;;  %v721_v40 = vld [vmem:[%s901_s0 + $0x28] ss:$20 sps:$4 sm:$0xff]   ;;  %v725_v43 = vld [vmem:[%s901_s0 + $0x10] ss:$20 sps:$4 sm:$0xff]  }
  0x10   :  { %610 = vmatpush3.bf16.msra.mxu0 %v691_v14  ;;  %v723_v41 = vld [vmem:[%s900_s1 + $0x108] sm:$0xff]   ;;  %v724_v44 = vld [vmem:[%s900_s1 + $0x100] sm:$0xff]  }
  0x11   :  { %638 = vmatpush3.bf16.msra.mxu1 %v692_v15  ;;  %611 = vmatprep.subr.bf16.mxu0 %v693_v16  ;;  %v726_v45 = vld [vmem:[%s901_s0 + $0x38] ss:$20 sps:$4 sm:$0xff]  }
  0x12   :  { %639 = vmatprep.subr.bf16.mxu1 %v694_v17 }
  0x14   :  { %612 = vmatpush3.bf16.msra.mxu0 %v695_v18 }
  0x15   :  { %640 = vmatpush3.bf16.msra.mxu1 %v696_v19  ;;  %613 = vmatprep.subr.bf16.mxu0 %v697_v20 }
  0x16   :  { %641 = vmatprep.subr.bf16.mxu1 %v698_v21 }
  0x18   :  { %614 = vmatpush3.bf16.msra.mxu0 %v699_v22 }
  0x19   :  { %642 = vmatpush3.bf16.msra.mxu1 %v700_v23  ;;  %615 = vmatprep.subr.bf16.mxu0 %v701_v24 }
  0x1a   :  { %643 = vmatprep.subr.bf16.mxu1 %v702_v25 }
  0x1c   :  { %616 = vmatpush3.bf16.msra.mxu0 %v703_v26 }
  0x1d   :  { %644 = vmatpush3.bf16.msra.mxu1 %v704_v27  ;;  %617 = vmatprep.subr.bf16.mxu0 %v705_v28 }
  0x1e   :  { %645 = vmatprep.subr.bf16.mxu1 %v706_v29 }
  0x20   :  { %618 = vmatpush3.bf16.msra.mxu0 %v707_v30 }
  0x21   :  { %646 = vmatpush3.bf16.msra.mxu1 %v708_v31  ;;  %665 = vmatprep.subr.bf16.mxu0 %v715_v36 }
  0x23   :  { %404 = vmatmul.mubr.bf16.vlgmr.msra.gmra.mxu0 %v709_v32 }
  0x24   :  { %453 = vmatmul.mubr.bf16.vlgmr.msra.gmra.mxu1 %v712_v34  ;;  %666 = vmatpush3.bf16.msra.mxu0 %v715_v36 }
  0x25   :  { %667 = vmatprep.subr.bf16.mxu0 %v716_v37  ;;  %411 = vmatprep.mubr.bf16.mxu0 %v717_v38 }
  0x26   :  { %460 = vmatprep.mubr.bf16.mxu1 %v719_v39 }
  0x28   :  { %668 = vmatpush3.bf16.msra.mxu0 %v716_v37 }
  0x29   :  { %669 = vmatprep.subr.bf16.mxu0 %v723_v41 }
  0x2b   :  { %412 = vmatmul.mubr.bf16.gmra.mxu0 %v721_v40 }
  0x2c   :  { %461 = vmatmul.mubr.bf16.gmra.mxu1 %v722_v42  ;;  %673 = vmatprep.mubr.msk.bf16.mxu0 %vm364_vm0, %v725_v43 }
  0x2d   :  { %670 = vmatpush3.bf16.msra.mxu0 %v723_v41 }
  0x2e   :  { %671 = vmatprep.subr.bf16.mxu0 %v724_v44 }
  0x31   :  { %672 = vmatpush3.bf16.msra.mxu0 %v724_v44 }
  0x34   :  { %674 = vmatmul.mubr.msk.bf16.vlgmr.msra.gmra.mxu0 %vm364_vm0, %v726_v45 }
  0xe3   :  { %v619_v46 = vpop.f32.mrf.mxu0 }
  0xe4   :  { %v647_v47 = vpop.f32.mrf.mxu1 }
  0xe5   :  { %v620_v48 = vpop.f32.mrf.mxu0 }
  0xe6   :  { %v648_v49 = vpop.f32.mrf.mxu1  ;;  %v621_v62 = vadd.f32 %v620_v48, %v619_v46 }
  0xe7   :  { %v622_v50 = vpop.f32.mrf.mxu0  ;;  %v649_v63 = vadd.f32 %v648_v49, %v647_v47 }
  0xe8   :  { %v650_v51 = vpop.f32.mrf.mxu1 }
  0xe9   :  { %v623_v52 = vpop.f32.mrf.mxu0  ;;  %v455_v9 = vadd.f32 %v649_v63, %v621_v62 }
  0xea   :  { %v651_v53 = vpop.f32.mrf.mxu1  ;;  %v624_v6 = vadd.f32 %v623_v52, %v622_v50 }
  0xeb   :  { %v625_v54 = vpop.f32.mrf.mxu0  ;;  %v652_v7 = vadd.f32 %v651_v53, %v650_v51 }
  0xec   :  { %v653_v55 = vpop.f32.mrf.mxu1 }
  0xed   :  { %v626_v56 = vpop.f32.mrf.mxu0  ;;  %v458_v15 = vadd.f32 %v652_v7, %v624_v6 }
  0xee   :  { %v654_v57 = vpop.f32.mrf.mxu1  ;;  %v627_v58 = vadd.f32 %v626_v56, %v625_v54 }
  0xef   :  { %v655_v59 = vadd.f32 %v654_v57, %v653_v55  ;;  %v628_v60 = vpop.f32.mrf.mxu0 }
  0xf0   :  { %v656_v61 = vpop.f32.mrf.mxu1 }
  0xf1   :  { %v629_v0 = vpop.f32.mrf.mxu0  ;;  %v463_v4 = vadd.f32 %v655_v59, %v627_v58 }
  0xf2   :  { %v657_v1 = vpop.f32.mrf.mxu1  ;;  %v630_v2 = vadd.f32 %v629_v0, %v628_v60 }
  0xf3   :  { %v658_v3 = vadd.f32 %v657_v1, %v656_v61 }
  0xf4   :  { %v675_v5 = vpop.f32.mrf.mxu0 }
  0xf5   :  { %v512_v8 = vadd.f32 %v675_v5, %v463_v4  ;;  %v466_v12 = vadd.f32 %v658_v3, %v630_v2 }
  0xf6   :  { %v503_v10 = vpop.f32.mrf.mxu0 }
  0xf7   :  { %520 = vst [vmem:[%s902_s2 + $0x10] sm:$0xff] %v512_v8  ;;  %v504_v11 = vadd.f32 %v503_v10, %v455_v9  ;;  %v533_v21 = vmul.f32 %v512_v8, %v512_v8 }
  0xf8   :  { %v676_v13 = vpop.f32.mrf.mxu0 }
  0xf9   :  { %518 = vst [vmem:[%s902_s2] sm:$0xff] %v504_v11  ;;  %v515_v14 = vadd.f32 %v676_v13, %v466_v12  ;;  %v531_v18 = vmul.f32 %v504_v11, %v504_v11 }
  0xfa   :  { %v506_v16 = vpop.f32.mrf.mxu0 }
  0xfb   :  { %521 = vst [vmem:[%s902_s2 + $0x18] sm:$0xff] %v515_v14  ;;  %v507_v17 = vadd.f32 %v506_v16, %v458_v15  ;;  %v534_v24 = vmul.f32 %v515_v14, %v515_v14 }
  0xfd   :  { %519 = vst [vmem:[%s902_s2 + $0x8] sm:$0xff] %v507_v17  ;;  %v522_v19 = vadd.f32 %v507_v17, %v504_v11  ;;  %v532_v20 = vmul.f32 %v507_v17, %v507_v17 }
  0xff   :  { %v523_v22 = vadd.f32 %v522_v19, %v512_v8  ;;  %v535_v23 = vadd.f32 %v532_v20, %v531_v18 }
 0x101   :  { %v524_v25 = vadd.f32 %v523_v22, %v515_v14  ;;  %v536_v26 = vadd.f32 %v535_v23, %v533_v21 }
 0x103   :  { %v525_v27 = vrot.slane %v524_v25, 4  ;;  %v537_v28 = vadd.f32 %v536_v26, %v534_v24 }
 0x105   :  { %v526_v29 = vadd.f32 %v525_v27, %v524_v25  ;;  %v538_v30 = vrot.slane %v537_v28, 4 }
 0x107   :  { %v527_v31 = vrot.slane %v526_v29, 2  ;;  %v539_v32 = vadd.f32 %v538_v30, %v537_v28 }
 0x109   :  { %v528_v33 = vadd.f32 %v527_v31, %v526_v29  ;;  %v540_v34 = vrot.slane %v539_v32, 2 }
 0x10b   :  { %v529_v35 = vrot.slane %v528_v33, 1  ;;  %v541_v36 = vadd.f32 %v540_v34, %v539_v32 }
 0x10d   :  { %v542_v37 = vrot.slane %v541_v36, 1  ;;  %v530_v38 = vadd.f32 %v529_v35, %v528_v33 }
 0x10f   :  { %v543_v39 = vadd.f32 %v542_v37, %v541_v36 }
 0x111   :  { %v545_v40 = vsel %vm544_vm1, %v530_v38, %v543_v39 }
 0x112   :  { %546 = vst [vmem:[%s903_s3] sm:$0x3] %v545_v40 }

// kernel: squeeze.8
= control target key start
LH: loop header
LB: loop body
LE: loop exit
PB: predicated region body
PF: predicated region fallthrough
CT: control target
= control target key end

     0   :  { %s40_s8 = smov 80   ;;  %vm8_vm0 = vcmask 130048   ;;  %s41_s9 = smov 96   ;;  %s58_s0 = inlined_call_operand.vmem [shape: f32[64], index: 0, kind: input, shape index: {}]   ;;  %s59_s1 = inlined_call_operand.vmem [shape: f32[4,16], index: 1, kind: output, shape index: {}]  }
   0x1   :  { %v5_v0 = vld [vmem:[%s58_s0] sm:$0x1]  ;;  %s39_s0 = smov 112  }
   0x2   :  { %6 = vst [vmem:[#allocation1] sm:$0x1] %v5_v0 }
   0x9   :  { %v10_v1 = vld [vmem:[#allocation1] sm:$0x1]  }
   0xa   :  { %v22_v2 = vld [vmem:[#allocation1] sm:$0x1]   ;;  %11 = vrot.lane.b32.xlu0 %v10_v1, %s39_s0 }
   0xb   :  { %23 = vrot.lane.b32.xlu1 %v22_v2, %s40_s8  ;;  %v7_v3 = vld [vmem:[#allocation1] sm:$0x1]  }
   0xc   :  { %v16_v4 = vld [vmem:[#allocation1] sm:$0x1]   ;;  %9 = vst.msk [vmem:[#allocation0] sm:$0x1] %vm8_vm0, %v7_v3  }
   0xe   :  { %17 = vrot.lane.b32.xlu0 %v16_v4, %s41_s9 }
  0x7c   :  { %v12_v5 = vpop.permute.xlu0 %11  }
  0x7d   :  { %v24_v6 = vpop.permute.xlu1 %23   ;;  %15 = vst.msk [vmem:[#allocation0 + $0x1] sm:$0x1] %vm8_vm0, %v12_v5  }
  0x7e   :  { %27 = vst.msk [vmem:[#allocation0 + $0x3] sm:$0x1] %vm8_vm0, %v24_v6  }
  0x80   :  { %v18_v7 = vpop.permute.xlu0 %17  }
  0x81   :  { %21 = vst.msk [vmem:[#allocation0 + $0x2] sm:$0x1] %vm8_vm0, %v18_v7  }
  0x88   :  { %v32_v8 = vld [vmem:[#allocation0] sm:$0xf] }
  0x89   :  { %35 = vst [vmem:[%s59_s1] sm:$0xf] %v32_v8 }

// kernel: tile.48
= control target key start
LH: loop header
LB: loop body
LE: loop exit
PB: predicated region body
PF: predicated region fallthrough
CT: control target
= control target key end

     0   :  { %s22_s0 = inlined_call_operand.vmem [shape: f32[16], index: 0, kind: input, shape index: {}]   ;;  %s23_s1 = inlined_call_operand.vmem [shape: f32[4,16], index: 1, kind: output, shape index: {}]  }
   0x1   :  { %v4_v0 = vld [vmem:[%s22_s0] ss:$0 sm:$0xff] }
   0x2   :  { %5 = vst [vmem:[%s23_s1] sm:$0xf] %v4_v0 }

// kernel: tile.49
= control target key start
LH: loop header
LB: loop body
LE: loop exit
PB: predicated region body
PF: predicated region fallthrough
CT: control target
= control target key end

     0   :  { %vm8_vm0 = vcmask 130048   ;;  %s40_s8 = smov 16   ;;  %s41_s9 = smov 32   ;;  %vm14_vm1 = vcmask 523648   ;;  %vm20_vm2 = vcmask 392448   ;;  %vm26_vm3 = vcmask 261248   ;;  %s58_s0 = inlined_call_operand.vmem [shape: f32[4,16], index: 0, kind: input, shape index: {}]   ;;  %s59_s1 = inlined_call_operand.vmem [shape: f32[64], index: 1, kind: output, shape index: {}]  }
   0x1   :  { %v5_v0 = vld [vmem:[%s58_s0] sm:$0xf]  ;;  %s39_s0 = smov 48  }
   0x2   :  { %6 = vst [vmem:[#allocation1] sm:$0xf] %v5_v0 }
   0x9   :  { %v11_v1 = vld [vmem:[#allocation1 + $0x3] sm:$0x1]   ;;  %v23_v2 = vld [vmem:[#allocation1 + $0x1] sm:$0x1]   ;;  %v7_v3 = vld [vmem:[#allocation1] sm:$0x1]  }
   0xa   :  { %12 = vrot.lane.b32.xlu0 %v11_v1, %s39_s0  ;;  %24 = vrot.lane.b32.xlu1 %v23_v2, %s40_s8  ;;  %v17_v4 = vld [vmem:[#allocation1 + $0x2] sm:$0x1]   ;;  %9 = vst.msk [vmem:[#allocation0] sm:$0x1] %vm8_vm0, %v7_v3  }
   0xe   :  { %18 = vrot.lane.b32.xlu0 %v17_v4, %s41_s9 }
  0x7c   :  { %v13_v5 = vpop.permute.xlu0 %12   ;;  %v25_v6 = vpop.permute.xlu1 %24  }
  0x7d   :  { %15 = vst.msk [vmem:[#allocation0] sm:$0x1] %vm14_vm1, %v13_v5  }
  0x80   :  { %v19_v7 = vpop.permute.xlu0 %18  }
  0x81   :  { %21 = vst.msk [vmem:[#allocation0] sm:$0x1] %vm20_vm2, %v19_v7  }
  0x82   :  { %27 = vst.msk [vmem:[#allocation0] sm:$0x1] %vm26_vm3, %v25_v6  }
  0x89   :  { %v32_v8 = vld [vmem:[#allocation0] sm:$0x1] }
  0x8a   :  { %35 = vst [vmem:[%s59_s1] sm:$0x1] %v32_v8 }

// kernel: generator_forward.13
= control target key start
LH: loop header
LB: loop body
LE: loop exit
PB: predicated region body
PF: predicated region fallthrough
CT: control target
= control target key end

     0   :  { %vm310_vm0 = vcmask 261120   ;;  %vm603_vm1 = vcmask 1040384   ;;  %s1053_s1 = inlined_call_operand.vmem [shape: bf16[288,128], index: 1, kind: input, shape index: {}]   ;;  %s1054_s0 = inlined_call_operand.vmem [shape: bf16[128,288], index: 0, kind: input, shape index: {}]   ;;  %s1055_s2 = inlined_call_operand.vmem [shape: f32[128,128], index: 2, kind: output, shape index: {0}]   ;;  %s1056_s3 = inlined_call_operand.vmem [shape: f32[1,2,128], index: 3, kind: output, shape index: {1}]  }
   0x1   :  { %v774_v0 = vld [vmem:[%s1053_s1 + $0x78] sm:$0xff]   ;;  %v776_v2 = vld [vmem:[%s1053_s1 + $0x70] sm:$0xff]   ;;  %v778_v4 = vld [vmem:[%s1053_s1 + $0x68] sm:$0xff]  }
   0x2   :  { %v775_v1 = vld [vmem:[%s1053_s1 + $0x38] sm:$0xff]   ;;  %664 = vmatprep.subr.bf16.mxu0 %v774_v0  ;;  %758 = vmatprep.subr.bf16.mxu1 %v774_v0  ;;  %v777_v3 = vld [vmem:[%s1053_s1 + $0x30] sm:$0xff]   ;;  %v779_v5 = vld [vmem:[%s1053_s1 + $0x28] sm:$0xff]  }
   0x3   :  { %665 = vmatpush3.bf16.msra.mxu0 %v775_v1  ;;  %766 = vmatpush3.bf16.msra.mxu1 %v775_v1  ;;  %v780_v6 = vld [vmem:[%s1053_s1 + $0x60] sm:$0xff]   ;;  %v782_v8 = vld [vmem:[%s1053_s1 + $0x58] sm:$0xff]   ;;  %v784_v10 = vld [vmem:[%s1053_s1 + $0x50] sm:$0xff]  }
   0x4   :  { %666 = vmatprep.subr.bf16.mxu0 %v776_v2  ;;  %759 = vmatprep.subr.bf16.mxu1 %v776_v2  ;;  %v781_v7 = vld [vmem:[%s1053_s1 + $0x20] sm:$0xff]   ;;  %v783_v9 = vld [vmem:[%s1053_s1 + $0x18] sm:$0xff]   ;;  %v785_v13 = vld [vmem:[%s1053_s1 + $0x10] sm:$0xff]  }
   0x5   :  { %v792_v11 = vld [vmem:[%s1054_s0 + $0x4] ss:$12 sps:$4 sm:$0xff]   ;;  %v795_v12 = vld [vmem:[%s1054_s0 + $0x94] ss:$12 sps:$4 sm:$0xff]   ;;  %v786_v14 = vld [vmem:[%s1053_s1 + $0x48] sm:$0xff]  }
   0x6   :  { %367 = vmatprep.mubr.bf16.mxu0 %v792_v11  ;;  %415 = vmatprep.mubr.bf16.mxu1 %v795_v12  ;;  %v787_v15 = vld [vmem:[%s1053_s1 + $0x8] sm:$0xff]   ;;  %v788_v16 = vld [vmem:[%s1053_s1 + $0x40] sm:$0xff]   ;;  %v793_v20 = vld [vmem:[%s1054_s0 + $0x90] ss:$12 sps:$4 sm:$0xff]  }
   0x7   :  { %667 = vmatpush3.bf16.msra.mxu0 %v777_v3  ;;  %767 = vmatpush3.bf16.msra.mxu1 %v777_v3  ;;  %v789_v17 = vld [vmem:[%s1053_s1] sm:$0xff]   ;;  %v796_v19 = vld [vmem:[%s1053_s1 + $0x88] sm:$0xff]   ;;  %v807_v28 = vld [vmem:[%s1054_s0 + $0x30] ss:$12 sps:$4 sm:$0xff]  }
   0x8   :  { %668 = vmatprep.subr.bf16.mxu0 %v778_v4  ;;  %760 = vmatprep.subr.bf16.mxu1 %v778_v4  ;;  %v790_v18 = vld [vmem:[%s1054_s0] ss:$12 sps:$4 sm:$0xff]   ;;  %v797_v21 = vld [vmem:[%s1054_s0 + $0x1c] ss:$12 sps:$4 sm:$0xff]   ;;  %v801_v24 = vld [vmem:[%s1054_s0 + $0x18] ss:$12 sps:$4 sm:$0xff]  }
   0x9   :  { %v799_v22 = vld [vmem:[%s1054_s0 + $0xac] ss:$12 sps:$4 sm:$0xff]   ;;  %v803_v23 = vld [vmem:[%s1053_s1 + $0x80] sm:$0xff]   ;;  %v802_v25 = vld [vmem:[%s1054_s0 + $0xa8] ss:$12 sps:$4 sm:$0xff]  }
   0xa   :  { %v804_v26 = vld [vmem:[%s1054_s0 + $0x34] ss:$12 sps:$4 sm:$0xff]   ;;  %v809_v30 = vld [vmem:[%s1054_s0 + $0x4c] ss:$12 sps:$4 sm:$0xff]   ;;  %v813_v33 = vld [vmem:[%s1054_s0 + $0x50] ss:$12 sps:$4 sm:$0xff]  }
   0xb   :  { %669 = vmatpush3.bf16.msra.mxu0 %v779_v5  ;;  %768 = vmatpush3.bf16.msra.mxu1 %v779_v5  ;;  %v806_v27 = vld [vmem:[%s1054_s0 + $0x8] ss:$12 sps:$4 sm:$0xff]   ;;  %v808_v29 = vld [vmem:[%s1054_s0 + $0x20] ss:$12 sps:$4 sm:$0xff]   ;;  %v811_v31 = vld [vmem:[%s1054_s0 + $0x38] ss:$12 sps:$4 sm:$0xff]  }
   0xc   :  { %670 = vmatprep.subr.bf16.mxu0 %v780_v6  ;;  %761 = vmatprep.subr.bf16.mxu1 %v780_v6  ;;  %v812_v32 = vld [vmem:[%s1054_s0 + $0x48] ss:$12 sps:$4 sm:$0xff]   ;;  %v814_v34 = vld [vmem:[%s1054_s0 + $0x64] ss:$12 sps:$4 sm:$0xff]   ;;  %v817_v36 = vld [vmem:[%s1054_s0 + $0x60] ss:$12 sps:$4 sm:$0xff]  }
   0xd   :  { %v816_v35 = vld [vmem:[%s1054_s0 + $0x68] ss:$12 sps:$4 sm:$0xff]   ;;  %v818_v37 = vld [vmem:[%s1054_s0 + $0x80] ss:$12 sps:$4 sm:$0xff]   ;;  %v821_v39 = vld [vmem:[%s1054_s0 + $0x98] ss:$12 sps:$4 sm:$0xff]  }
   0xe   :  { %v819_v38 = vld [vmem:[%s1054_s0 + $0x7c] ss:$12 sps:$4 sm:$0xff]   ;;  %v822_v40 = vld [vmem:[%s1054_s0 + $0x78] ss:$12 sps:$4 sm:$0xff]  }
   0xf   :  { %671 = vmatpush3.bf16.msra.mxu0 %v781_v7  ;;  %769 = vmatpush3.bf16.msra.mxu1 %v781_v7  ;;  %v823_v41 = vld [vmem:[%s1054_s0 + $0xb0] ss:$12 sps:$4 sm:$0xff]  }
  0x10   :  { %672 = vmatprep.subr.bf16.mxu0 %v782_v8  ;;  %762 = vmatprep.subr.bf16.mxu1 %v782_v8 }
  0x13   :  { %673 = vmatpush3.bf16.msra.mxu0 %v783_v9  ;;  %770 = vmatpush3.bf16.msra.mxu1 %v783_v9 }
  0x14   :  { %674 = vmatprep.subr.bf16.mxu0 %v784_v10  ;;  %763 = vmatprep.subr.bf16.mxu1 %v784_v10 }
  0x17   :  { %675 = vmatpush3.bf16.msra.mxu0 %v785_v13  ;;  %771 = vmatpush3.bf16.msra.mxu1 %v785_v13 }
  0x18   :  { %676 = vmatprep.subr.bf16.mxu0 %v786_v14  ;;  %764 = vmatprep.subr.bf16.mxu1 %v786_v14 }
  0x1b   :  { %677 = vmatpush3.bf16.msra.mxu0 %v787_v15  ;;  %772 = vmatpush3.bf16.msra.mxu1 %v787_v15 }
  0x1c   :  { %678 = vmatprep.subr.bf16.mxu0 %v788_v16  ;;  %765 = vmatprep.subr.bf16.mxu1 %v788_v16 }
  0x1f   :  { %679 = vmatpush3.bf16.msra.mxu0 %v789_v17  ;;  %773 = vmatpush3.bf16.msra.mxu1 %v789_v17 }
  0x20   :  { %738 = vmatprep.subr.bf16.mxu1 %v796_v19 }
  0x22   :  { %368 = vmatmul.mubr.bf16.vlgmr.msra.gmra.mxu0 %v790_v18  ;;  %416 = vmatmul.mubr.bf16.vlgmr.msra.gmra.mxu1 %v793_v20 }
  0x23   :  { %739 = vmatpush3.bf16.msra.mxu1 %v796_v19  ;;  %375 = vmatprep.mubr.bf16.mxu0 %v797_v21 }
  0x24   :  { %423 = vmatprep.mubr.bf16.mxu1 %v799_v22  ;;  %740 = vmatprep.subr.bf16.mxu1 %v803_v23 }
  0x27   :  { %741 = vmatpush3.bf16.msra.mxu1 %v803_v23 }
  0x2a   :  { %376 = vmatmul.mubr.bf16.gmra.mxu0 %v801_v24  ;;  %424 = vmatmul.mubr.bf16.gmra.mxu1 %v802_v25 }
  0x2b   :  { %383 = vmatprep.mubr.bf16.mxu0 %v804_v26  ;;  %742 = vmatprep.mubr.msk.bf16.mxu1 %vm310_vm0, %v806_v27 }
  0x32   :  { %384 = vmatmul.mubr.bf16.gmra.mxu0 %v807_v28  ;;  %743 = vmatmul.mubr.msk.bf16.vlgmr.msra.gmra.mxu1 %vm310_vm0, %v808_v29 }
  0x33   :  { %391 = vmatprep.mubr.bf16.mxu0 %v809_v30  ;;  %746 = vmatprep.mubr.msk.bf16.mxu1 %vm310_vm0, %v811_v31 }
  0x3a   :  { %392 = vmatmul.mubr.bf16.gmra.mxu0 %v812_v32  ;;  %747 = vmatmul.mubr.msk.bf16.gmra.mxu1 %vm310_vm0, %v813_v33 }
  0x3b   :  { %399 = vmatprep.mubr.bf16.mxu0 %v814_v34  ;;  %750 = vmatprep.mubr.msk.bf16.mxu1 %vm310_vm0, %v816_v35 }
  0x42   :  { %400 = vmatmul.mubr.bf16.gmra.mxu0 %v817_v36  ;;  %751 = vmatmul.mubr.msk.bf16.gmra.mxu1 %vm310_vm0, %v818_v37 }
  0x43   :  { %407 = vmatprep.mubr.bf16.mxu0 %v819_v38  ;;  %754 = vmatprep.mubr.msk.bf16.mxu1 %vm310_vm0, %v821_v39 }
  0x4a   :  { %408 = vmatmul.mubr.bf16.gmra.mxu0 %v822_v40  ;;  %755 = vmatmul.mubr.msk.bf16.gmra.mxu1 %vm310_vm0, %v823_v41 }
  0xe2   :  { %v680_v42 = vpop.f32.mrf.mxu0  ;;  %v978_v43 = vpop.f32.mrf.mxu1 }
  0xe4   :  { %v681_v44 = vpop.f32.mrf.mxu0  ;;  %v980_v45 = vpop.f32.mrf.mxu1 }
  0xe5   :  { %v682_v61 = vadd.f32 %v681_v44, %v680_v42 }
  0xe6   :  { %v683_v46 = vpop.f32.mrf.mxu0  ;;  %v982_v47 = vpop.f32.mrf.mxu1 }
  0xe8   :  { %v684_v48 = vpop.f32.mrf.mxu0  ;;  %v984_v49 = vpop.f32.mrf.mxu1 }
  0xe9   :  { %v685_v5 = vadd.f32 %v684_v48, %v683_v46 }
  0xea   :  { %v686_v50 = vpop.f32.mrf.mxu0  ;;  %v986_v51 = vpop.f32.mrf.mxu1 }
  0xec   :  { %v687_v52 = vpop.f32.mrf.mxu0  ;;  %v988_v53 = vpop.f32.mrf.mxu1 }
  0xed   :  { %v688_v58 = vadd.f32 %v687_v52, %v686_v50 }
  0xee   :  { %v689_v54 = vpop.f32.mrf.mxu0  ;;  %v990_v55 = vpop.f32.mrf.mxu1 }
  0xf0   :  { %v690_v56 = vpop.f32.mrf.mxu0  ;;  %v992_v57 = vpop.f32.mrf.mxu1 }
  0xf1   :  { %v691_v1 = vadd.f32 %v690_v56, %v689_v54 }
  0xf2   :  { %v692_v59 = vpop.f32.mrf.mxu0  ;;  %v744_v60 = vpop.f32.mrf.mxu1 }
  0xf3   :  { %v475_v62 = vadd.f32 %v744_v60, %v688_v58 }
  0xf4   :  { %v693_v63 = vpop.f32.mrf.mxu0  ;;  %v466_v0 = vpop.f32.mrf.mxu1 }
  0xf5   :  { %531 = vst [vmem:[%s1055_s2 + $0x10] sm:$0xff] %v475_v62  ;;  %v467_v2 = vadd.f32 %v682_v61, %v466_v0  ;;  %v694_v12 = vadd.f32 %v693_v63, %v692_v59  ;;  %v568_v16 = vmul.f32 %v475_v62, %v475_v62 }
  0xf6   :  { %v695_v3 = vpop.f32.mrf.mxu0  ;;  %v745_v4 = vpop.f32.mrf.mxu1 }
  0xf7   :  { %529 = vst [vmem:[%s1055_s2] sm:$0xff] %v467_v2  ;;  %v478_v6 = vadd.f32 %v745_v4, %v691_v1  ;;  %v566_v13 = vmul.f32 %v467_v2, %v467_v2 }
  0xf8   :  { %v696_v7 = vpop.f32.mrf.mxu0  ;;  %v469_v8 = vpop.f32.mrf.mxu1 }
  0xf9   :  { %532 = vst [vmem:[%s1055_s2 + $0x18] sm:$0xff] %v478_v6  ;;  %v470_v9 = vadd.f32 %v685_v5, %v469_v8  ;;  %v569_v25 = vmul.f32 %v478_v6, %v478_v6  ;;  %v697_v29 = vadd.f32 %v696_v7, %v695_v3  ;;  %v718_v7 = vadd.f32 %v980_v45, %v978_v43 }
  0xfa   :  { %v698_v10 = vpop.f32.mrf.mxu0  ;;  %v748_v11 = vpop.f32.mrf.mxu1 }
  0xfb   :  { %530 = vst [vmem:[%s1055_s2 + $0x8] sm:$0xff] %v470_v9  ;;  %v545_v14 = vadd.f32 %v470_v9, %v467_v2  ;;  %v567_v15 = vmul.f32 %v470_v9, %v470_v9 }
  0xfc   :  { %v699_v17 = vpop.f32.mrf.mxu0  ;;  %v482_v18 = vpop.f32.mrf.mxu1 }
  0xfd   :  { %v546_v19 = vadd.f32 %v545_v14, %v475_v62  ;;  %v582_v20 = vadd.f32 %v567_v15, %v566_v13  ;;  %v700_v21 = vadd.f32 %v699_v17, %v698_v10  ;;  %v483_v22 = vadd.f32 %v694_v12, %v482_v18 }
  0xfe   :  { %v701_v23 = vpop.f32.mrf.mxu0  ;;  %v749_v24 = vpop.f32.mrf.mxu1  ;;  %v724_v62 = vadd.f32 %v988_v53, %v986_v51  ;;  %v727_v51 = vadd.f32 %v992_v57, %v990_v55  ;;  %v721_v55 = vadd.f32 %v984_v49, %v982_v47 }
  0xff   :  { %v583_v26 = vadd.f32 %v582_v20, %v568_v16  ;;  %v491_v27 = vadd.f32 %v748_v11, %v700_v21  ;;  %533 = vst [vmem:[%s1055_s2 + $0x20] sm:$0xff] %v483_v22  ;;  %v547_v28 = vadd.f32 %v546_v19, %v478_v6  ;;  %v570_v33 = vmul.f32 %v483_v22, %v483_v22 }
 0x100   :  { %v702_v30 = vpop.f32.mrf.mxu0  ;;  %v485_v31 = vpop.f32.mrf.mxu1 }
 0x101   :  { %535 = vst [vmem:[%s1055_s2 + $0x30] sm:$0xff] %v491_v27  ;;  %v548_v32 = vadd.f32 %v547_v28, %v483_v22  ;;  %v584_v34 = vadd.f32 %v583_v26, %v569_v25  ;;  %v703_v35 = vadd.f32 %v702_v30, %v701_v23  ;;  %v486_v36 = vadd.f32 %v697_v29, %v485_v31 }
 0x102   :  { %v704_v37 = vpop.f32.mrf.mxu0  ;;  %v752_v38 = vpop.f32.mrf.mxu1  ;;  %v572_v56 = vmul.f32 %v491_v27, %v491_v27 }
 0x103   :  { %v585_v39 = vadd.f32 %v584_v34, %v570_v33  ;;  %v494_v40 = vadd.f32 %v749_v24, %v703_v35  ;;  %534 = vst [vmem:[%s1055_s2 + $0x28] sm:$0xff] %v486_v36  ;;  %v549_v41 = vadd.f32 %v548_v32, %v486_v36  ;;  %v571_v42 = vmul.f32 %v486_v36, %v486_v36 }
 0x104   :  { %v705_v44 = vpop.f32.mrf.mxu0  ;;  %v498_v46 = vpop.f32.mrf.mxu1 }
 0x105   :  { %536 = vst [vmem:[%s1055_s2 + $0x38] sm:$0xff] %v494_v40  ;;  %v706_v48 = vadd.f32 %v705_v44, %v704_v37  ;;  %v586_v50 = vadd.f32 %v585_v39, %v571_v42  ;;  %v550_v58 = vadd.f32 %v549_v41, %v491_v27  ;;  %v573_v3 = vmul.f32 %v494_v40, %v494_v40 }
 0x106   :  { %v707_v52 = vpop.f32.mrf.mxu0  ;;  %v753_v54 = vpop.f32.mrf.mxu1 }
 0x107   :  { %v499_v59 = vadd.f32 %v706_v48, %v498_v46  ;;  %v587_v63 = vadd.f32 %v586_v50, %v572_v56  ;;  %v551_v4 = vadd.f32 %v550_v58, %v494_v40 }
 0x108   :  { %v708_v60 = vpop.f32.mrf.mxu0  ;;  %v501_v61 = vpop.f32.mrf.mxu1 }
 0x109   :  { %537 = vst [vmem:[%s1055_s2 + $0x40] sm:$0xff] %v499_v59  ;;  %v709_v0 = vadd.f32 %v708_v60, %v707_v52  ;;  %v574_v53 = vmul.f32 %v499_v59, %v499_v59  ;;  %v588_v10 = vadd.f32 %v587_v63, %v573_v3  ;;  %v552_v43 = vadd.f32 %v551_v4, %v499_v59 }
 0x10a   :  { %v710_v1 = vpop.f32.mrf.mxu0  ;;  %v756_v2 = vpop.f32.mrf.mxu1 }
 0x10b   :  { %v502_v5 = vadd.f32 %v709_v0, %v501_v61  ;;  %v523_v6 = vadd.f32 %v756_v2, %v724_v62  ;;  %v589_v18 = vadd.f32 %v588_v10, %v574_v53 }
 0x10c   :  { %v711_v8 = vpop.f32.mrf.mxu0  ;;  %v514_v9 = vpop.f32.mrf.mxu1 }
 0x10d   :  { %538 = vst [vmem:[%s1055_s2 + $0x48] sm:$0xff] %v502_v5  ;;  %543 = vst [vmem:[%s1055_s2 + $0x70] sm:$0xff] %v523_v6  ;;  %v712_v11 = vadd.f32 %v711_v8, %v710_v1  ;;  %v515_v12 = vadd.f32 %v718_v7, %v514_v9  ;;  %v575_v45 = vmul.f32 %v502_v5, %v502_v5 }
 0x10e   :  { %v713_v13 = vpop.f32.mrf.mxu0  ;;  %v757_v14 = vpop.f32.mrf.mxu1  ;;  %v553_v19 = vadd.f32 %v552_v43, %v502_v5  ;;  %v580_v33 = vmul.f32 %v523_v6, %v523_v6 }
 0x10f   :  { %v507_v15 = vadd.f32 %v752_v38, %v712_v11  ;;  %v526_v16 = vadd.f32 %v757_v14, %v727_v51  ;;  %541 = vst [vmem:[%s1055_s2 + $0x60] sm:$0xff] %v515_v12  ;;  %v590_v47 = vadd.f32 %v589_v18, %v575_v45  ;;  %v578_v27 = vmul.f32 %v515_v12, %v515_v12 }
 0x110   :  { %v714_v57 = vpop.f32.mrf.mxu0  ;;  %v517_v17 = vpop.f32.mrf.mxu1 }
 0x111   :  { %539 = vst [vmem:[%s1055_s2 + $0x50] sm:$0xff] %v507_v15  ;;  %v576_v20 = vmul.f32 %v507_v15, %v507_v15  ;;  %544 = vst [vmem:[%s1055_s2 + $0x78] sm:$0xff] %v526_v16  ;;  %v715_v21 = vadd.f32 %v714_v57, %v713_v13  ;;  %v518_v22 = vadd.f32 %v721_v55, %v517_v17 }
 0x112   :  { %v554_v49 = vadd.f32 %v553_v19, %v507_v15  ;;  %v581_v36 = vmul.f32 %v526_v16, %v526_v16 }
 0x113   :  { %v510_v23 = vadd.f32 %v753_v54, %v715_v21  ;;  %542 = vst [vmem:[%s1055_s2 + $0x68] sm:$0xff] %v518_v22  ;;  %v591_v24 = vadd.f32 %v590_v47, %v576_v20  ;;  %v579_v31 = vmul.f32 %v518_v22, %v518_v22 }
 0x115   :  { %540 = vst [vmem:[%s1055_s2 + $0x58] sm:$0xff] %v510_v23  ;;  %v555_v25 = vadd.f32 %v554_v49, %v510_v23  ;;  %v577_v26 = vmul.f32 %v510_v23, %v510_v23 }
 0x117   :  { %v592_v28 = vadd.f32 %v591_v24, %v577_v26  ;;  %v556_v29 = vadd.f32 %v555_v25, %v515_v12 }
 0x119   :  { %v557_v30 = vadd.f32 %v556_v29, %v518_v22  ;;  %v593_v32 = vadd.f32 %v592_v28, %v578_v27 }
 0x11b   :  { %v558_v34 = vadd.f32 %v557_v30, %v523_v6  ;;  %v594_v35 = vadd.f32 %v593_v32, %v579_v31 }
 0x11d   :  { %v559_v37 = vadd.f32 %v558_v34, %v526_v16  ;;  %v595_v38 = vadd.f32 %v594_v35, %v580_v33 }
 0x11f   :  { %v560_v39 = vrot.slane %v559_v37, 4  ;;  %v596_v40 = vadd.f32 %v595_v38, %v581_v36 }
 0x121   :  { %v561_v41 = vadd.f32 %v560_v39, %v559_v37  ;;  %v597_v42 = vrot.slane %v596_v40, 4 }
 0x123   :  { %v562_v44 = vrot.slane %v561_v41, 2  ;;  %v598_v46 = vadd.f32 %v597_v42, %v596_v40 }
 0x125   :  { %v563_v48 = vadd.f32 %v562_v44, %v561_v41  ;;  %v599_v50 = vrot.slane %v598_v46, 2 }
 0x127   :  { %v564_v52 = vrot.slane %v563_v48, 1  ;;  %v600_v54 = vadd.f32 %v599_v50, %v598_v46 }
 0x129   :  { %v601_v56 = vrot.slane %v600_v54, 1  ;;  %v565_v58 = vadd.f32 %v564_v52, %v563_v48 }
 0x12b   :  { %v602_v59 = vadd.f32 %v601_v56, %v600_v54 }
 0x12d   :  { %v604_v60 = vsel %vm603_vm1, %v565_v58, %v602_v59 }
 0x12e   :  { %605 = vst [vmem:[%s1056_s3] sm:$0x3] %v604_v60 }

// kernel: generator_forward.14
= control target key start
LH: loop header
LB: loop body
LE: loop exit
PB: predicated region body
PF: predicated region fallthrough
CT: control target
= control target key end

     0   :  { %s391_s0 = inlined_call_operand.vmem [shape: f32[128,128], index: 0, kind: input, shape index: {}]   ;;  %s392_s1 = inlined_call_operand.vmem [shape: f32[1,128], index: 1, kind: input, shape index: {}]   ;;  %s393_s2 = inlined_call_operand.vmem [shape: f32[1,128], index: 2, kind: input, shape index: {}]   ;;  %s394_s3 = inlined_call_operand.vmem [shape: bf16[128,128], index: 3, kind: output, shape index: {}]  }
   0x1   :  { %v14_v0 = vld [vmem:[%s391_s0] sm:$0xff]  ;;  %v15_v1 = vld [vmem:[%s391_s0 + $0x8] sm:$0xff]  ;;  %v16_v6 = vld [vmem:[%s391_s0 + $0x10] sm:$0xff] }
   0x2   :  { %v286_v2 = vld [vmem:[%s392_s1] ss:$0 sm:$0xff]  ;;  %v17_v7 = vld [vmem:[%s391_s0 + $0x18] sm:$0xff]  ;;  %v19_v11 = vld [vmem:[%s391_s0 + $0x28] sm:$0xff] }
   0x3   :  { %v37_v3 = vmul.f32 %v286_v2, %v14_v0  ;;  %v38_v4 = vmul.f32 %v286_v2, %v15_v1  ;;  %v293_v5 = vld [vmem:[%s393_s2] ss:$0 sm:$0xff]  ;;  %v39_v8 = vmul.f32 %v286_v2, %v16_v6  ;;  %v40_v9 = vmul.f32 %v286_v2, %v17_v7  ;;  %v20_v12 = vld [vmem:[%s391_s0 + $0x30] sm:$0xff]  ;;  %v21_v17 = vld [vmem:[%s391_s0 + $0x38] sm:$0xff] }
   0x4   :  { %v18_v10 = vld [vmem:[%s391_s0 + $0x20] sm:$0xff]  ;;  %v42_v16 = vmul.f32 %v286_v2, %v19_v11  ;;  %v43_v20 = vmul.f32 %v286_v2, %v20_v12  ;;  %v44_v21 = vmul.f32 %v286_v2, %v21_v17  ;;  %v23_v27 = vld [vmem:[%s391_s0 + $0x48] sm:$0xff]  ;;  %v24_v32 = vld [vmem:[%s391_s0 + $0x50] sm:$0xff] }
   0x5   :  { %v60_v13 = vadd.f32 %v293_v5, %v37_v3  ;;  %v61_v14 = vadd.f32 %v293_v5, %v38_v4  ;;  %v41_v15 = vmul.f32 %v286_v2, %v18_v10  ;;  %v62_v18 = vadd.f32 %v293_v5, %v39_v8  ;;  %v22_v22 = vld [vmem:[%s391_s0 + $0x40] sm:$0xff]  ;;  %v25_v33 = vld [vmem:[%s391_s0 + $0x58] sm:$0xff]  ;;  %v27_v39 = vld [vmem:[%s391_s0 + $0x68] sm:$0xff] }
   0x6   :  { %v63_v19 = vadd.f32 %v293_v5, %v40_v9  ;;  %v65_v26 = vadd.f32 %v293_v5, %v42_v16  ;;  %v66_v30 = vadd.f32 %v293_v5, %v43_v20  ;;  %v67_v31 = vadd.f32 %v293_v5, %v44_v21  ;;  %v26_v38 = vld [vmem:[%s391_s0 + $0x60] sm:$0xff]  ;;  %v28_v44 = vld [vmem:[%s391_s0 + $0x70] sm:$0xff]  ;;  %v29_v49 = vld [vmem:[%s391_s0 + $0x78] sm:$0xff] }
   0x7   :  { %v76_v23 = vmax.f32 %v60_v13, 0.0  ;;  %v77_v24 = vmax.f32 %v61_v14, 0.0  ;;  %v64_v25 = vadd.f32 %v293_v5, %v41_v15  ;;  %v78_v28 = vmax.f32 %v62_v18, 0.0 }
   0x8   :  { %v79_v29 = vmax.f32 %v63_v19, 0.0  ;;  %v81_v36 = vmax.f32 %v65_v26, 0.0  ;;  %v45_v37 = vmul.f32 %v286_v2, %v22_v22  ;;  %v82_v41 = vmax.f32 %v66_v30, 0.0 }
   0x9   :  { %v213_v34 = vpack.c.bf16 %v77_v24, %v76_v23  ;;  %v80_v35 = vmax.f32 %v64_v25, 0.0  ;;  %v83_v42 = vmax.f32 %v67_v31, 0.0  ;;  %v46_v43 = vmul.f32 %v286_v2, %v23_v27 }
   0xa   :  { %v218_v40 = vpack.c.bf16 %v79_v29, %v78_v28  ;;  %v68_v46 = vadd.f32 %v293_v5, %v45_v37  ;;  %v47_v47 = vmul.f32 %v286_v2, %v24_v32  ;;  %v48_v48 = vmul.f32 %v286_v2, %v25_v33 }
   0xb   :  { %214 = vst [vmem:[%s394_s3] sm:$0xff] %v213_v34   ;;  %v223_v45 = vpack.c.bf16 %v81_v36, %v80_v35  ;;  %v228_v50 = vpack.c.bf16 %v83_v42, %v82_v41  ;;  %v69_v51 = vadd.f32 %v293_v5, %v46_v43  ;;  %v49_v52 = vmul.f32 %v286_v2, %v26_v38 }
   0xc   :  { %250 = vst [vmem:[%s394_s3 + $0x8] sm:$0xff] %v218_v40   ;;  %v50_v53 = vmul.f32 %v286_v2, %v27_v39  ;;  %v84_v54 = vmax.f32 %v68_v46, 0.0  ;;  %v70_v55 = vadd.f32 %v293_v5, %v47_v47  ;;  %v71_v56 = vadd.f32 %v293_v5, %v48_v48 }
   0xd   :  { %251 = vst [vmem:[%s394_s3 + $0x10] sm:$0xff] %v223_v45   ;;  %v51_v57 = vmul.f32 %v286_v2, %v28_v44  ;;  %252 = vst [vmem:[%s394_s3 + $0x18] sm:$0xff] %v228_v50   ;;  %v85_v58 = vmax.f32 %v69_v51, 0.0  ;;  %v72_v59 = vadd.f32 %v293_v5, %v49_v52  ;;  %v52_v61 = vmul.f32 %v286_v2, %v29_v49 }
   0xe   :  { %v73_v60 = vadd.f32 %v293_v5, %v50_v53  ;;  %v86_v62 = vmax.f32 %v70_v55, 0.0  ;;  %v87_v63 = vmax.f32 %v71_v56, 0.0 }
   0xf   :  { %v74_v0 = vadd.f32 %v293_v5, %v51_v57  ;;  %v233_v1 = vpack.c.bf16 %v85_v58, %v84_v54  ;;  %v88_v3 = vmax.f32 %v72_v59, 0.0  ;;  %v75_v6 = vadd.f32 %v293_v5, %v52_v61 }
  0x10   :  { %v89_v4 = vmax.f32 %v73_v60, 0.0  ;;  %v238_v7 = vpack.c.bf16 %v87_v63, %v86_v62 }
  0x11   :  { %v90_v8 = vmax.f32 %v74_v0, 0.0  ;;  %253 = vst [vmem:[%s394_s3 + $0x20] sm:$0xff] %v233_v1   ;;  %v91_v10 = vmax.f32 %v75_v6, 0.0 }
  0x12   :  { %v243_v9 = vpack.c.bf16 %v89_v4, %v88_v3  ;;  %254 = vst [vmem:[%s394_s3 + $0x28] sm:$0xff] %v238_v7  }
  0x13   :  { %v248_v2 = vpack.c.bf16 %v91_v10, %v90_v8 }
  0x14   :  { %255 = vst [vmem:[%s394_s3 + $0x30] sm:$0xff] %v243_v9  }
  0x15   :  { %256 = vst [vmem:[%s394_s3 + $0x38] sm:$0xff] %v248_v2  }

// kernel: squeeze.10
= control target key start
LH: loop header
LB: loop body
LE: loop exit
PB: predicated region body
PF: predicated region fallthrough
CT: control target
= control target key end

     0   :  { %s40_s8 = smov 104   ;;  %vm8_vm0 = vcmask 64512   ;;  %s41_s9 = smov 112   ;;  %s58_s0 = inlined_call_operand.vmem [shape: f32[32], index: 0, kind: input, shape index: {}]   ;;  %s59_s1 = inlined_call_operand.vmem [shape: f32[4,8], index: 1, kind: output, shape index: {}]  }
   0x1   :  { %v5_v0 = vld [vmem:[%s58_s0] sm:$0x1]  ;;  %s39_s0 = smov 120  }
   0x2   :  { %6 = vst [vmem:[#allocation1] sm:$0x1] %v5_v0 }
   0x9   :  { %v10_v1 = vld [vmem:[#allocation1] sm:$0x1]  }
   0xa   :  { %v22_v2 = vld [vmem:[#allocation1] sm:$0x1]   ;;  %11 = vrot.lane.b32.xlu0 %v10_v1, %s39_s0 }
   0xb   :  { %23 = vrot.lane.b32.xlu1 %v22_v2, %s40_s8  ;;  %v7_v3 = vld [vmem:[#allocation1] sm:$0x1]  }
   0xc   :  { %v16_v4 = vld [vmem:[#allocation1] sm:$0x1]   ;;  %9 = vst.msk [vmem:[#allocation0] sm:$0x1] %vm8_vm0, %v7_v3  }
   0xe   :  { %17 = vrot.lane.b32.xlu0 %v16_v4, %s41_s9 }
  0x7c   :  { %v12_v5 = vpop.permute.xlu0 %11  }
  0x7d   :  { %v24_v6 = vpop.permute.xlu1 %23   ;;  %15 = vst.msk [vmem:[#allocation0 + $0x1] sm:$0x1] %vm8_vm0, %v12_v5  }
  0x7e   :  { %27 = vst.msk [vmem:[#allocation0 + $0x3] sm:$0x1] %vm8_vm0, %v24_v6  }
  0x80   :  { %v18_v7 = vpop.permute.xlu0 %17  }
  0x81   :  { %21 = vst.msk [vmem:[#allocation0 + $0x2] sm:$0x1] %vm8_vm0, %v18_v7  }
  0x88   :  { %v32_v8 = vld [vmem:[#allocation0] sm:$0xf] }
  0x89   :  { %35 = vst [vmem:[%s59_s1] sm:$0xf] %v32_v8 }

// kernel: tile.58
= control target key start
LH: loop header
LB: loop body
LE: loop exit
PB: predicated region body
PF: predicated region fallthrough
CT: control target
= control target key end

     0   :  { %s22_s0 = inlined_call_operand.vmem [shape: f32[8], index: 0, kind: input, shape index: {}]   ;;  %s23_s1 = inlined_call_operand.vmem [shape: f32[4,8], index: 1, kind: output, shape index: {}]  }
   0x1   :  { %v4_v0 = vld [vmem:[%s22_s0] ss:$0 sm:$0xff] }
   0x2   :  { %5 = vst [vmem:[%s23_s1] sm:$0xf] %v4_v0 }

// kernel: tile.59
= control target key start
LH: loop header
LB: loop body
LE: loop exit
PB: predicated region body
PF: predicated region fallthrough
CT: control target
= control target key end

     0   :  { %vm8_vm0 = vcmask 64512   ;;  %s40_s8 = smov 8   ;;  %s41_s9 = smov 16   ;;  %vm14_vm1 = vcmask 261312   ;;  %vm20_vm2 = vcmask 195712   ;;  %vm26_vm3 = vcmask 130112   ;;  %s58_s0 = inlined_call_operand.vmem [shape: f32[4,8], index: 0, kind: input, shape index: {}]   ;;  %s59_s1 = inlined_call_operand.vmem [shape: f32[32], index: 1, kind: output, shape index: {}]  }
   0x1   :  { %v5_v0 = vld [vmem:[%s58_s0] sm:$0xf]  ;;  %s39_s0 = smov 24  }
   0x2   :  { %6 = vst [vmem:[#allocation1] sm:$0xf] %v5_v0 }
   0x9   :  { %v11_v1 = vld [vmem:[#allocation1 + $0x3] sm:$0x1]   ;;  %v23_v2 = vld [vmem:[#allocation1 + $0x1] sm:$0x1]   ;;  %v7_v3 = vld [vmem:[#allocation1] sm:$0x1]  }
   0xa   :  { %12 = vrot.lane.b32.xlu0 %v11_v1, %s39_s0  ;;  %24 = vrot.lane.b32.xlu1 %v23_v2, %s40_s8  ;;  %v17_v4 = vld [vmem:[#allocation1 + $0x2] sm:$0x1]   ;;  %9 = vst.msk [vmem:[#allocation0] sm:$0x1] %vm8_vm0, %v7_v3  }
   0xe   :  { %18 = vrot.lane.b32.xlu0 %v17_v4, %s41_s9 }
  0x7c   :  { %v13_v5 = vpop.permute.xlu0 %12   ;;  %v25_v6 = vpop.permute.xlu1 %24  }
  0x7d   :  { %15 = vst.msk [vmem:[#allocation0] sm:$0x1] %vm14_vm1, %v13_v5  }
  0x80   :  { %v19_v7 = vpop.permute.xlu0 %18  }
  0x81   :  { %21 = vst.msk [vmem:[#allocation0] sm:$0x1] %vm20_vm2, %v19_v7  }
  0x82   :  { %27 = vst.msk [vmem:[#allocation0] sm:$0x1] %vm26_vm3, %v25_v6  }
  0x89   :  { %v32_v8 = vld [vmem:[#allocation0] sm:$0x1] }
  0x8a   :  { %35 = vst [vmem:[%s59_s1] sm:$0x1] %v32_v8 }

// kernel: generator_forward.15
= control target key start
LH: loop header
LB: loop body
LE: loop exit
PB: predicated region body
PF: predicated region fallthrough
CT: control target
= control target key end

     0   :  { %v1330_v0 = vmov 0   ;;  %vm438_vm0 = vcmask 130048   ;;  %vm1090_vm1 = vcmask 1040384   ;;  %s2121_s1 = inlined_call_operand.vmem [shape: bf16[144,128], index: 1, kind: input, shape index: {}]   ;;  %s2122_s0 = inlined_call_operand.vmem [shape: bf16[512,144], index: 0, kind: input, shape index: {}]   ;;  %s2123_s2 = inlined_call_operand.vmem [shape: f32[512,128], index: 2, kind: output, shape index: {0}]   ;;  %s2124_s3 = inlined_call_operand.vmem [shape: f32[1,2,128], index: 3, kind: output, shape index: {1}]  }
   0x1   :  { %535 = vmatprep.subr.bf16.mxu0 %v1330_v0  ;;  %v1225_v1 = vld [vmem:[%s2121_s1 + $0x38] sm:$0xff]   ;;  %1206 = vmatprep.subr.bf16.mxu1 %v1330_v0  ;;  %v1226_v2 = vld [vmem:[%s2121_s1 + $0x30] sm:$0xff]   ;;  %v1227_v3 = vld [vmem:[%s2121_s1 + $0x28] sm:$0xff]  }
   0x2   :  { %536 = vmatpush1.bf16.msra.mxu0 %v1225_v1  ;;  %1215 = vmatpush1.bf16.msra.mxu1 %v1225_v1  ;;  %v1228_v4 = vld [vmem:[%s2121_s1 + $0x20] sm:$0xff]   ;;  %v1229_v6 = vld [vmem:[%s2121_s1 + $0x18] sm:$0xff]   ;;  %v1230_v7 = vld [vmem:[%s2121_s1 + $0x10] sm:$0xff]  }
   0x3   :  { %537 = vmatprep.subr.bf16.mxu0 %v1330_v0  ;;  %1207 = vmatprep.subr.bf16.mxu1 %v1330_v0  ;;  %v1236_v5 = vld [vmem:[%s2122_s0 + $0x4] ss:$8 sps:$4 sm:$0xff]   ;;  %v1234_v12 = vld [vmem:[%s2122_s0] ss:$8 sps:$4 sm:$0xff]   ;;  %v1237_v13 = vld [vmem:[%s2122_s0 + $0x14] ss:$8 sps:$4 sm:$0xff]  }
   0x4   :  { %1174 = vmatprep.mubr.msk.bf16.mxu0 %vm438_vm0, %v1236_v5  ;;  %v1260_v8 = vld [vmem:[%s2122_s0 + $0x104] ss:$8 sps:$4 sm:$0xff]   ;;  %v1258_v14 = vld [vmem:[%s2122_s0 + $0x100] ss:$8 sps:$4 sm:$0xff]   ;;  %v1264_v15 = vld [vmem:[%s2122_s0 + $0x114] ss:$8 sps:$4 sm:$0xff]  }
   0x5   :  { %v1231_v9 = vld [vmem:[%s2121_s1 + $0x8] sm:$0xff]   ;;  %1190 = vmatprep.mubr.msk.bf16.mxu1 %vm438_vm0, %v1260_v8  ;;  %v1232_v10 = vld [vmem:[%s2121_s1] sm:$0xff]   ;;  %v1239_v16 = vld [vmem:[%s2122_s0 + $0x10] ss:$8 sps:$4 sm:$0xff]  }
   0x6   :  { %538 = vmatpush1.bf16.msra.mxu0 %v1226_v2  ;;  %1216 = vmatpush1.bf16.msra.mxu1 %v1226_v2  ;;  %v1233_v11 = vld [vmem:[%s2121_s1 + $0x40] sm:$0xff]   ;;  %v1266_v18 = vld [vmem:[%s2122_s0 + $0x110] ss:$8 sps:$4 sm:$0xff]   ;;  %v1243_v21 = vld [vmem:[%s2122_s0 + $0x34] ss:$8 sps:$4 sm:$0xff]  }
   0x7   :  { %539 = vmatprep.subr.bf16.mxu0 %v1330_v0  ;;  %1208 = vmatprep.subr.bf16.mxu1 %v1330_v0  ;;  %v1240_v17 = vld [vmem:[%s2122_s0 + $0x24] ss:$8 sps:$4 sm:$0xff]   ;;  %v1242_v20 = vld [vmem:[%s2122_s0 + $0x20] ss:$8 sps:$4 sm:$0xff]   ;;  %v1276_v23 = vld [vmem:[%s2122_s0 + $0x134] ss:$8 sps:$4 sm:$0xff]  }
   0x8   :  { %v1270_v19 = vld [vmem:[%s2122_s0 + $0x124] ss:$8 sps:$4 sm:$0xff]   ;;  %v1272_v22 = vld [vmem:[%s2122_s0 + $0x120] ss:$8 sps:$4 sm:$0xff]   ;;  %v1245_v24 = vld [vmem:[%s2122_s0 + $0x30] ss:$8 sps:$4 sm:$0xff]  }
   0x9   :  { %v1278_v25 = vld [vmem:[%s2122_s0 + $0x130] ss:$8 sps:$4 sm:$0xff]   ;;  %v1246_v26 = vld [vmem:[%s2122_s0 + $0x44] ss:$8 sps:$4 sm:$0xff]   ;;  %v1248_v28 = vld [vmem:[%s2122_s0 + $0x40] ss:$8 sps:$4 sm:$0xff]  }
   0xa   :  { %540 = vmatpush1.bf16.msra.mxu0 %v1227_v3  ;;  %1217 = vmatpush1.bf16.msra.mxu1 %v1227_v3  ;;  %v1282_v27 = vld [vmem:[%s2122_s0 + $0x144] ss:$8 sps:$4 sm:$0xff]   ;;  %v1284_v29 = vld [vmem:[%s2122_s0 + $0x140] ss:$8 sps:$4 sm:$0xff]   ;;  %v1249_v30 = vld [vmem:[%s2122_s0 + $0x54] ss:$8 sps:$4 sm:$0xff]  }
   0xb   :  { %541 = vmatprep.subr.bf16.mxu0 %v1330_v0  ;;  %1209 = vmatprep.subr.bf16.mxu1 %v1330_v0  ;;  %v1288_v31 = vld [vmem:[%s2122_s0 + $0x154] ss:$8 sps:$4 sm:$0xff]   ;;  %v1251_v32 = vld [vmem:[%s2122_s0 + $0x50] ss:$8 sps:$4 sm:$0xff]   ;;  %v1252_v34 = vld [vmem:[%s2122_s0 + $0x64] ss:$8 sps:$4 sm:$0xff]  }
   0xc   :  { %v1290_v33 = vld [vmem:[%s2122_s0 + $0x150] ss:$8 sps:$4 sm:$0xff]   ;;  %v1294_v35 = vld [vmem:[%s2122_s0 + $0x164] ss:$8 sps:$4 sm:$0xff]   ;;  %v1254_v36 = vld [vmem:[%s2122_s0 + $0x60] ss:$8 sps:$4 sm:$0xff]  }
   0xd   :  { %v1296_v37 = vld [vmem:[%s2122_s0 + $0x160] ss:$8 sps:$4 sm:$0xff]   ;;  %v1255_v38 = vld [vmem:[%s2122_s0 + $0x74] ss:$8 sps:$4 sm:$0xff]   ;;  %v1257_v40 = vld [vmem:[%s2122_s0 + $0x70] ss:$8 sps:$4 sm:$0xff]  }
   0xe   :  { %542 = vmatpush1.bf16.msra.mxu0 %v1228_v4  ;;  %1218 = vmatpush1.bf16.msra.mxu1 %v1228_v4  ;;  %v1300_v39 = vld [vmem:[%s2122_s0 + $0x174] ss:$8 sps:$4 sm:$0xff]   ;;  %v1302_v41 = vld [vmem:[%s2122_s0 + $0x170] ss:$8 sps:$4 sm:$0xff]   ;;  %v1261_v42 = vld [vmem:[%s2122_s0 + $0x84] ss:$8 sps:$4 sm:$0xff]  }
   0xf   :  { %543 = vmatprep.subr.bf16.mxu0 %v1330_v0  ;;  %1210 = vmatprep.subr.bf16.mxu1 %v1330_v0  ;;  %v1306_v43 = vld [vmem:[%s2122_s0 + $0x184] ss:$8 sps:$4 sm:$0xff]   ;;  %v1263_v44 = vld [vmem:[%s2122_s0 + $0x80] ss:$8 sps:$4 sm:$0xff]   ;;  %v1267_v46 = vld [vmem:[%s2122_s0 + $0x94] ss:$8 sps:$4 sm:$0xff]  }
  0x10   :  { %v1308_v45 = vld [vmem:[%s2122_s0 + $0x180] ss:$8 sps:$4 sm:$0xff]   ;;  %v1309_v47 = vld [vmem:[%s2122_s0 + $0x194] ss:$8 sps:$4 sm:$0xff]   ;;  %v1269_v48 = vld [vmem:[%s2122_s0 + $0x90] ss:$8 sps:$4 sm:$0xff]  }
  0x11   :  { %v1311_v49 = vld [vmem:[%s2122_s0 + $0x190] ss:$8 sps:$4 sm:$0xff]   ;;  %v1273_v50 = vld [vmem:[%s2122_s0 + $0xa4] ss:$8 sps:$4 sm:$0xff]   ;;  %v1275_v52 = vld [vmem:[%s2122_s0 + $0xa0] ss:$8 sps:$4 sm:$0xff]  }
  0x12   :  { %544 = vmatpush1.bf16.msra.mxu0 %v1229_v6  ;;  %1219 = vmatpush1.bf16.msra.mxu1 %v1229_v6  ;;  %v1312_v51 = vld [vmem:[%s2122_s0 + $0x1a4] ss:$8 sps:$4 sm:$0xff]   ;;  %v1314_v53 = vld [vmem:[%s2122_s0 + $0x1a0] ss:$8 sps:$4 sm:$0xff]   ;;  %v1279_v54 = vld [vmem:[%s2122_s0 + $0xb4] ss:$8 sps:$4 sm:$0xff]  }
  0x13   :  { %545 = vmatprep.subr.bf16.mxu0 %v1330_v0  ;;  %1211 = vmatprep.subr.bf16.mxu1 %v1330_v0  ;;  %v1315_v55 = vld [vmem:[%s2122_s0 + $0x1b4] ss:$8 sps:$4 sm:$0xff]   ;;  %v1281_v56 = vld [vmem:[%s2122_s0 + $0xb0] ss:$8 sps:$4 sm:$0xff]   ;;  %v1285_v58 = vld [vmem:[%s2122_s0 + $0xc4] ss:$8 sps:$4 sm:$0xff]  }
  0x14   :  { %v1317_v57 = vld [vmem:[%s2122_s0 + $0x1b0] ss:$8 sps:$4 sm:$0xff]   ;;  %v1318_v59 = vld [vmem:[%s2122_s0 + $0x1c4] ss:$8 sps:$4 sm:$0xff]   ;;  %v1287_v60 = vld [vmem:[%s2122_s0 + $0xc0] ss:$8 sps:$4 sm:$0xff]  }
  0x15   :  { %v1320_v61 = vld [vmem:[%s2122_s0 + $0x1c0] ss:$8 sps:$4 sm:$0xff]   ;;  %v1291_v62 = vld [vmem:[%s2122_s0 + $0xd4] ss:$8 sps:$4 sm:$0xff]   ;;  %v1323_v1 = vld [vmem:[%s2122_s0 + $0x1d0] ss:$8 sps:$4 sm:$0xff]  }
  0x16   :  { %546 = vmatpush1.bf16.msra.mxu0 %v1230_v7  ;;  %1220 = vmatpush1.bf16.msra.mxu1 %v1230_v7  ;;  %v1321_v63 = vld [vmem:[%s2122_s0 + $0x1d4] ss:$8 sps:$4 sm:$0xff]   ;;  %v1297_v2 = vld [vmem:[%s2122_s0 + $0xe4] ss:$8 sps:$4 sm:$0xff]   ;;  %v1299_v4 = vld [vmem:[%s2122_s0 + $0xe0] ss:$8 sps:$4 sm:$0xff]  }
  0x17   :  { %547 = vmatprep.subr.bf16.mxu0 %v1330_v0  ;;  %1212 = vmatprep.subr.bf16.mxu1 %v1330_v0  ;;  %v1324_v3 = vld [vmem:[%s2122_s0 + $0x1e4] ss:$8 sps:$4 sm:$0xff]   ;;  %v1326_v5 = vld [vmem:[%s2122_s0 + $0x1e0] ss:$8 sps:$4 sm:$0xff]   ;;  %v1303_v6 = vld [vmem:[%s2122_s0 + $0xf4] ss:$8 sps:$4 sm:$0xff]  }
  0x18   :  { %v1327_v7 = vld [vmem:[%s2122_s0 + $0x1f4] ss:$8 sps:$4 sm:$0xff]   ;;  %v1305_v8 = vld [vmem:[%s2122_s0 + $0xf0] ss:$8 sps:$4 sm:$0xff]  }
  0x1a   :  { %548 = vmatpush1.bf16.msra.mxu0 %v1231_v9  ;;  %1221 = vmatpush1.bf16.msra.mxu1 %v1231_v9  ;;  %v1329_v9 = vld [vmem:[%s2122_s0 + $0x1f0] ss:$8 sps:$4 sm:$0xff]  }
  0x1b   :  { %549 = vmatprep.subr.bf16.mxu0 %v1330_v0  ;;  %1213 = vmatprep.subr.bf16.mxu1 %v1330_v0 }
  0x1e   :  { %550 = vmatpush1.bf16.msra.mxu0 %v1232_v10  ;;  %1222 = vmatpush1.bf16.msra.mxu1 %v1232_v10 }
  0x1f   :  { %565 = vmatprep.subr.bf16.mxu0 %v1330_v0  ;;  %1214 = vmatprep.subr.bf16.mxu1 %v1330_v0  ;;  %v1293_v0 = vld [vmem:[%s2122_s0 + $0xd0] ss:$8 sps:$4 sm:$0xff]  }
  0x22   :  { %566 = vmatpush2.bf16.msra.mxu0 %v1233_v11  ;;  %1223 = vmatpush2.bf16.msra.mxu1 %v1233_v11 }
  0x25   :  { %568 = vmatmul.mubr.bf16.vlgmr.msra.gmra.mxu0 %v1234_v12  ;;  %696 = vmatmul.mubr.bf16.vlgmr.msra.gmra.mxu1 %v1258_v14 }
  0x26   :  { %1175 = vmatprep.mubr.msk.bf16.mxu0 %vm438_vm0, %v1237_v13  ;;  %1191 = vmatprep.mubr.msk.bf16.mxu1 %vm438_vm0, %v1264_v15 }
  0x2d   :  { %576 = vmatmul.mubr.bf16.gmra.mxu0 %v1239_v16  ;;  %704 = vmatmul.mubr.bf16.gmra.mxu1 %v1266_v18 }
  0x2e   :  { %1176 = vmatprep.mubr.msk.bf16.mxu0 %vm438_vm0, %v1240_v17  ;;  %1192 = vmatprep.mubr.msk.bf16.mxu1 %vm438_vm0, %v1270_v19 }
  0x35   :  { %584 = vmatmul.mubr.bf16.gmra.mxu0 %v1242_v20  ;;  %712 = vmatmul.mubr.bf16.gmra.mxu1 %v1272_v22 }
  0x36   :  { %1177 = vmatprep.mubr.msk.bf16.mxu0 %vm438_vm0, %v1243_v21  ;;  %1193 = vmatprep.mubr.msk.bf16.mxu1 %vm438_vm0, %v1276_v23 }
  0x3d   :  { %592 = vmatmul.mubr.bf16.gmra.mxu0 %v1245_v24  ;;  %720 = vmatmul.mubr.bf16.gmra.mxu1 %v1278_v25 }
  0x3e   :  { %1178 = vmatprep.mubr.msk.bf16.mxu0 %vm438_vm0, %v1246_v26  ;;  %1194 = vmatprep.mubr.msk.bf16.mxu1 %vm438_vm0, %v1282_v27 }
  0x45   :  { %600 = vmatmul.mubr.bf16.gmra.mxu0 %v1248_v28  ;;  %728 = vmatmul.mubr.bf16.gmra.mxu1 %v1284_v29 }
  0x46   :  { %1179 = vmatprep.mubr.msk.bf16.mxu0 %vm438_vm0, %v1249_v30  ;;  %1195 = vmatprep.mubr.msk.bf16.mxu1 %vm438_vm0, %v1288_v31 }
  0x4d   :  { %608 = vmatmul.mubr.bf16.gmra.mxu0 %v1251_v32  ;;  %736 = vmatmul.mubr.bf16.gmra.mxu1 %v1290_v33 }
  0x4e   :  { %1180 = vmatprep.mubr.msk.bf16.mxu0 %vm438_vm0, %v1252_v34  ;;  %1196 = vmatprep.mubr.msk.bf16.mxu1 %vm438_vm0, %v1294_v35 }
  0x55   :  { %616 = vmatmul.mubr.bf16.gmra.mxu0 %v1254_v36  ;;  %744 = vmatmul.mubr.bf16.gmra.mxu1 %v1296_v37 }
  0x56   :  { %1181 = vmatprep.mubr.msk.bf16.mxu0 %vm438_vm0, %v1255_v38  ;;  %1197 = vmatprep.mubr.msk.bf16.mxu1 %vm438_vm0, %v1300_v39 }
  0x5d   :  { %624 = vmatmul.mubr.bf16.gmra.mxu0 %v1257_v40  ;;  %752 = vmatmul.mubr.bf16.gmra.mxu1 %v1302_v41 }
  0x5e   :  { %1182 = vmatprep.mubr.msk.bf16.mxu0 %vm438_vm0, %v1261_v42  ;;  %1198 = vmatprep.mubr.msk.bf16.mxu1 %vm438_vm0, %v1306_v43 }
  0x65   :  { %632 = vmatmul.mubr.bf16.gmra.mxu0 %v1263_v44  ;;  %760 = vmatmul.mubr.bf16.gmra.mxu1 %v1308_v45 }
  0x66   :  { %1183 = vmatprep.mubr.msk.bf16.mxu0 %vm438_vm0, %v1267_v46  ;;  %1199 = vmatprep.mubr.msk.bf16.mxu1 %vm438_vm0, %v1309_v47 }
  0x6d   :  { %640 = vmatmul.mubr.bf16.gmra.mxu0 %v1269_v48  ;;  %768 = vmatmul.mubr.bf16.gmra.mxu1 %v1311_v49 }
  0x6e   :  { %1184 = vmatprep.mubr.msk.bf16.mxu0 %vm438_vm0, %v1273_v50  ;;  %1200 = vmatprep.mubr.msk.bf16.mxu1 %vm438_vm0, %v1312_v51 }
  0x75   :  { %648 = vmatmul.mubr.bf16.gmra.mxu0 %v1275_v52  ;;  %776 = vmatmul.mubr.bf16.gmra.mxu1 %v1314_v53 }
  0x76   :  { %1185 = vmatprep.mubr.msk.bf16.mxu0 %vm438_vm0, %v1279_v54  ;;  %1201 = vmatprep.mubr.msk.bf16.mxu1 %vm438_vm0, %v1315_v55 }
  0x7d   :  { %656 = vmatmul.mubr.bf16.gmra.mxu0 %v1281_v56  ;;  %784 = vmatmul.mubr.bf16.gmra.mxu1 %v1317_v57 }
  0x7e   :  { %1186 = vmatprep.mubr.msk.bf16.mxu0 %vm438_vm0, %v1285_v58  ;;  %1202 = vmatprep.mubr.msk.bf16.mxu1 %vm438_vm0, %v1318_v59 }
  0x85   :  { %664 = vmatmul.mubr.bf16.gmra.mxu0 %v1287_v60  ;;  %792 = vmatmul.mubr.bf16.gmra.mxu1 %v1320_v61 }
  0x86   :  { %1187 = vmatprep.mubr.msk.bf16.mxu0 %vm438_vm0, %v1291_v62  ;;  %1203 = vmatprep.mubr.msk.bf16.mxu1 %vm438_vm0, %v1321_v63 }
  0x8d   :  { %672 = vmatmul.mubr.bf16.gmra.mxu0 %v1293_v0  ;;  %800 = vmatmul.mubr.bf16.gmra.mxu1 %v1323_v1 }
  0x8e   :  { %1188 = vmatprep.mubr.msk.bf16.mxu0 %vm438_vm0, %v1297_v2  ;;  %1204 = vmatprep.mubr.msk.bf16.mxu1 %vm438_vm0, %v1324_v3 }
  0x95   :  { %680 = vmatmul.mubr.bf16.gmra.mxu0 %v1299_v4  ;;  %808 = vmatmul.mubr.bf16.gmra.mxu1 %v1326_v5 }
  0x96   :  { %1189 = vmatprep.mubr.msk.bf16.mxu0 %vm438_vm0, %v1303_v6  ;;  %1205 = vmatprep.mubr.msk.bf16.mxu1 %vm438_vm0, %v1327_v7 }
  0x9d   :  { %688 = vmatmul.mubr.bf16.gmra.mxu0 %v1305_v8  ;;  %816 = vmatmul.mubr.bf16.gmra.mxu1 %v1329_v9 }
  0xe5   :  { %v1602_v10 = vpop.f32.mrf.mxu0  ;;  %v1604_v11 = vpop.f32.mrf.mxu1 }
  0xe6   :  { %824 = vst [vmem:[%s2123_s2] sm:$0xff] %v1602_v10  ;;  %856 = vst [vmem:[%s2123_s2 + $0x100] sm:$0xff] %v1604_v11 }
  0xe7   :  { %v571_v12 = vpop.f32.mrf.mxu0  ;;  %v699_v13 = vpop.f32.mrf.mxu1 }
  0xe9   :  { %v1614_v14 = vpop.f32.mrf.mxu0  ;;  %v1616_v15 = vpop.f32.mrf.mxu1 }
  0xea   :  { %825 = vst [vmem:[%s2123_s2 + $0x8] sm:$0xff] %v1614_v14  ;;  %857 = vst [vmem:[%s2123_s2 + $0x108] sm:$0xff] %v1616_v15  ;;  %v958_v12 = vmul.f32 %v1614_v14, %v1614_v14 }
  0xeb   :  { %v574_v16 = vpop.f32.mrf.mxu0  ;;  %v702_v17 = vpop.f32.mrf.mxu1 }
  0xec   :  { %v957_v17 = vmul.f32 %v1602_v10, %v1602_v10 }
  0xed   :  { %v1626_v18 = vpop.f32.mrf.mxu0  ;;  %v1628_v19 = vpop.f32.mrf.mxu1 }
  0xee   :  { %826 = vst [vmem:[%s2123_s2 + $0x10] sm:$0xff] %v1626_v18  ;;  %858 = vst [vmem:[%s2123_s2 + $0x110] sm:$0xff] %v1628_v19 }
  0xef   :  { %v579_v20 = vpop.f32.mrf.mxu0  ;;  %v707_v21 = vpop.f32.mrf.mxu1 }
  0xf0   :  { %v888_v20 = vadd.f32 %v1614_v14, %v1602_v10  ;;  %v959_v21 = vmul.f32 %v1626_v18, %v1626_v18 }
  0xf1   :  { %v1638_v22 = vpop.f32.mrf.mxu0  ;;  %v1640_v23 = vpop.f32.mrf.mxu1 }
  0xf2   :  { %827 = vst [vmem:[%s2123_s2 + $0x18] sm:$0xff] %v1638_v22  ;;  %859 = vst [vmem:[%s2123_s2 + $0x118] sm:$0xff] %v1640_v23  ;;  %v960_v10 = vmul.f32 %v1638_v22, %v1638_v22 }
  0xf3   :  { %v582_v24 = vpop.f32.mrf.mxu0  ;;  %v710_v25 = vpop.f32.mrf.mxu1 }
  0xf5   :  { %v1650_v26 = vpop.f32.mrf.mxu0  ;;  %v1652_v27 = vpop.f32.mrf.mxu1 }
  0xf6   :  { %828 = vst [vmem:[%s2123_s2 + $0x20] sm:$0xff] %v1650_v26  ;;  %860 = vst [vmem:[%s2123_s2 + $0x120] sm:$0xff] %v1652_v27 }
  0xf7   :  { %v587_v28 = vpop.f32.mrf.mxu0  ;;  %v715_v29 = vpop.f32.mrf.mxu1 }
  0xf8   :  { %v1021_v28 = vadd.f32 %v958_v12, %v957_v17  ;;  %v889_v29 = vadd.f32 %v888_v20, %v1626_v18 }
  0xf9   :  { %v1662_v30 = vpop.f32.mrf.mxu0  ;;  %v1664_v31 = vpop.f32.mrf.mxu1 }
  0xfa   :  { %829 = vst [vmem:[%s2123_s2 + $0x28] sm:$0xff] %v1662_v30  ;;  %861 = vst [vmem:[%s2123_s2 + $0x128] sm:$0xff] %v1664_v31 }
  0xfb   :  { %v590_v32 = vpop.f32.mrf.mxu0  ;;  %v718_v33 = vpop.f32.mrf.mxu1 }
  0xfc   :  { %v1022_v33 = vadd.f32 %v1021_v28, %v959_v21 }
  0xfd   :  { %v1674_v34 = vpop.f32.mrf.mxu0  ;;  %v1676_v35 = vpop.f32.mrf.mxu1 }
  0xfe   :  { %830 = vst [vmem:[%s2123_s2 + $0x30] sm:$0xff] %v1674_v34  ;;  %862 = vst [vmem:[%s2123_s2 + $0x130] sm:$0xff] %v1676_v35 }
  0xff   :  { %v595_v36 = vpop.f32.mrf.mxu0  ;;  %v723_v37 = vpop.f32.mrf.mxu1 }
 0x100   :  { %v890_v36 = vadd.f32 %v889_v29, %v1638_v22  ;;  %v961_v37 = vmul.f32 %v1650_v26, %v1650_v26  ;;  %v962_v22 = vmul.f32 %v1662_v30, %v1662_v30 }
 0x101   :  { %v1686_v38 = vpop.f32.mrf.mxu0  ;;  %v1688_v39 = vpop.f32.mrf.mxu1 }
 0x102   :  { %831 = vst [vmem:[%s2123_s2 + $0x38] sm:$0xff] %v1686_v38  ;;  %863 = vst [vmem:[%s2123_s2 + $0x138] sm:$0xff] %v1688_v39 }
 0x103   :  { %v598_v40 = vpop.f32.mrf.mxu0  ;;  %v726_v41 = vpop.f32.mrf.mxu1 }
 0x104   :  { %v1023_v41 = vadd.f32 %v1022_v33, %v960_v10 }
 0x105   :  { %v1698_v42 = vpop.f32.mrf.mxu0  ;;  %v1700_v43 = vpop.f32.mrf.mxu1 }
 0x106   :  { %832 = vst [vmem:[%s2123_s2 + $0x40] sm:$0xff] %v1698_v42  ;;  %864 = vst [vmem:[%s2123_s2 + $0x140] sm:$0xff] %v1700_v43 }
 0x107   :  { %v603_v44 = vpop.f32.mrf.mxu0  ;;  %v731_v45 = vpop.f32.mrf.mxu1 }
 0x108   :  { %v891_v44 = vadd.f32 %v890_v36, %v1650_v26 }
 0x109   :  { %v1710_v46 = vpop.f32.mrf.mxu0  ;;  %v1712_v47 = vpop.f32.mrf.mxu1 }
 0x10a   :  { %833 = vst [vmem:[%s2123_s2 + $0x48] sm:$0xff] %v1710_v46  ;;  %865 = vst [vmem:[%s2123_s2 + $0x148] sm:$0xff] %v1712_v47 }
 0x10b   :  { %v606_v48 = vpop.f32.mrf.mxu0  ;;  %v734_v49 = vpop.f32.mrf.mxu1 }
 0x10c   :  { %v1024_v49 = vadd.f32 %v1023_v41, %v961_v37 }
 0x10d   :  { %v1722_v50 = vpop.f32.mrf.mxu0  ;;  %v1724_v51 = vpop.f32.mrf.mxu1 }
 0x10e   :  { %834 = vst [vmem:[%s2123_s2 + $0x50] sm:$0xff] %v1722_v50  ;;  %866 = vst [vmem:[%s2123_s2 + $0x150] sm:$0xff] %v1724_v51 }
 0x10f   :  { %v611_v52 = vpop.f32.mrf.mxu0  ;;  %v739_v53 = vpop.f32.mrf.mxu1 }
 0x110   :  { %v892_v52 = vadd.f32 %v891_v44, %v1662_v30  ;;  %v963_v53 = vmul.f32 %v1674_v34, %v1674_v34  ;;  %v964_v30 = vmul.f32 %v1686_v38, %v1686_v38 }
 0x111   :  { %v1734_v54 = vpop.f32.mrf.mxu0  ;;  %v1736_v55 = vpop.f32.mrf.mxu1 }
 0x112   :  { %835 = vst [vmem:[%s2123_s2 + $0x58] sm:$0xff] %v1734_v54  ;;  %867 = vst [vmem:[%s2123_s2 + $0x158] sm:$0xff] %v1736_v55 }
 0x113   :  { %v614_v56 = vpop.f32.mrf.mxu0  ;;  %v742_v57 = vpop.f32.mrf.mxu1 }
 0x114   :  { %v1025_v57 = vadd.f32 %v1024_v49, %v962_v22 }
 0x115   :  { %v1746_v58 = vpop.f32.mrf.mxu0  ;;  %v1748_v59 = vpop.f32.mrf.mxu1 }
 0x116   :  { %836 = vst [vmem:[%s2123_s2 + $0x60] sm:$0xff] %v1746_v58  ;;  %868 = vst [vmem:[%s2123_s2 + $0x160] sm:$0xff] %v1748_v59 }
 0x117   :  { %v619_v60 = vpop.f32.mrf.mxu0  ;;  %v747_v61 = vpop.f32.mrf.mxu1 }
 0x118   :  { %v893_v60 = vadd.f32 %v892_v52, %v1674_v34 }
 0x119   :  { %v1758_v62 = vpop.f32.mrf.mxu0  ;;  %v1760_v63 = vpop.f32.mrf.mxu1 }
 0x11a   :  { %837 = vst [vmem:[%s2123_s2 + $0x68] sm:$0xff] %v1758_v62  ;;  %869 = vst [vmem:[%s2123_s2 + $0x168] sm:$0xff] %v1760_v63 }
 0x11b   :  { %v622_v0 = vpop.f32.mrf.mxu0  ;;  %v750_v1 = vpop.f32.mrf.mxu1 }
 0x11c   :  { %v1026_v1 = vadd.f32 %v1025_v57, %v963_v53 }
 0x11d   :  { %v1770_v2 = vpop.f32.mrf.mxu0  ;;  %v1772_v3 = vpop.f32.mrf.mxu1 }
 0x11e   :  { %838 = vst [vmem:[%s2123_s2 + $0x70] sm:$0xff] %v1770_v2  ;;  %870 = vst [vmem:[%s2123_s2 + $0x170] sm:$0xff] %v1772_v3 }
 0x11f   :  { %v627_v4 = vpop.f32.mrf.mxu0  ;;  %v755_v5 = vpop.f32.mrf.mxu1 }
 0x120   :  { %v894_v4 = vadd.f32 %v893_v60, %v1686_v38  ;;  %v965_v5 = vmul.f32 %v1698_v42, %v1698_v42  ;;  %v966_v38 = vmul.f32 %v1710_v46, %v1710_v46 }
 0x121   :  { %v1782_v6 = vpop.f32.mrf.mxu0  ;;  %v1784_v7 = vpop.f32.mrf.mxu1 }
 0x122   :  { %839 = vst [vmem:[%s2123_s2 + $0x78] sm:$0xff] %v1782_v6  ;;  %871 = vst [vmem:[%s2123_s2 + $0x178] sm:$0xff] %v1784_v7  ;;  %v895_v12 = vadd.f32 %v894_v4, %v1698_v42 }
 0x123   :  { %v630_v8 = vpop.f32.mrf.mxu0  ;;  %v758_v9 = vpop.f32.mrf.mxu1 }
 0x124   :  { %v1027_v9 = vadd.f32 %v1026_v1, %v964_v30 }
 0x125   :  { %v1796_v13 = vpop.f32.mrf.mxu0  ;;  %v1798_v16 = vpop.f32.mrf.mxu1 }
 0x126   :  { %840 = vst [vmem:[%s2123_s2 + $0x80] sm:$0xff] %v1796_v13  ;;  %872 = vst [vmem:[%s2123_s2 + $0x180] sm:$0xff] %v1798_v16  ;;  %v1028_v21 = vadd.f32 %v1027_v9, %v965_v5 }
 0x127   :  { %v635_v24 = vpop.f32.mrf.mxu0  ;;  %v763_v25 = vpop.f32.mrf.mxu1 }
 0x128   :  { %v896_v24 = vadd.f32 %v895_v12, %v1710_v46  ;;  %v967_v25 = vmul.f32 %v1722_v50, %v1722_v50  ;;  %v1029_v29 = vadd.f32 %v1028_v21, %v966_v38  ;;  %v968_v46 = vmul.f32 %v1734_v54, %v1734_v54 }
 0x129   :  { %v1817_v14 = vpop.f32.mrf.mxu0  ;;  %v1819_v32 = vpop.f32.mrf.mxu1 }
 0x12a   :  { %841 = vst [vmem:[%s2123_s2 + $0x88] sm:$0xff] %v1817_v14  ;;  %873 = vst [vmem:[%s2123_s2 + $0x188] sm:$0xff] %v1819_v32  ;;  %v897_v10 = vadd.f32 %v896_v24, %v1722_v50  ;;  %v1030_v37 = vadd.f32 %v1029_v29, %v967_v25 }
 0x12b   :  { %v638_v18 = vpop.f32.mrf.mxu0  ;;  %v766_v40 = vpop.f32.mrf.mxu1 }
 0x12c   :  { %v898_v18 = vadd.f32 %v897_v10, %v1734_v54  ;;  %v969_v40 = vmul.f32 %v1746_v58, %v1746_v58  ;;  %v1031_v44 = vadd.f32 %v1030_v37, %v968_v46  ;;  %v970_v54 = vmul.f32 %v1758_v62, %v1758_v62 }
 0x12d   :  { %v1835_v45 = vpop.f32.mrf.mxu0  ;;  %v1837_v48 = vpop.f32.mrf.mxu1 }
 0x12e   :  { %842 = vst [vmem:[%s2123_s2 + $0x90] sm:$0xff] %v1835_v45  ;;  %874 = vst [vmem:[%s2123_s2 + $0x190] sm:$0xff] %v1837_v48  ;;  %v899_v22 = vadd.f32 %v898_v18, %v1746_v58  ;;  %v1032_v53 = vadd.f32 %v1031_v44, %v969_v40 }
 0x12f   :  { %v643_v26 = vpop.f32.mrf.mxu0  ;;  %v771_v56 = vpop.f32.mrf.mxu1 }
 0x130   :  { %v900_v26 = vadd.f32 %v899_v22, %v1758_v62  ;;  %v971_v56 = vmul.f32 %v1770_v2, %v1770_v2  ;;  %v1033_v60 = vadd.f32 %v1032_v53, %v970_v54  ;;  %v972_v62 = vmul.f32 %v1782_v6, %v1782_v6 }
 0x131   :  { %v1853_v61 = vpop.f32.mrf.mxu0  ;;  %v1855_v0 = vpop.f32.mrf.mxu1 }
 0x132   :  { %843 = vst [vmem:[%s2123_s2 + $0x98] sm:$0xff] %v1853_v61  ;;  %875 = vst [vmem:[%s2123_s2 + $0x198] sm:$0xff] %v1855_v0  ;;  %v901_v30 = vadd.f32 %v900_v26, %v1770_v2  ;;  %v1034_v5 = vadd.f32 %v1033_v60, %v971_v56 }
 0x133   :  { %v646_v34 = vpop.f32.mrf.mxu0  ;;  %v774_v8 = vpop.f32.mrf.mxu1 }
 0x134   :  { %v902_v34 = vadd.f32 %v901_v30, %v1782_v6  ;;  %v973_v8 = vmul.f32 %v1796_v13, %v1796_v13  ;;  %v1035_v12 = vadd.f32 %v1034_v5, %v972_v62  ;;  %v974_v6 = vmul.f32 %v1817_v14, %v1817_v14 }
 0x135   :  { %v1871_v17 = vpop.f32.mrf.mxu0  ;;  %v1873_v20 = vpop.f32.mrf.mxu1 }
 0x136   :  { %844 = vst [vmem:[%s2123_s2 + $0xa0] sm:$0xff] %v1871_v17  ;;  %876 = vst [vmem:[%s2123_s2 + $0x1a0] sm:$0xff] %v1873_v20  ;;  %v903_v38 = vadd.f32 %v902_v34, %v1796_v13  ;;  %v1036_v25 = vadd.f32 %v1035_v12, %v973_v8 }
 0x137   :  { %v651_v42 = vpop.f32.mrf.mxu0  ;;  %v779_v28 = vpop.f32.mrf.mxu1 }
 0x138   :  { %v904_v42 = vadd.f32 %v903_v38, %v1817_v14  ;;  %v975_v28 = vmul.f32 %v1835_v45, %v1835_v45  ;;  %v1037_v10 = vadd.f32 %v1036_v25, %v974_v6  ;;  %v976_v14 = vmul.f32 %v1853_v61, %v1853_v61 }
 0x139   :  { %v1889_v33 = vpop.f32.mrf.mxu0  ;;  %v1891_v36 = vpop.f32.mrf.mxu1 }
 0x13a   :  { %845 = vst [vmem:[%s2123_s2 + $0xa8] sm:$0xff] %v1889_v33  ;;  %877 = vst [vmem:[%s2123_s2 + $0x1a8] sm:$0xff] %v1891_v36  ;;  %v905_v46 = vadd.f32 %v904_v42, %v1835_v45  ;;  %v1038_v40 = vadd.f32 %v1037_v10, %v975_v28 }
 0x13b   :  { %v654_v50 = vpop.f32.mrf.mxu0  ;;  %v782_v41 = vpop.f32.mrf.mxu1 }
 0x13c   :  { %v906_v50 = vadd.f32 %v905_v46, %v1853_v61  ;;  %v977_v41 = vmul.f32 %v1871_v17, %v1871_v17  ;;  %v1039_v22 = vadd.f32 %v1038_v40, %v976_v14  ;;  %v978_v61 = vmul.f32 %v1889_v33, %v1889_v33 }
 0x13d   :  { %v657_v49 = vpop.f32.mrf.mxu0  ;;  %v1907_v52 = vpop.f32.mrf.mxu1 }
 0x13e   :  { %846 = vst [vmem:[%s2123_s2 + $0xb0] sm:$0xff] %v657_v49  ;;  %878 = vst [vmem:[%s2123_s2 + $0x1b0] sm:$0xff] %v1907_v52  ;;  %v907_v54 = vadd.f32 %v906_v50, %v1871_v17  ;;  %v1040_v56 = vadd.f32 %v1039_v22, %v977_v41 }
 0x13f   :  { %v659_v58 = vpop.f32.mrf.mxu0  ;;  %v787_v57 = vpop.f32.mrf.mxu1 }
 0x140   :  { %v908_v58 = vadd.f32 %v907_v54, %v1889_v33  ;;  %v979_v57 = vmul.f32 %v657_v49, %v657_v49  ;;  %v1041_v30 = vadd.f32 %v1040_v56, %v978_v61 }
 0x141   :  { %v660_v1 = vpop.f32.mrf.mxu0  ;;  %v1922_v4 = vpop.f32.mrf.mxu1 }
 0x142   :  { %847 = vst [vmem:[%s2123_s2 + $0xb8] sm:$0xff] %v660_v1  ;;  %879 = vst [vmem:[%s2123_s2 + $0x1b8] sm:$0xff] %v1922_v4  ;;  %v909_v62 = vadd.f32 %v908_v58, %v657_v49  ;;  %v980_v5 = vmul.f32 %v660_v1, %v660_v1 }
 0x143   :  { %v662_v2 = vpop.f32.mrf.mxu0  ;;  %v790_v9 = vpop.f32.mrf.mxu1 }
 0x144   :  { %v1042_v2 = vadd.f32 %v1041_v30, %v979_v57  ;;  %v910_v33 = vadd.f32 %v909_v62, %v660_v1 }
 0x145   :  { %v665_v21 = vpop.f32.mrf.mxu0  ;;  %v1937_v24 = vpop.f32.mrf.mxu1 }
 0x146   :  { %848 = vst [vmem:[%s2123_s2 + $0xc0] sm:$0xff] %v665_v21  ;;  %880 = vst [vmem:[%s2123_s2 + $0x1c0] sm:$0xff] %v1937_v24  ;;  %v981_v9 = vmul.f32 %v665_v21, %v665_v21  ;;  %v1043_v6 = vadd.f32 %v1042_v2, %v980_v5  ;;  %v911_v49 = vadd.f32 %v910_v33, %v665_v21 }
 0x147   :  { %v667_v13 = vpop.f32.mrf.mxu0  ;;  %v795_v29 = vpop.f32.mrf.mxu1 }
 0x148   :  { %v1044_v13 = vadd.f32 %v1043_v6, %v981_v9 }
 0x149   :  { %v668_v37 = vpop.f32.mrf.mxu0  ;;  %v1952_v18 = vpop.f32.mrf.mxu1 }
 0x14a   :  { %849 = vst [vmem:[%s2123_s2 + $0xc8] sm:$0xff] %v668_v37  ;;  %881 = vst [vmem:[%s2123_s2 + $0x1c8] sm:$0xff] %v1952_v18  ;;  %v982_v25 = vmul.f32 %v668_v37, %v668_v37  ;;  %v912_v1 = vadd.f32 %v911_v49, %v668_v37 }
 0x14b   :  { %v670_v45 = vpop.f32.mrf.mxu0  ;;  %v798_v44 = vpop.f32.mrf.mxu1 }
 0x14c   :  { %v1045_v14 = vadd.f32 %v1044_v13, %v982_v25 }
 0x14d   :  { %v673_v53 = vpop.f32.mrf.mxu0  ;;  %v1967_v26 = vpop.f32.mrf.mxu1 }
 0x14e   :  { %850 = vst [vmem:[%s2123_s2 + $0xd0] sm:$0xff] %v673_v53  ;;  %882 = vst [vmem:[%s2123_s2 + $0x1d0] sm:$0xff] %v1967_v26  ;;  %v983_v29 = vmul.f32 %v673_v53, %v673_v53  ;;  %v913_v21 = vadd.f32 %v912_v1, %v673_v53 }
 0x14f   :  { %v675_v17 = vpop.f32.mrf.mxu0  ;;  %v803_v60 = vpop.f32.mrf.mxu1 }
 0x150   :  { %v1046_v45 = vadd.f32 %v1045_v14, %v983_v29  ;;  %v990_v29 = vmul.f32 %v1616_v15, %v1616_v15  ;;  %v991_v14 = vmul.f32 %v1628_v19, %v1628_v19 }
 0x151   :  { %v676_v34 = vpop.f32.mrf.mxu0  ;;  %v1977_v8 = vpop.f32.mrf.mxu1 }
 0x152   :  { %851 = vst [vmem:[%s2123_s2 + $0xd8] sm:$0xff] %v676_v34  ;;  %883 = vst [vmem:[%s2123_s2 + $0x1d8] sm:$0xff] %v1977_v8  ;;  %v984_v40 = vmul.f32 %v676_v34, %v676_v34  ;;  %v914_v37 = vadd.f32 %v913_v21, %v676_v34 }
 0x153   :  { %v678_v12 = vpop.f32.mrf.mxu0  ;;  %v806_v38 = vpop.f32.mrf.mxu1 }
 0x154   :  { %v1047_v61 = vadd.f32 %v1046_v45, %v984_v40 }
 0x155   :  { %v681_v42 = vpop.f32.mrf.mxu0  ;;  %v1986_v28 = vpop.f32.mrf.mxu1 }
 0x156   :  { %852 = vst [vmem:[%s2123_s2 + $0xe0] sm:$0xff] %v681_v42  ;;  %884 = vst [vmem:[%s2123_s2 + $0x1e0] sm:$0xff] %v1986_v28  ;;  %v985_v44 = vmul.f32 %v681_v42, %v681_v42  ;;  %v915_v53 = vadd.f32 %v914_v37, %v681_v42  ;;  %v989_v42 = vmul.f32 %v1604_v11, %v1604_v11 }
 0x157   :  { %v683_v10 = vpop.f32.mrf.mxu0  ;;  %v811_v46 = vpop.f32.mrf.mxu1 }
 0x158   :  { %v1048_v17 = vadd.f32 %v1047_v61, %v985_v44 }
 0x159   :  { %v684_v50 = vpop.f32.mrf.mxu0  ;;  %v1995_v41 = vpop.f32.mrf.mxu1 }
 0x15a   :  { %853 = vst [vmem:[%s2123_s2 + $0xe8] sm:$0xff] %v684_v50  ;;  %885 = vst [vmem:[%s2123_s2 + $0x1e8] sm:$0xff] %v1995_v41  ;;  %v986_v56 = vmul.f32 %v684_v50, %v684_v50  ;;  %v916_v60 = vadd.f32 %v915_v53, %v684_v50  ;;  %v992_v50 = vmul.f32 %v1640_v23, %v1640_v23 }
 0x15b   :  { %v686_v22 = vpop.f32.mrf.mxu0  ;;  %v814_v54 = vpop.f32.mrf.mxu1 }
 0x15c   :  { %v1049_v34 = vadd.f32 %v1048_v17, %v986_v56 }
 0x15d   :  { %v689_v58 = vpop.f32.mrf.mxu0  ;;  %v2004_v57 = vpop.f32.mrf.mxu1 }
 0x15e   :  { %854 = vst [vmem:[%s2123_s2 + $0xf0] sm:$0xff] %v689_v58  ;;  %v987_v30 = vmul.f32 %v689_v58, %v689_v58  ;;  %886 = vst [vmem:[%s2123_s2 + $0x1f0] sm:$0xff] %v2004_v57  ;;  %v917_v2 = vadd.f32 %v916_v60, %v689_v58 }
 0x15f   :  { %v691_v62 = vpop.f32.mrf.mxu0  ;;  %v819_v5 = vpop.f32.mrf.mxu1 }
 0x160   :  { %v1050_v12 = vadd.f32 %v1049_v34, %v987_v30 }
 0x161   :  { %v692_v33 = vpop.f32.mrf.mxu0  ;;  %v2013_v9 = vpop.f32.mrf.mxu1 }
 0x162   :  { %855 = vst [vmem:[%s2123_s2 + $0xf8] sm:$0xff] %v692_v33  ;;  %v918_v38 = vadd.f32 %v917_v2, %v692_v33  ;;  %v988_v6 = vmul.f32 %v692_v33, %v692_v33  ;;  %887 = vst [vmem:[%s2123_s2 + $0x1f8] sm:$0xff] %v2013_v9 }
 0x163   :  { %v694_v49 = vpop.f32.mrf.mxu0  ;;  %v822_v25 = vpop.f32.mrf.mxu1 }
 0x164   :  { %v919_v13 = vadd.f32 %v918_v38, %v1604_v11  ;;  %v1051_v1 = vadd.f32 %v1050_v12, %v988_v6  ;;  %v993_v11 = vmul.f32 %v1652_v27, %v1652_v27 }
 0x166   :  { %v920_v10 = vadd.f32 %v919_v13, %v1616_v15  ;;  %v1052_v46 = vadd.f32 %v1051_v1, %v989_v42  ;;  %v994_v15 = vmul.f32 %v1664_v31, %v1664_v31 }
 0x168   :  { %v921_v21 = vadd.f32 %v920_v10, %v1628_v19  ;;  %v1053_v40 = vadd.f32 %v1052_v46, %v990_v29  ;;  %v995_v19 = vmul.f32 %v1676_v35, %v1676_v35 }
 0x16a   :  { %v922_v45 = vadd.f32 %v921_v21, %v1640_v23  ;;  %v1054_v37 = vadd.f32 %v1053_v40, %v991_v14  ;;  %v996_v23 = vmul.f32 %v1688_v39, %v1688_v39  ;;  %v1006_v14 = vmul.f32 %v1819_v32, %v1819_v32 }
 0x16c   :  { %v923_v44 = vadd.f32 %v922_v45, %v1652_v27  ;;  %v1055_v22 = vadd.f32 %v1054_v37, %v992_v50  ;;  %v997_v27 = vmul.f32 %v1700_v43, %v1700_v43  ;;  %v1007_v50 = vmul.f32 %v1837_v48, %v1837_v48 }
 0x16d   :  { %v1008_v37 = vmul.f32 %v1855_v0, %v1855_v0 }
 0x16e   :  { %v924_v54 = vadd.f32 %v923_v44, %v1664_v31  ;;  %v1056_v61 = vadd.f32 %v1055_v22, %v993_v11  ;;  %v998_v31 = vmul.f32 %v1712_v47, %v1712_v47  ;;  %v1009_v44 = vmul.f32 %v1873_v20, %v1873_v20 }
 0x170   :  { %v925_v53 = vadd.f32 %v924_v54, %v1676_v35  ;;  %v1057_v56 = vadd.f32 %v1056_v61, %v994_v15  ;;  %v999_v35 = vmul.f32 %v1724_v51, %v1724_v51  ;;  %v1010_v15 = vmul.f32 %v1891_v36, %v1891_v36 }
 0x171   :  { %v1011_v61 = vmul.f32 %v1907_v52, %v1907_v52 }
 0x172   :  { %v926_v58 = vadd.f32 %v925_v53, %v1688_v39  ;;  %v1058_v17 = vadd.f32 %v1057_v56, %v995_v19  ;;  %v1000_v39 = vmul.f32 %v1736_v55, %v1736_v55  ;;  %v1012_v53 = vmul.f32 %v1922_v4, %v1922_v4 }
 0x174   :  { %v1059_v60 = vadd.f32 %v1058_v17, %v996_v23  ;;  %v927_v30 = vadd.f32 %v926_v58, %v1700_v43  ;;  %v1001_v43 = vmul.f32 %v1748_v59, %v1748_v59  ;;  %v1013_v23 = vmul.f32 %v1937_v24, %v1937_v24 }
 0x175   :  { %v1014_v17 = vmul.f32 %v1952_v18, %v1952_v18 }
 0x176   :  { %v928_v62 = vadd.f32 %v927_v30, %v1712_v47  ;;  %v1060_v5 = vadd.f32 %v1059_v60, %v997_v27  ;;  %v1002_v47 = vmul.f32 %v1760_v63, %v1760_v63  ;;  %v1015_v60 = vmul.f32 %v1967_v26, %v1967_v26 }
 0x178   :  { %v929_v34 = vadd.f32 %v928_v62, %v1724_v51  ;;  %v1061_v2 = vadd.f32 %v1060_v5, %v998_v31  ;;  %v1003_v51 = vmul.f32 %v1772_v3, %v1772_v3  ;;  %v1016_v31 = vmul.f32 %v1977_v8, %v1977_v8 }
 0x179   :  { %v1017_v5 = vmul.f32 %v1986_v28, %v1986_v28 }
 0x17a   :  { %v930_v33 = vadd.f32 %v929_v34, %v1736_v55  ;;  %v1062_v12 = vadd.f32 %v1061_v2, %v999_v35  ;;  %v1004_v55 = vmul.f32 %v1784_v7, %v1784_v7  ;;  %v1018_v34 = vmul.f32 %v1995_v41, %v1995_v41 }
 0x17c   :  { %v931_v38 = vadd.f32 %v930_v33, %v1748_v59  ;;  %v1063_v6 = vadd.f32 %v1062_v12, %v1000_v39  ;;  %v1005_v59 = vmul.f32 %v1798_v16, %v1798_v16  ;;  %v1019_v39 = vmul.f32 %v2004_v57, %v2004_v57 }
 0x17d   :  { %v1020_v12 = vmul.f32 %v2013_v9, %v2013_v9 }
 0x17e   :  { %v932_v49 = vadd.f32 %v931_v38, %v1760_v63  ;;  %v1064_v25 = vadd.f32 %v1063_v6, %v1001_v43 }
 0x180   :  { %v933_v42 = vadd.f32 %v932_v49, %v1772_v3  ;;  %v1065_v13 = vadd.f32 %v1064_v25, %v1002_v47 }
 0x182   :  { %v934_v1 = vadd.f32 %v933_v42, %v1784_v7  ;;  %v1066_v29 = vadd.f32 %v1065_v13, %v1003_v51 }
 0x184   :  { %v935_v10 = vadd.f32 %v934_v1, %v1798_v16  ;;  %v1067_v46 = vadd.f32 %v1066_v29, %v1004_v55 }
 0x186   :  { %v936_v63 = vadd.f32 %v935_v10, %v1819_v32  ;;  %v1068_v21 = vadd.f32 %v1067_v46, %v1005_v59 }
 0x188   :  { %v1069_v3 = vadd.f32 %v1068_v21, %v1006_v14  ;;  %v937_v40 = vadd.f32 %v936_v63, %v1837_v48 }
 0x18a   :  { %v1070_v7 = vadd.f32 %v1069_v3, %v1007_v50  ;;  %v938_v45 = vadd.f32 %v937_v40, %v1855_v0 }
 0x18c   :  { %v1071_v16 = vadd.f32 %v1070_v7, %v1008_v37  ;;  %v939_v11 = vadd.f32 %v938_v45, %v1873_v20 }
 0x18e   :  { %v1072_v32 = vadd.f32 %v1071_v16, %v1009_v44  ;;  %v940_v22 = vadd.f32 %v939_v11, %v1891_v36 }
 0x190   :  { %v1073_v54 = vadd.f32 %v1072_v32, %v1010_v15  ;;  %v941_v48 = vadd.f32 %v940_v22, %v1907_v52 }
 0x192   :  { %v1074_v19 = vadd.f32 %v1073_v54, %v1011_v61  ;;  %v942_v0 = vadd.f32 %v941_v48, %v1922_v4 }
 0x194   :  { %v1075_v56 = vadd.f32 %v1074_v19, %v1012_v53  ;;  %v943_v20 = vadd.f32 %v942_v0, %v1937_v24 }
 0x196   :  { %v1076_v58 = vadd.f32 %v1075_v56, %v1013_v23  ;;  %v944_v36 = vadd.f32 %v943_v20, %v1952_v18 }
 0x198   :  { %v1077_v27 = vadd.f32 %v1076_v58, %v1014_v17  ;;  %v945_v52 = vadd.f32 %v944_v36, %v1967_v26 }
 0x19a   :  { %v1078_v30 = vadd.f32 %v1077_v27, %v1015_v60  ;;  %v946_v4 = vadd.f32 %v945_v52, %v1977_v8 }
 0x19c   :  { %v1079_v62 = vadd.f32 %v1078_v30, %v1016_v31  ;;  %v947_v24 = vadd.f32 %v946_v4, %v1986_v28 }
 0x19e   :  { %v1080_v35 = vadd.f32 %v1079_v62, %v1017_v5  ;;  %v948_v18 = vadd.f32 %v947_v24, %v1995_v41 }
 0x1a0   :  { %v1081_v2 = vadd.f32 %v1080_v35, %v1018_v34  ;;  %v949_v26 = vadd.f32 %v948_v18, %v2004_v57 }
 0x1a2   :  { %v1082_v33 = vadd.f32 %v1081_v2, %v1019_v39  ;;  %v950_v8 = vadd.f32 %v949_v26, %v2013_v9 }
 0x1a4   :  { %v951_v43 = vrot.slane %v950_v8, 4  ;;  %v1083_v28 = vadd.f32 %v1082_v33, %v1020_v12 }
 0x1a6   :  { %v952_v38 = vadd.f32 %v951_v43, %v950_v8  ;;  %v1084_v6 = vrot.slane %v1083_v28, 4 }
 0x1a8   :  { %v953_v47 = vrot.slane %v952_v38, 2  ;;  %v1085_v49 = vadd.f32 %v1084_v6, %v1083_v28 }
 0x1aa   :  { %v954_v25 = vadd.f32 %v953_v47, %v952_v38  ;;  %v1086_v41 = vrot.slane %v1085_v49, 2 }
 0x1ac   :  { %v955_v51 = vrot.slane %v954_v25, 1  ;;  %v1087_v42 = vadd.f32 %v1086_v41, %v1085_v49 }
 0x1ae   :  { %v1088_v13 = vrot.slane %v1087_v42, 1  ;;  %v956_v55 = vadd.f32 %v955_v51, %v954_v25 }
 0x1b0   :  { %v1089_v57 = vadd.f32 %v1088_v13, %v1087_v42 }
 0x1b2   :  { %v1091_v1 = vsel %vm1090_vm1, %v956_v55, %v1089_v57 }
 0x1b3   :  { %1092 = vst [vmem:[%s2124_s3] sm:$0x3] %v1091_v1 }

// kernel: generator_forward.16
= control target key start
LH: loop header
LB: loop body
LE: loop exit
PB: predicated region body
PF: predicated region fallthrough
CT: control target
= control target key end

     0   :  { %s1375_s0 = inlined_call_operand.vmem [shape: f32[512,128], index: 0, kind: input, shape index: {}]   ;;  %s1376_s1 = inlined_call_operand.vmem [shape: f32[1,128], index: 1, kind: input, shape index: {}]   ;;  %s1377_s2 = inlined_call_operand.vmem [shape: f32[1,128], index: 2, kind: input, shape index: {}]   ;;  %s1378_s3 = inlined_call_operand.vmem [shape: bf16[512,128], index: 3, kind: output, shape index: {}]  }
   0x1   :  { %v14_v0 = vld [vmem:[%s1375_s0] sm:$0xff]  ;;  %v15_v1 = vld [vmem:[%s1375_s0 + $0x8] sm:$0xff]  ;;  %v16_v6 = vld [vmem:[%s1375_s0 + $0x10] sm:$0xff] }
   0x2   :  { %v958_v2 = vld [vmem:[%s1376_s1] ss:$0 sm:$0xff]  ;;  %v17_v7 = vld [vmem:[%s1375_s0 + $0x18] sm:$0xff]  ;;  %v19_v11 = vld [vmem:[%s1375_s0 + $0x28] sm:$0xff] }
   0x3   :  { %v85_v3 = vmul.f32 %v958_v2, %v14_v0  ;;  %v86_v4 = vmul.f32 %v958_v2, %v15_v1  ;;  %v965_v5 = vld [vmem:[%s1377_s2] ss:$0 sm:$0xff]  ;;  %v87_v8 = vmul.f32 %v958_v2, %v16_v6  ;;  %v88_v9 = vmul.f32 %v958_v2, %v17_v7  ;;  %v20_v12 = vld [vmem:[%s1375_s0 + $0x30] sm:$0xff]  ;;  %v21_v17 = vld [vmem:[%s1375_s0 + $0x38] sm:$0xff] }
   0x4   :  { %v18_v10 = vld [vmem:[%s1375_s0 + $0x20] sm:$0xff]  ;;  %v90_v16 = vmul.f32 %v958_v2, %v19_v11  ;;  %v91_v20 = vmul.f32 %v958_v2, %v20_v12  ;;  %v92_v21 = vmul.f32 %v958_v2, %v21_v17  ;;  %v23_v27 = vld [vmem:[%s1375_s0 + $0x48] sm:$0xff]  ;;  %v24_v32 = vld [vmem:[%s1375_s0 + $0x50] sm:$0xff] }
   0x5   :  { %v156_v13 = vadd.f32 %v965_v5, %v85_v3  ;;  %v157_v14 = vadd.f32 %v965_v5, %v86_v4  ;;  %v89_v15 = vmul.f32 %v958_v2, %v18_v10  ;;  %v158_v18 = vadd.f32 %v965_v5, %v87_v8  ;;  %v22_v22 = vld [vmem:[%s1375_s0 + $0x40] sm:$0xff]  ;;  %v25_v33 = vld [vmem:[%s1375_s0 + $0x58] sm:$0xff]  ;;  %v27_v39 = vld [vmem:[%s1375_s0 + $0x68] sm:$0xff] }
   0x6   :  { %v159_v19 = vadd.f32 %v965_v5, %v88_v9  ;;  %v161_v26 = vadd.f32 %v965_v5, %v90_v16  ;;  %v162_v30 = vadd.f32 %v965_v5, %v91_v20  ;;  %v163_v31 = vadd.f32 %v965_v5, %v92_v21  ;;  %v26_v38 = vld [vmem:[%s1375_s0 + $0x60] sm:$0xff]  ;;  %v28_v44 = vld [vmem:[%s1375_s0 + $0x70] sm:$0xff]  ;;  %v29_v49 = vld [vmem:[%s1375_s0 + $0x78] sm:$0xff] }
   0x7   :  { %v220_v23 = vmax.f32 %v156_v13, 0.0  ;;  %v221_v24 = vmax.f32 %v157_v14, 0.0  ;;  %v160_v25 = vadd.f32 %v965_v5, %v89_v15  ;;  %v222_v28 = vmax.f32 %v158_v18, 0.0  ;;  %v30_v54 = vld [vmem:[%s1375_s0 + $0x80] sm:$0xff]  ;;  %v31_v63 = vld [vmem:[%s1375_s0 + $0x88] sm:$0xff]  ;;  %v32_v6 = vld [vmem:[%s1375_s0 + $0x90] sm:$0xff] }
   0x8   :  { %v223_v29 = vmax.f32 %v159_v19, 0.0  ;;  %v225_v36 = vmax.f32 %v161_v26, 0.0  ;;  %v93_v37 = vmul.f32 %v958_v2, %v22_v22  ;;  %v226_v41 = vmax.f32 %v162_v30, 0.0  ;;  %v33_v7 = vld [vmem:[%s1375_s0 + $0x98] sm:$0xff]  ;;  %v34_v12 = vld [vmem:[%s1375_s0 + $0xa0] sm:$0xff]  ;;  %v35_v13 = vld [vmem:[%s1375_s0 + $0xa8] sm:$0xff] }
   0x9   :  { %v741_v34 = vpack.c.bf16 %v221_v24, %v220_v23  ;;  %v224_v35 = vmax.f32 %v160_v25, 0.0  ;;  %v227_v42 = vmax.f32 %v163_v31, 0.0  ;;  %v94_v43 = vmul.f32 %v958_v2, %v23_v27  ;;  %v36_v18 = vld [vmem:[%s1375_s0 + $0xb0] sm:$0xff]  ;;  %v37_v23 = vld [vmem:[%s1375_s0 + $0xb8] sm:$0xff] }
   0xa   :  { %v746_v40 = vpack.c.bf16 %v223_v29, %v222_v28  ;;  %v164_v46 = vadd.f32 %v965_v5, %v93_v37  ;;  %v95_v47 = vmul.f32 %v958_v2, %v24_v32  ;;  %v96_v48 = vmul.f32 %v958_v2, %v25_v33  ;;  %v38_v28 = vld [vmem:[%s1375_s0 + $0xc0] sm:$0xff]  ;;  %v39_v37 = vld [vmem:[%s1375_s0 + $0xc8] sm:$0xff] }
   0xb   :  { %742 = vst [vmem:[%s1378_s3] sm:$0xff] %v741_v34   ;;  %v751_v45 = vpack.c.bf16 %v225_v36, %v224_v35  ;;  %v756_v50 = vpack.c.bf16 %v227_v42, %v226_v41  ;;  %v165_v51 = vadd.f32 %v965_v5, %v94_v43  ;;  %v97_v52 = vmul.f32 %v958_v2, %v26_v38  ;;  %v40_v42 = vld [vmem:[%s1375_s0 + $0xd0] sm:$0xff]  ;;  %v41_v43 = vld [vmem:[%s1375_s0 + $0xd8] sm:$0xff] }
   0xc   :  { %898 = vst [vmem:[%s1378_s3 + $0x8] sm:$0xff] %v746_v40   ;;  %v98_v53 = vmul.f32 %v958_v2, %v27_v39  ;;  %v228_v55 = vmax.f32 %v164_v46, 0.0  ;;  %v166_v56 = vadd.f32 %v965_v5, %v95_v47  ;;  %v167_v57 = vadd.f32 %v965_v5, %v96_v48  ;;  %v42_v48 = vld [vmem:[%s1375_s0 + $0xe0] sm:$0xff] }
   0xd   :  { %899 = vst [vmem:[%s1378_s3 + $0x10] sm:$0xff] %v751_v45   ;;  %v99_v58 = vmul.f32 %v958_v2, %v28_v44  ;;  %900 = vst [vmem:[%s1378_s3 + $0x18] sm:$0xff] %v756_v50   ;;  %v229_v59 = vmax.f32 %v165_v51, 0.0  ;;  %v168_v60 = vadd.f32 %v965_v5, %v97_v52  ;;  %v100_v62 = vmul.f32 %v958_v2, %v29_v49  ;;  %v43_v49 = vld [vmem:[%s1375_s0 + $0xe8] sm:$0xff] }
   0xe   :  { %v169_v61 = vadd.f32 %v965_v5, %v98_v53  ;;  %v230_v0 = vmax.f32 %v166_v56, 0.0  ;;  %v231_v1 = vmax.f32 %v167_v57, 0.0  ;;  %v101_v4 = vmul.f32 %v958_v2, %v30_v54  ;;  %v44_v54 = vld [vmem:[%s1375_s0 + $0xf0] sm:$0xff] }
   0xf   :  { %v170_v3 = vadd.f32 %v965_v5, %v99_v58  ;;  %v761_v8 = vpack.c.bf16 %v229_v59, %v228_v55  ;;  %v232_v9 = vmax.f32 %v168_v60, 0.0  ;;  %v171_v11 = vadd.f32 %v965_v5, %v100_v62  ;;  %v45_v59 = vld [vmem:[%s1375_s0 + $0xf8] sm:$0xff] }
  0x10   :  { %v233_v10 = vmax.f32 %v169_v61, 0.0  ;;  %v766_v14 = vpack.c.bf16 %v231_v1, %v230_v0  ;;  %v102_v16 = vmul.f32 %v958_v2, %v31_v63  ;;  %v172_v17 = vadd.f32 %v965_v5, %v101_v4  ;;  %v46_v0 = vld [vmem:[%s1375_s0 + $0x100] sm:$0xff] }
  0x11   :  { %v234_v15 = vmax.f32 %v170_v3, 0.0  ;;  %901 = vst [vmem:[%s1378_s3 + $0x20] sm:$0xff] %v761_v8   ;;  %v235_v20 = vmax.f32 %v171_v11, 0.0  ;;  %v103_v21 = vmul.f32 %v958_v2, %v32_v6  ;;  %v104_v22 = vmul.f32 %v958_v2, %v33_v7  ;;  %v47_v11 = vld [vmem:[%s1375_s0 + $0x108] sm:$0xff] }
  0x12   :  { %v771_v19 = vpack.c.bf16 %v233_v10, %v232_v9  ;;  %902 = vst [vmem:[%s1378_s3 + $0x28] sm:$0xff] %v766_v14   ;;  %v173_v24 = vadd.f32 %v965_v5, %v102_v16  ;;  %v236_v25 = vmax.f32 %v172_v17, 0.0  ;;  %v105_v26 = vmul.f32 %v958_v2, %v34_v12  ;;  %v48_v16 = vld [vmem:[%s1375_s0 + $0x110] sm:$0xff]  ;;  %v49_v17 = vld [vmem:[%s1375_s0 + $0x118] sm:$0xff] }
  0x13   :  { %v106_v27 = vmul.f32 %v958_v2, %v35_v13  ;;  %v776_v29 = vpack.c.bf16 %v235_v20, %v234_v15  ;;  %v174_v30 = vadd.f32 %v965_v5, %v103_v21  ;;  %v175_v31 = vadd.f32 %v965_v5, %v104_v22  ;;  %v50_v22 = vld [vmem:[%s1375_s0 + $0x120] sm:$0xff] }
  0x14   :  { %903 = vst [vmem:[%s1378_s3 + $0x30] sm:$0xff] %v771_v19   ;;  %v107_v32 = vmul.f32 %v958_v2, %v36_v18  ;;  %v237_v33 = vmax.f32 %v173_v24, 0.0  ;;  %v176_v34 = vadd.f32 %v965_v5, %v105_v26  ;;  %v108_v36 = vmul.f32 %v958_v2, %v37_v23  ;;  %v51_v23 = vld [vmem:[%s1375_s0 + $0x128] sm:$0xff] }
  0x15   :  { %v177_v35 = vadd.f32 %v965_v5, %v106_v27  ;;  %904 = vst [vmem:[%s1378_s3 + $0x38] sm:$0xff] %v776_v29   ;;  %v238_v38 = vmax.f32 %v174_v30, 0.0  ;;  %v239_v39 = vmax.f32 %v175_v31, 0.0  ;;  %v109_v41 = vmul.f32 %v958_v2, %v38_v28  ;;  %v52_v28 = vld [vmem:[%s1375_s0 + $0x130] sm:$0xff] }
  0x16   :  { %v178_v40 = vadd.f32 %v965_v5, %v107_v32  ;;  %v781_v44 = vpack.c.bf16 %v237_v33, %v236_v25  ;;  %v240_v45 = vmax.f32 %v176_v34, 0.0  ;;  %v179_v47 = vadd.f32 %v965_v5, %v108_v36  ;;  %v53_v33 = vld [vmem:[%s1375_s0 + $0x138] sm:$0xff] }
  0x17   :  { %v241_v46 = vmax.f32 %v177_v35, 0.0  ;;  %v786_v50 = vpack.c.bf16 %v239_v39, %v238_v38  ;;  %v110_v52 = vmul.f32 %v958_v2, %v39_v37  ;;  %v180_v53 = vadd.f32 %v965_v5, %v109_v41  ;;  %v54_v38 = vld [vmem:[%s1375_s0 + $0x140] sm:$0xff] }
  0x18   :  { %v242_v51 = vmax.f32 %v178_v40, 0.0  ;;  %905 = vst [vmem:[%s1378_s3 + $0x40] sm:$0xff] %v781_v44   ;;  %v243_v56 = vmax.f32 %v179_v47, 0.0  ;;  %v111_v57 = vmul.f32 %v958_v2, %v40_v42  ;;  %v112_v58 = vmul.f32 %v958_v2, %v41_v43  ;;  %v55_v47 = vld [vmem:[%s1375_s0 + $0x148] sm:$0xff] }
  0x19   :  { %v791_v55 = vpack.c.bf16 %v241_v46, %v240_v45  ;;  %906 = vst [vmem:[%s1378_s3 + $0x48] sm:$0xff] %v786_v50   ;;  %v181_v60 = vadd.f32 %v965_v5, %v110_v52  ;;  %v244_v61 = vmax.f32 %v180_v53, 0.0  ;;  %v113_v62 = vmul.f32 %v958_v2, %v42_v48  ;;  %v56_v52 = vld [vmem:[%s1375_s0 + $0x150] sm:$0xff]  ;;  %v57_v53 = vld [vmem:[%s1375_s0 + $0x158] sm:$0xff] }
  0x1a   :  { %v114_v63 = vmul.f32 %v958_v2, %v43_v49  ;;  %v796_v1 = vpack.c.bf16 %v243_v56, %v242_v51  ;;  %v182_v3 = vadd.f32 %v965_v5, %v111_v57  ;;  %v183_v4 = vadd.f32 %v965_v5, %v112_v58  ;;  %v58_v58 = vld [vmem:[%s1375_s0 + $0x160] sm:$0xff] }
  0x1b   :  { %907 = vst [vmem:[%s1378_s3 + $0x50] sm:$0xff] %v791_v55   ;;  %v115_v6 = vmul.f32 %v958_v2, %v44_v54  ;;  %v245_v7 = vmax.f32 %v181_v60, 0.0  ;;  %v184_v8 = vadd.f32 %v965_v5, %v113_v62  ;;  %v116_v10 = vmul.f32 %v958_v2, %v45_v59  ;;  %v59_v59 = vld [vmem:[%s1375_s0 + $0x168] sm:$0xff] }
  0x1c   :  { %v185_v9 = vadd.f32 %v965_v5, %v114_v63  ;;  %908 = vst [vmem:[%s1378_s3 + $0x58] sm:$0xff] %v796_v1   ;;  %v246_v12 = vmax.f32 %v182_v3, 0.0  ;;  %v247_v13 = vmax.f32 %v183_v4, 0.0  ;;  %v117_v15 = vmul.f32 %v958_v2, %v46_v0  ;;  %v60_v0 = vld [vmem:[%s1375_s0 + $0x170] sm:$0xff] }
  0x1d   :  { %v186_v14 = vadd.f32 %v965_v5, %v115_v6  ;;  %v801_v18 = vpack.c.bf16 %v245_v7, %v244_v61  ;;  %v248_v19 = vmax.f32 %v184_v8, 0.0  ;;  %v187_v21 = vadd.f32 %v965_v5, %v116_v10  ;;  %v61_v7 = vld [vmem:[%s1375_s0 + $0x178] sm:$0xff] }
  0x1e   :  { %v249_v20 = vmax.f32 %v185_v9, 0.0  ;;  %v806_v24 = vpack.c.bf16 %v247_v13, %v246_v12  ;;  %v118_v26 = vmul.f32 %v958_v2, %v47_v11  ;;  %v188_v27 = vadd.f32 %v965_v5, %v117_v15  ;;  %v62_v12 = vld [vmem:[%s1375_s0 + $0x180] sm:$0xff] }
  0x1f   :  { %v250_v25 = vmax.f32 %v186_v14, 0.0  ;;  %909 = vst [vmem:[%s1378_s3 + $0x60] sm:$0xff] %v801_v18   ;;  %v251_v30 = vmax.f32 %v187_v21, 0.0  ;;  %v119_v31 = vmul.f32 %v958_v2, %v48_v16  ;;  %v120_v32 = vmul.f32 %v958_v2, %v49_v17  ;;  %v63_v21 = vld [vmem:[%s1375_s0 + $0x188] sm:$0xff] }
  0x20   :  { %v811_v29 = vpack.c.bf16 %v249_v20, %v248_v19  ;;  %910 = vst [vmem:[%s1378_s3 + $0x68] sm:$0xff] %v806_v24   ;;  %v189_v34 = vadd.f32 %v965_v5, %v118_v26  ;;  %v252_v35 = vmax.f32 %v188_v27, 0.0  ;;  %v121_v36 = vmul.f32 %v958_v2, %v50_v22  ;;  %v64_v26 = vld [vmem:[%s1375_s0 + $0x190] sm:$0xff]  ;;  %v65_v27 = vld [vmem:[%s1375_s0 + $0x198] sm:$0xff] }
  0x21   :  { %v122_v37 = vmul.f32 %v958_v2, %v51_v23  ;;  %v816_v39 = vpack.c.bf16 %v251_v30, %v250_v25  ;;  %v190_v40 = vadd.f32 %v965_v5, %v119_v31  ;;  %v191_v41 = vadd.f32 %v965_v5, %v120_v32  ;;  %v66_v32 = vld [vmem:[%s1375_s0 + $0x1a0] sm:$0xff] }
  0x22   :  { %911 = vst [vmem:[%s1378_s3 + $0x70] sm:$0xff] %v811_v29   ;;  %v123_v42 = vmul.f32 %v958_v2, %v52_v28  ;;  %v253_v43 = vmax.f32 %v189_v34, 0.0  ;;  %v192_v44 = vadd.f32 %v965_v5, %v121_v36  ;;  %v124_v46 = vmul.f32 %v958_v2, %v53_v33  ;;  %v67_v33 = vld [vmem:[%s1375_s0 + $0x1a8] sm:$0xff] }
  0x23   :  { %v193_v45 = vadd.f32 %v965_v5, %v122_v37  ;;  %912 = vst [vmem:[%s1378_s3 + $0x78] sm:$0xff] %v816_v39   ;;  %v254_v48 = vmax.f32 %v190_v40, 0.0  ;;  %v255_v49 = vmax.f32 %v191_v41, 0.0  ;;  %v125_v51 = vmul.f32 %v958_v2, %v54_v38  ;;  %v68_v38 = vld [vmem:[%s1375_s0 + $0x1b0] sm:$0xff] }
  0x24   :  { %v194_v50 = vadd.f32 %v965_v5, %v123_v42  ;;  %v821_v54 = vpack.c.bf16 %v253_v43, %v252_v35  ;;  %v256_v55 = vmax.f32 %v192_v44, 0.0  ;;  %v195_v57 = vadd.f32 %v965_v5, %v124_v46  ;;  %v69_v43 = vld [vmem:[%s1375_s0 + $0x1b8] sm:$0xff] }
  0x25   :  { %v257_v56 = vmax.f32 %v193_v45, 0.0  ;;  %v826_v60 = vpack.c.bf16 %v255_v49, %v254_v48  ;;  %v126_v62 = vmul.f32 %v958_v2, %v55_v47  ;;  %v196_v63 = vadd.f32 %v965_v5, %v125_v51  ;;  %v70_v48 = vld [vmem:[%s1375_s0 + $0x1c0] sm:$0xff] }
  0x26   :  { %v258_v61 = vmax.f32 %v194_v50, 0.0  ;;  %913 = vst [vmem:[%s1378_s3 + $0x80] sm:$0xff] %v821_v54   ;;  %v259_v3 = vmax.f32 %v195_v57, 0.0  ;;  %v127_v4 = vmul.f32 %v958_v2, %v56_v52  ;;  %v128_v6 = vmul.f32 %v958_v2, %v57_v53  ;;  %v71_v57 = vld [vmem:[%s1375_s0 + $0x1c8] sm:$0xff] }
  0x27   :  { %v831_v1 = vpack.c.bf16 %v257_v56, %v256_v55  ;;  %914 = vst [vmem:[%s1378_s3 + $0x88] sm:$0xff] %v826_v60   ;;  %v197_v8 = vadd.f32 %v965_v5, %v126_v62  ;;  %v260_v9 = vmax.f32 %v196_v63, 0.0  ;;  %v129_v10 = vmul.f32 %v958_v2, %v58_v58  ;;  %v72_v62 = vld [vmem:[%s1375_s0 + $0x1d0] sm:$0xff]  ;;  %v73_v63 = vld [vmem:[%s1375_s0 + $0x1d8] sm:$0xff] }
  0x28   :  { %v130_v11 = vmul.f32 %v958_v2, %v59_v59  ;;  %v836_v13 = vpack.c.bf16 %v259_v3, %v258_v61  ;;  %v198_v14 = vadd.f32 %v965_v5, %v127_v4  ;;  %v199_v15 = vadd.f32 %v965_v5, %v128_v6  ;;  %v74_v6 = vld [vmem:[%s1375_s0 + $0x1e0] sm:$0xff] }
  0x29   :  { %915 = vst [vmem:[%s1378_s3 + $0x90] sm:$0xff] %v831_v1   ;;  %v131_v16 = vmul.f32 %v958_v2, %v60_v0  ;;  %v261_v17 = vmax.f32 %v197_v8, 0.0  ;;  %v200_v18 = vadd.f32 %v965_v5, %v129_v10  ;;  %v132_v20 = vmul.f32 %v958_v2, %v61_v7  ;;  %v75_v7 = vld [vmem:[%s1375_s0 + $0x1e8] sm:$0xff] }
  0x2a   :  { %v201_v19 = vadd.f32 %v965_v5, %v130_v11  ;;  %916 = vst [vmem:[%s1378_s3 + $0x98] sm:$0xff] %v836_v13   ;;  %v262_v22 = vmax.f32 %v198_v14, 0.0  ;;  %v263_v23 = vmax.f32 %v199_v15, 0.0  ;;  %v133_v25 = vmul.f32 %v958_v2, %v62_v12  ;;  %v76_v12 = vld [vmem:[%s1375_s0 + $0x1f0] sm:$0xff] }
  0x2b   :  { %v202_v24 = vadd.f32 %v965_v5, %v131_v16  ;;  %v841_v28 = vpack.c.bf16 %v261_v17, %v260_v9  ;;  %v264_v29 = vmax.f32 %v200_v18, 0.0  ;;  %v203_v31 = vadd.f32 %v965_v5, %v132_v20  ;;  %v77_v17 = vld [vmem:[%s1375_s0 + $0x1f8] sm:$0xff] }
  0x2c   :  { %v265_v30 = vmax.f32 %v201_v19, 0.0  ;;  %v846_v34 = vpack.c.bf16 %v263_v23, %v262_v22  ;;  %v134_v36 = vmul.f32 %v958_v2, %v63_v21  ;;  %v204_v37 = vadd.f32 %v965_v5, %v133_v25 }
  0x2d   :  { %v266_v35 = vmax.f32 %v202_v24, 0.0  ;;  %917 = vst [vmem:[%s1378_s3 + $0xa0] sm:$0xff] %v841_v28   ;;  %v267_v40 = vmax.f32 %v203_v31, 0.0  ;;  %v135_v41 = vmul.f32 %v958_v2, %v64_v26  ;;  %v136_v42 = vmul.f32 %v958_v2, %v65_v27 }
  0x2e   :  { %v851_v39 = vpack.c.bf16 %v265_v30, %v264_v29  ;;  %918 = vst [vmem:[%s1378_s3 + $0xa8] sm:$0xff] %v846_v34   ;;  %v205_v44 = vadd.f32 %v965_v5, %v134_v36  ;;  %v268_v45 = vmax.f32 %v204_v37, 0.0  ;;  %v137_v46 = vmul.f32 %v958_v2, %v66_v32 }
  0x2f   :  { %v138_v47 = vmul.f32 %v958_v2, %v67_v33  ;;  %v856_v49 = vpack.c.bf16 %v267_v40, %v266_v35  ;;  %v206_v50 = vadd.f32 %v965_v5, %v135_v41  ;;  %v207_v51 = vadd.f32 %v965_v5, %v136_v42 }
  0x30   :  { %919 = vst [vmem:[%s1378_s3 + $0xb0] sm:$0xff] %v851_v39   ;;  %v139_v52 = vmul.f32 %v958_v2, %v68_v38  ;;  %v269_v53 = vmax.f32 %v205_v44, 0.0  ;;  %v208_v54 = vadd.f32 %v965_v5, %v137_v46  ;;  %v140_v56 = vmul.f32 %v958_v2, %v69_v43 }
  0x31   :  { %v209_v55 = vadd.f32 %v965_v5, %v138_v47  ;;  %920 = vst [vmem:[%s1378_s3 + $0xb8] sm:$0xff] %v856_v49   ;;  %v270_v58 = vmax.f32 %v206_v50, 0.0  ;;  %v271_v59 = vmax.f32 %v207_v51, 0.0  ;;  %v141_v61 = vmul.f32 %v958_v2, %v70_v48 }
  0x32   :  { %v210_v60 = vadd.f32 %v965_v5, %v139_v52  ;;  %v861_v0 = vpack.c.bf16 %v269_v53, %v268_v45  ;;  %v272_v1 = vmax.f32 %v208_v54, 0.0  ;;  %v211_v4 = vadd.f32 %v965_v5, %v140_v56 }
  0x33   :  { %v273_v3 = vmax.f32 %v209_v55, 0.0  ;;  %v866_v8 = vpack.c.bf16 %v271_v59, %v270_v58  ;;  %v142_v10 = vmul.f32 %v958_v2, %v71_v57  ;;  %v212_v11 = vadd.f32 %v965_v5, %v141_v61 }
  0x34   :  { %v274_v9 = vmax.f32 %v210_v60, 0.0  ;;  %921 = vst [vmem:[%s1378_s3 + $0xc0] sm:$0xff] %v861_v0   ;;  %v275_v14 = vmax.f32 %v211_v4, 0.0  ;;  %v143_v15 = vmul.f32 %v958_v2, %v72_v62  ;;  %v144_v16 = vmul.f32 %v958_v2, %v73_v63 }
  0x35   :  { %v871_v13 = vpack.c.bf16 %v273_v3, %v272_v1  ;;  %922 = vst [vmem:[%s1378_s3 + $0xc8] sm:$0xff] %v866_v8   ;;  %v213_v18 = vadd.f32 %v965_v5, %v142_v10  ;;  %v276_v19 = vmax.f32 %v212_v11, 0.0  ;;  %v145_v20 = vmul.f32 %v958_v2, %v74_v6 }
  0x36   :  { %v146_v21 = vmul.f32 %v958_v2, %v75_v7  ;;  %v876_v22 = vpack.c.bf16 %v275_v14, %v274_v9  ;;  %v214_v23 = vadd.f32 %v965_v5, %v143_v15  ;;  %v215_v24 = vadd.f32 %v965_v5, %v144_v16 }
  0x37   :  { %923 = vst [vmem:[%s1378_s3 + $0xd0] sm:$0xff] %v871_v13   ;;  %v147_v25 = vmul.f32 %v958_v2, %v76_v12  ;;  %v277_v26 = vmax.f32 %v213_v18, 0.0  ;;  %v216_v27 = vadd.f32 %v965_v5, %v145_v20  ;;  %v148_v29 = vmul.f32 %v958_v2, %v77_v17 }
  0x38   :  { %v217_v28 = vadd.f32 %v965_v5, %v146_v21  ;;  %924 = vst [vmem:[%s1378_s3 + $0xd8] sm:$0xff] %v876_v22   ;;  %v278_v30 = vmax.f32 %v214_v23, 0.0  ;;  %v279_v31 = vmax.f32 %v215_v24, 0.0 }
  0x39   :  { %v218_v32 = vadd.f32 %v965_v5, %v147_v25  ;;  %v881_v33 = vpack.c.bf16 %v277_v26, %v276_v19  ;;  %v280_v34 = vmax.f32 %v216_v27, 0.0  ;;  %v219_v36 = vadd.f32 %v965_v5, %v148_v29 }
  0x3a   :  { %v281_v35 = vmax.f32 %v217_v28, 0.0  ;;  %v886_v37 = vpack.c.bf16 %v279_v31, %v278_v30 }
  0x3b   :  { %v282_v38 = vmax.f32 %v218_v32, 0.0  ;;  %925 = vst [vmem:[%s1378_s3 + $0xe0] sm:$0xff] %v881_v33   ;;  %v283_v39 = vmax.f32 %v219_v36, 0.0 }
  0x3c   :  { %v891_v2 = vpack.c.bf16 %v281_v35, %v280_v34  ;;  %926 = vst [vmem:[%s1378_s3 + $0xe8] sm:$0xff] %v886_v37  }
  0x3d   :  { %v896_v40 = vpack.c.bf16 %v283_v39, %v282_v38 }
  0x3e   :  { %927 = vst [vmem:[%s1378_s3 + $0xf0] sm:$0xff] %v891_v2  }
  0x3f   :  { %928 = vst [vmem:[%s1378_s3 + $0xf8] sm:$0xff] %v896_v40  }

// kernel: generator_forward.17
= control target key start
LH: loop header
LB: loop body
LE: loop exit
PB: predicated region body
PF: predicated region fallthrough
CT: control target
= control target key end

     0   :  { %s1379_s9 = smov 0   ;;  %s1547_s0 = inlined_call_operand.vmem [shape: bf16[2048,80], index: 0, kind: input, shape index: {}]   ;;  %s1548_s1 = inlined_call_operand.vmem [shape: bf16[80,128], index: 1, kind: input, shape index: {}]   ;;  %s1549_s2 = inlined_call_operand.vmem [shape: f32[2048,128], index: 2, kind: output, shape index: {}]  }
   0x1 LB: > { %s982_s10 = sadd.s32 4294967295, %s1362_s9   ;;  %p986_p0 = scmp.ge.s32.totalorder %s1362_s9, 1  ;;  %s1362_s9 = sphi %s1379_s9, %s12_s9  }
   0x2   : > { %p113_p1 = scmp.lt.s32.totalorder %s1362_s9, 5 }
   0x4   : > { %p114_p2 = pnand %p986_p0, %p113_p1 }
   0x5   : > { %s987_s13 = sshll.u32 (!%p114_p2), %s982_s10, 6 }
   0x6   : > { %117 = sbr.rel (%p114_p2) target bundleno = 303 (0x12f), region = 28  ;;  %p136_p3 = scmp.lt.s32.totalorder (!%p114_p2), %s987_s13, 255 }
   0xb   : > { %v1191_v0 = vld [vmem:[%s1548_s1 + $0x20] sm:$0xff]   ;;  %v1192_v1 = vld [vmem:[%s1548_s1 + $0x18] sm:$0xff]   ;;  %s1551_s13 = smov (!%p136_p3, %s987_s13), 255  ;;  %v1193_v2 = vld [vmem:[%s1548_s1 + $0x10] sm:$0xff]   ;;  %vm412_vm0 = vcmask 654336  }
   0xc   : > { %1099 = vmatprep.subr.bf16.mxu0 %v1191_v0  ;;  %1173 = vmatprep.subr.bf16.mxu1 %v1191_v0  ;;  %s988_s18 = sshll.u32 %s1551_s13, 2  ;;  %v1194_v3 = vld [vmem:[%s1548_s1 + $0x8] sm:$0xff]   ;;  %v1195_v6 = vld [vmem:[%s1548_s1] sm:$0xff]   ;;  %s990_s26 = sshll.u32 %s1551_s13, 3 }
   0xd   : > { %1100 = vmatpush3.bf16.msra.mxu0 %v1191_v0  ;;  %1178 = vmatpush3.bf16.msra.mxu1 %v1191_v0  ;;  %s1405_s23 = scalar_lea.vmem %s1547_s0, %s988_s18  ;;  %s1478_s29 = scalar_lea.vmem %s1549_s2, %s990_s26 }
   0xe   : > { %1101 = vmatprep.subr.bf16.mxu0 %v1192_v1  ;;  %1174 = vmatprep.subr.bf16.mxu1 %v1192_v1  ;;  %v1196_v4 = vld [vmem:[%s1405_s23] sm:$0xff]   ;;  %v1198_v7 = vld [vmem:[%s1405_s23 + $0x8] sm:$0xff]   ;;  %v1200_v9 = vld [vmem:[%s1405_s23 + $0x10] sm:$0xff]  }
   0xf   : > { %v1197_v5 = vld [vmem:[%s1405_s23 + $0x80] sm:$0xff]   ;;  %1109 = vmatprep.mubr.msk.bf16.mxu0 %vm412_vm0, %v1196_v4  ;;  %v1199_v8 = vld [vmem:[%s1405_s23 + $0x88] sm:$0xff]   ;;  %v1201_v10 = vld [vmem:[%s1405_s23 + $0x90] sm:$0xff]  }
  0x10   : > { %1141 = vmatprep.mubr.msk.bf16.mxu1 %vm412_vm0, %v1197_v5  ;;  %v1202_v11 = vld [vmem:[%s1405_s23 + $0x18] sm:$0xff]   ;;  %v1204_v13 = vld [vmem:[%s1405_s23 + $0x20] sm:$0xff]   ;;  %v1206_v15 = vld [vmem:[%s1405_s23 + $0x28] sm:$0xff]  }
  0x11   : > { %1102 = vmatpush3.bf16.msra.mxu0 %v1192_v1  ;;  %1179 = vmatpush3.bf16.msra.mxu1 %v1192_v1  ;;  %v1203_v12 = vld [vmem:[%s1405_s23 + $0x98] sm:$0xff]   ;;  %v1205_v14 = vld [vmem:[%s1405_s23 + $0xa0] sm:$0xff]   ;;  %v1207_v16 = vld [vmem:[%s1405_s23 + $0xa8] sm:$0xff]  }
  0x12   : > { %1103 = vmatprep.subr.bf16.mxu0 %v1193_v2  ;;  %1175 = vmatprep.subr.bf16.mxu1 %v1193_v2  ;;  %v1208_v17 = vld [vmem:[%s1405_s23 + $0x30] sm:$0xff]   ;;  %v1210_v19 = vld [vmem:[%s1405_s23 + $0x38] sm:$0xff]   ;;  %v1212_v21 = vld [vmem:[%s1405_s23 + $0x40] sm:$0xff]  }
  0x13   : > { %v1209_v18 = vld [vmem:[%s1405_s23 + $0xb0] sm:$0xff]   ;;  %v1211_v20 = vld [vmem:[%s1405_s23 + $0xb8] sm:$0xff]   ;;  %v1213_v22 = vld [vmem:[%s1405_s23 + $0xc0] sm:$0xff]  }
  0x14   : > { %v1214_v23 = vld [vmem:[%s1405_s23 + $0x48] sm:$0xff]   ;;  %v1216_v25 = vld [vmem:[%s1405_s23 + $0x50] sm:$0xff]   ;;  %v1218_v27 = vld [vmem:[%s1405_s23 + $0x58] sm:$0xff]  }
  0x15   : > { %1104 = vmatpush3.bf16.msra.mxu0 %v1193_v2  ;;  %1180 = vmatpush3.bf16.msra.mxu1 %v1193_v2  ;;  %v1215_v24 = vld [vmem:[%s1405_s23 + $0xc8] sm:$0xff]   ;;  %v1217_v26 = vld [vmem:[%s1405_s23 + $0xd0] sm:$0xff]   ;;  %v1219_v28 = vld [vmem:[%s1405_s23 + $0xd8] sm:$0xff]  }
  0x16   : > { %1105 = vmatprep.subr.bf16.mxu0 %v1194_v3  ;;  %1176 = vmatprep.subr.bf16.mxu1 %v1194_v3  ;;  %v1220_v29 = vld [vmem:[%s1405_s23 + $0x60] sm:$0xff]   ;;  %v1222_v31 = vld [vmem:[%s1405_s23 + $0x68] sm:$0xff]   ;;  %v1224_v33 = vld [vmem:[%s1405_s23 + $0x70] sm:$0xff]  }
  0x17   : > { %v1221_v30 = vld [vmem:[%s1405_s23 + $0xe0] sm:$0xff]   ;;  %v1223_v32 = vld [vmem:[%s1405_s23 + $0xe8] sm:$0xff]   ;;  %v1225_v34 = vld [vmem:[%s1405_s23 + $0xf0] sm:$0xff]  }
  0x18   : > { %v1226_v35 = vld [vmem:[%s1405_s23 + $0x78] sm:$0xff]  }
  0x19   : > { %1106 = vmatpush3.bf16.msra.mxu0 %v1194_v3  ;;  %1181 = vmatpush3.bf16.msra.mxu1 %v1194_v3  ;;  %v1227_v36 = vld [vmem:[%s1405_s23 + $0xf8] sm:$0xff]  }
  0x1a   : > { %1107 = vmatprep.subr.bf16.mxu0 %v1195_v6  ;;  %1177 = vmatprep.subr.bf16.mxu1 %v1195_v6 }
  0x1d   : > { %1108 = vmatpush3.bf16.msra.mxu0 %v1195_v6  ;;  %1182 = vmatpush3.bf16.msra.mxu1 %v1195_v6 }
  0x20   : > { %1110 = vmatmul.mubr.msk.bf16.vlgmr.msra.gmra.mxu0 %vm412_vm0, %v1198_v7  ;;  %1142 = vmatmul.mubr.msk.bf16.vlgmr.msra.gmra.mxu1 %vm412_vm0, %v1199_v8 }
  0x21   : > { %1113 = vmatprep.mubr.msk.bf16.mxu0 %vm412_vm0, %v1200_v9  ;;  %1145 = vmatprep.mubr.msk.bf16.mxu1 %vm412_vm0, %v1201_v10 }
  0x28   : > { %1114 = vmatmul.mubr.msk.bf16.gmra.mxu0 %vm412_vm0, %v1202_v11  ;;  %1146 = vmatmul.mubr.msk.bf16.gmra.mxu1 %vm412_vm0, %v1203_v12 }
  0x29   : > { %1117 = vmatprep.mubr.msk.bf16.mxu0 %vm412_vm0, %v1204_v13  ;;  %1149 = vmatprep.mubr.msk.bf16.mxu1 %vm412_vm0, %v1205_v14 }
  0x30   : > { %1118 = vmatmul.mubr.msk.bf16.gmra.mxu0 %vm412_vm0, %v1206_v15  ;;  %1150 = vmatmul.mubr.msk.bf16.gmra.mxu1 %vm412_vm0, %v1207_v16 }
  0x31   : > { %1121 = vmatprep.mubr.msk.bf16.mxu0 %vm412_vm0, %v1208_v17  ;;  %1153 = vmatprep.mubr.msk.bf16.mxu1 %vm412_vm0, %v1209_v18 }
  0x38   : > { %1122 = vmatmul.mubr.msk.bf16.gmra.mxu0 %vm412_vm0, %v1210_v19  ;;  %1154 = vmatmul.mubr.msk.bf16.gmra.mxu1 %vm412_vm0, %v1211_v20 }
  0x39   : > { %1125 = vmatprep.mubr.msk.bf16.mxu0 %vm412_vm0, %v1212_v21  ;;  %1157 = vmatprep.mubr.msk.bf16.mxu1 %vm412_vm0, %v1213_v22 }
  0x40   : > { %1126 = vmatmul.mubr.msk.bf16.gmra.mxu0 %vm412_vm0, %v1214_v23  ;;  %1158 = vmatmul.mubr.msk.bf16.gmra.mxu1 %vm412_vm0, %v1215_v24 }
  0x41   : > { %1129 = vmatprep.mubr.msk.bf16.mxu0 %vm412_vm0, %v1216_v25  ;;  %1161 = vmatprep.mubr.msk.bf16.mxu1 %vm412_vm0, %v1217_v26 }
  0x48   : > { %1130 = vmatmul.mubr.msk.bf16.gmra.mxu0 %vm412_vm0, %v1218_v27  ;;  %1162 = vmatmul.mubr.msk.bf16.gmra.mxu1 %vm412_vm0, %v1219_v28 }
  0x49   : > { %1133 = vmatprep.mubr.msk.bf16.mxu0 %vm412_vm0, %v1220_v29  ;;  %1165 = vmatprep.mubr.msk.bf16.mxu1 %vm412_vm0, %v1221_v30 }
  0x50   : > { %1134 = vmatmul.mubr.msk.bf16.gmra.mxu0 %vm412_vm0, %v1222_v31  ;;  %1166 = vmatmul.mubr.msk.bf16.gmra.mxu1 %vm412_vm0, %v1223_v32 }
  0x51   : > { %1137 = vmatprep.mubr.msk.bf16.mxu0 %vm412_vm0, %v1224_v33  ;;  %1169 = vmatprep.mubr.msk.bf16.mxu1 %vm412_vm0, %v1225_v34 }
  0x58   : > { %1138 = vmatmul.mubr.msk.bf16.gmra.mxu0 %vm412_vm0, %v1226_v35  ;;  %1170 = vmatmul.mubr.msk.bf16.gmra.mxu1 %vm412_vm0, %v1227_v36 }
  0xe0   : > { %v1111_v37 = vpop.f32.mrf.mxu0  ;;  %v1143_v38 = vpop.f32.mrf.mxu1 }
  0xe1   : > { %1228 = vtanh.f32 %v1111_v37 }
  0xe2   : > { %1230 = vtanh.f32 %v1143_v38  ;;  %v543_v39 = vpop.f32.mrf.mxu0  ;;  %v671_v40 = vpop.f32.mrf.mxu1 }
  0xe3   : > { %1232 = vtanh.f32 %v543_v39 }
  0xe4   : > { %1234 = vtanh.f32 %v671_v40  ;;  %v1112_v41 = vpop.f32.mrf.mxu0  ;;  %v1144_v42 = vpop.f32.mrf.mxu1 }
  0xe5   : > { %1236 = vtanh.f32 %v1112_v41 }
  0xe6   : > { %1238 = vtanh.f32 %v1144_v42  ;;  %v546_v43 = vpop.f32.mrf.mxu0  ;;  %v674_v44 = vpop.f32.mrf.mxu1 }
  0xe7   : > { %1240 = vtanh.f32 %v546_v43 }
  0xe8   : > { %1242 = vtanh.f32 %v674_v44  ;;  %v1115_v45 = vpop.f32.mrf.mxu0  ;;  %v1147_v46 = vpop.f32.mrf.mxu1 }
  0xe9   : > { %1244 = vtanh.f32 %v1115_v45 }
  0xea   : > { %1246 = vtanh.f32 %v1147_v46  ;;  %v559_v47 = vpop.f32.mrf.mxu0  ;;  %v687_v48 = vpop.f32.mrf.mxu1 }
  0xeb   : > { %1248 = vtanh.f32 %v559_v47 }
  0xec   : > { %1250 = vtanh.f32 %v687_v48  ;;  %v1116_v49 = vpop.f32.mrf.mxu0  ;;  %v1148_v50 = vpop.f32.mrf.mxu1 }
  0xed   : > { %1252 = vtanh.f32 %v1116_v49 }
  0xee   : > { %v1229_v51 = vpop.eup %1228  ;;  %1254 = vtanh.f32 %v1148_v50  ;;  %v562_v52 = vpop.f32.mrf.mxu0 }
  0xef   : > { %v690_v53 = vpop.f32.mrf.mxu1  ;;  %v1231_v54 = vpop.eup %1230  ;;  %864 = vst [vmem:[%s1478_s29 + $0x10] sm:$0xff] %v1229_v51  ;;  %1256 = vtanh.f32 %v562_v52 }
  0xf0   : > { %v1233_v55 = vpop.eup %1232  ;;  %896 = vst [vmem:[%s1478_s29 + $0x110] sm:$0xff] %v1231_v54  ;;  %1258 = vtanh.f32 %v690_v53  ;;  %v1119_v56 = vpop.f32.mrf.mxu0 }
  0xf1   : > { %v1151_v57 = vpop.f32.mrf.mxu1  ;;  %v1235_v58 = vpop.eup %1234  ;;  %862 = vst [vmem:[%s1478_s29] sm:$0xff] %v1233_v55  ;;  %1260 = vtanh.f32 %v1119_v56 }
  0xf2   : > { %v1237_v59 = vpop.eup %1236  ;;  %894 = vst [vmem:[%s1478_s29 + $0x100] sm:$0xff] %v1235_v58  ;;  %1262 = vtanh.f32 %v1151_v57  ;;  %v575_v60 = vpop.f32.mrf.mxu0 }
  0xf3   : > { %v703_v61 = vpop.f32.mrf.mxu1  ;;  %v1239_v62 = vpop.eup %1238  ;;  %865 = vst [vmem:[%s1478_s29 + $0x18] sm:$0xff] %v1237_v59  ;;  %1264 = vtanh.f32 %v575_v60 }
  0xf4   : > { %v1241_v63 = vpop.eup %1240  ;;  %897 = vst [vmem:[%s1478_s29 + $0x118] sm:$0xff] %v1239_v62  ;;  %1266 = vtanh.f32 %v703_v61  ;;  %v1120_v0 = vpop.f32.mrf.mxu0 }
  0xf5   : > { %v1152_v1 = vpop.f32.mrf.mxu1  ;;  %v1243_v2 = vpop.eup %1242  ;;  %863 = vst [vmem:[%s1478_s29 + $0x8] sm:$0xff] %v1241_v63  ;;  %1268 = vtanh.f32 %v1120_v0 }
  0xf6   : > { %v1245_v3 = vpop.eup %1244  ;;  %895 = vst [vmem:[%s1478_s29 + $0x108] sm:$0xff] %v1243_v2  ;;  %1270 = vtanh.f32 %v1152_v1  ;;  %v578_v4 = vpop.f32.mrf.mxu0 }
  0xf7   : > { %v706_v5 = vpop.f32.mrf.mxu1  ;;  %v1247_v6 = vpop.eup %1246  ;;  %868 = vst [vmem:[%s1478_s29 + $0x30] sm:$0xff] %v1245_v3  ;;  %1272 = vtanh.f32 %v578_v4 }
  0xf8   : > { %v1249_v7 = vpop.eup %1248  ;;  %900 = vst [vmem:[%s1478_s29 + $0x130] sm:$0xff] %v1247_v6  ;;  %1274 = vtanh.f32 %v706_v5  ;;  %v1123_v8 = vpop.f32.mrf.mxu0 }
  0xf9   : > { %v1155_v9 = vpop.f32.mrf.mxu1  ;;  %v1251_v10 = vpop.eup %1250  ;;  %866 = vst [vmem:[%s1478_s29 + $0x20] sm:$0xff] %v1249_v7  ;;  %1276 = vtanh.f32 %v1123_v8 }
  0xfa   : > { %v1253_v11 = vpop.eup %1252  ;;  %898 = vst [vmem:[%s1478_s29 + $0x120] sm:$0xff] %v1251_v10  ;;  %1278 = vtanh.f32 %v1155_v9  ;;  %v591_v12 = vpop.f32.mrf.mxu0 }
  0xfb   : > { %v719_v13 = vpop.f32.mrf.mxu1  ;;  %v1255_v14 = vpop.eup %1254  ;;  %869 = vst [vmem:[%s1478_s29 + $0x38] sm:$0xff] %v1253_v11  ;;  %1280 = vtanh.f32 %v591_v12 }
  0xfc   : > { %v1257_v15 = vpop.eup %1256  ;;  %901 = vst [vmem:[%s1478_s29 + $0x138] sm:$0xff] %v1255_v14  ;;  %1282 = vtanh.f32 %v719_v13  ;;  %v1124_v16 = vpop.f32.mrf.mxu0 }
  0xfd   : > { %v1156_v17 = vpop.f32.mrf.mxu1  ;;  %v1259_v18 = vpop.eup %1258  ;;  %867 = vst [vmem:[%s1478_s29 + $0x28] sm:$0xff] %v1257_v15  ;;  %1284 = vtanh.f32 %v1124_v16 }
  0xfe   : > { %v1261_v19 = vpop.eup %1260  ;;  %899 = vst [vmem:[%s1478_s29 + $0x128] sm:$0xff] %v1259_v18  ;;  %1286 = vtanh.f32 %v1156_v17  ;;  %v594_v20 = vpop.f32.mrf.mxu0 }
  0xff   : > { %v722_v21 = vpop.f32.mrf.mxu1  ;;  %v1263_v22 = vpop.eup %1262  ;;  %872 = vst [vmem:[%s1478_s29 + $0x50] sm:$0xff] %v1261_v19  ;;  %1288 = vtanh.f32 %v594_v20 }
 0x100   : > { %v1265_v23 = vpop.eup %1264  ;;  %904 = vst [vmem:[%s1478_s29 + $0x150] sm:$0xff] %v1263_v22  ;;  %1290 = vtanh.f32 %v722_v21  ;;  %v1127_v24 = vpop.f32.mrf.mxu0 }
 0x101   : > { %v1159_v25 = vpop.f32.mrf.mxu1  ;;  %v1267_v26 = vpop.eup %1266  ;;  %870 = vst [vmem:[%s1478_s29 + $0x40] sm:$0xff] %v1265_v23  ;;  %1292 = vtanh.f32 %v1127_v24 }
 0x102   : > { %v1269_v27 = vpop.eup %1268  ;;  %902 = vst [vmem:[%s1478_s29 + $0x140] sm:$0xff] %v1267_v26  ;;  %1294 = vtanh.f32 %v1159_v25  ;;  %v607_v28 = vpop.f32.mrf.mxu0 }
 0x103   : > { %v735_v29 = vpop.f32.mrf.mxu1  ;;  %v1271_v30 = vpop.eup %1270  ;;  %873 = vst [vmem:[%s1478_s29 + $0x58] sm:$0xff] %v1269_v27  ;;  %1296 = vtanh.f32 %v607_v28 }
 0x104   : > { %v1273_v31 = vpop.eup %1272  ;;  %905 = vst [vmem:[%s1478_s29 + $0x158] sm:$0xff] %v1271_v30  ;;  %1298 = vtanh.f32 %v735_v29  ;;  %v1128_v32 = vpop.f32.mrf.mxu0 }
 0x105   : > { %v1160_v33 = vpop.f32.mrf.mxu1  ;;  %v1275_v34 = vpop.eup %1274  ;;  %871 = vst [vmem:[%s1478_s29 + $0x48] sm:$0xff] %v1273_v31  ;;  %1300 = vtanh.f32 %v1128_v32 }
 0x106   : > { %v1277_v35 = vpop.eup %1276  ;;  %903 = vst [vmem:[%s1478_s29 + $0x148] sm:$0xff] %v1275_v34  ;;  %1302 = vtanh.f32 %v1160_v33  ;;  %v610_v36 = vpop.f32.mrf.mxu0 }
 0x107   : > { %v738_v37 = vpop.f32.mrf.mxu1  ;;  %v1279_v38 = vpop.eup %1278  ;;  %876 = vst [vmem:[%s1478_s29 + $0x70] sm:$0xff] %v1277_v35  ;;  %1304 = vtanh.f32 %v610_v36 }
 0x108   : > { %v1281_v39 = vpop.eup %1280  ;;  %908 = vst [vmem:[%s1478_s29 + $0x170] sm:$0xff] %v1279_v38  ;;  %1306 = vtanh.f32 %v738_v37  ;;  %v1131_v40 = vpop.f32.mrf.mxu0 }
 0x109   : > { %v1163_v41 = vpop.f32.mrf.mxu1  ;;  %v1283_v42 = vpop.eup %1282  ;;  %874 = vst [vmem:[%s1478_s29 + $0x60] sm:$0xff] %v1281_v39  ;;  %1308 = vtanh.f32 %v1131_v40 }
 0x10a   : > { %v1285_v43 = vpop.eup %1284  ;;  %906 = vst [vmem:[%s1478_s29 + $0x160] sm:$0xff] %v1283_v42  ;;  %1310 = vtanh.f32 %v1163_v41  ;;  %v623_v44 = vpop.f32.mrf.mxu0 }
 0x10b   : > { %v751_v45 = vpop.f32.mrf.mxu1  ;;  %v1287_v46 = vpop.eup %1286  ;;  %877 = vst [vmem:[%s1478_s29 + $0x78] sm:$0xff] %v1285_v43  ;;  %1312 = vtanh.f32 %v623_v44 }
 0x10c   : > { %v1289_v47 = vpop.eup %1288  ;;  %909 = vst [vmem:[%s1478_s29 + $0x178] sm:$0xff] %v1287_v46  ;;  %1314 = vtanh.f32 %v751_v45  ;;  %v1132_v48 = vpop.f32.mrf.mxu0 }
 0x10d   : > { %v1164_v49 = vpop.f32.mrf.mxu1  ;;  %v1291_v50 = vpop.eup %1290  ;;  %875 = vst [vmem:[%s1478_s29 + $0x68] sm:$0xff] %v1289_v47  ;;  %1316 = vtanh.f32 %v1132_v48 }
 0x10e   : > { %v1293_v51 = vpop.eup %1292  ;;  %907 = vst [vmem:[%s1478_s29 + $0x168] sm:$0xff] %v1291_v50  ;;  %1318 = vtanh.f32 %v1164_v49  ;;  %v626_v52 = vpop.f32.mrf.mxu0 }
 0x10f   : > { %v754_v53 = vpop.f32.mrf.mxu1  ;;  %v1295_v54 = vpop.eup %1294  ;;  %880 = vst [vmem:[%s1478_s29 + $0x90] sm:$0xff] %v1293_v51  ;;  %1320 = vtanh.f32 %v626_v52 }
 0x110   : > { %v1297_v55 = vpop.eup %1296  ;;  %912 = vst [vmem:[%s1478_s29 + $0x190] sm:$0xff] %v1295_v54  ;;  %1322 = vtanh.f32 %v754_v53  ;;  %v1135_v56 = vpop.f32.mrf.mxu0 }
 0x111   : > { %v1167_v57 = vpop.f32.mrf.mxu1  ;;  %v1299_v58 = vpop.eup %1298  ;;  %878 = vst [vmem:[%s1478_s29 + $0x80] sm:$0xff] %v1297_v55  ;;  %1324 = vtanh.f32 %v1135_v56 }
 0x112   : > { %v1301_v59 = vpop.eup %1300  ;;  %910 = vst [vmem:[%s1478_s29 + $0x180] sm:$0xff] %v1299_v58  ;;  %1326 = vtanh.f32 %v1167_v57  ;;  %v639_v60 = vpop.f32.mrf.mxu0 }
 0x113   : > { %v767_v61 = vpop.f32.mrf.mxu1  ;;  %v1303_v62 = vpop.eup %1302  ;;  %881 = vst [vmem:[%s1478_s29 + $0x98] sm:$0xff] %v1301_v59  ;;  %1328 = vtanh.f32 %v639_v60 }
 0x114   : > { %v1305_v63 = vpop.eup %1304  ;;  %913 = vst [vmem:[%s1478_s29 + $0x198] sm:$0xff] %v1303_v62  ;;  %1330 = vtanh.f32 %v767_v61  ;;  %v1136_v0 = vpop.f32.mrf.mxu0 }
 0x115   : > { %v1168_v1 = vpop.f32.mrf.mxu1  ;;  %v1307_v2 = vpop.eup %1306  ;;  %879 = vst [vmem:[%s1478_s29 + $0x88] sm:$0xff] %v1305_v63  ;;  %1332 = vtanh.f32 %v1136_v0 }
 0x116   : > { %v1309_v3 = vpop.eup %1308  ;;  %911 = vst [vmem:[%s1478_s29 + $0x188] sm:$0xff] %v1307_v2  ;;  %1334 = vtanh.f32 %v1168_v1  ;;  %v642_v4 = vpop.f32.mrf.mxu0 }
 0x117   : > { %v770_v5 = vpop.f32.mrf.mxu1  ;;  %v1311_v6 = vpop.eup %1310  ;;  %884 = vst [vmem:[%s1478_s29 + $0xb0] sm:$0xff] %v1309_v3  ;;  %1336 = vtanh.f32 %v642_v4 }
 0x118   : > { %v1313_v7 = vpop.eup %1312  ;;  %916 = vst [vmem:[%s1478_s29 + $0x1b0] sm:$0xff] %v1311_v6  ;;  %1338 = vtanh.f32 %v770_v5  ;;  %v1139_v8 = vpop.f32.mrf.mxu0 }
 0x119   : > { %v1171_v9 = vpop.f32.mrf.mxu1  ;;  %v1315_v10 = vpop.eup %1314  ;;  %882 = vst [vmem:[%s1478_s29 + $0xa0] sm:$0xff] %v1313_v7  ;;  %1340 = vtanh.f32 %v1139_v8 }
 0x11a   : > { %v1317_v11 = vpop.eup %1316  ;;  %914 = vst [vmem:[%s1478_s29 + $0x1a0] sm:$0xff] %v1315_v10  ;;  %1342 = vtanh.f32 %v1171_v9  ;;  %v655_v12 = vpop.f32.mrf.mxu0 }
 0x11b   : > { %v783_v13 = vpop.f32.mrf.mxu1  ;;  %v1319_v14 = vpop.eup %1318  ;;  %885 = vst [vmem:[%s1478_s29 + $0xb8] sm:$0xff] %v1317_v11  ;;  %1344 = vtanh.f32 %v655_v12 }
 0x11c   : > { %v1321_v15 = vpop.eup %1320  ;;  %917 = vst [vmem:[%s1478_s29 + $0x1b8] sm:$0xff] %v1319_v14  ;;  %1346 = vtanh.f32 %v783_v13  ;;  %v1140_v16 = vpop.f32.mrf.mxu0 }
 0x11d   : > { %v1172_v17 = vpop.f32.mrf.mxu1  ;;  %v1323_v18 = vpop.eup %1322  ;;  %883 = vst [vmem:[%s1478_s29 + $0xa8] sm:$0xff] %v1321_v15  ;;  %1348 = vtanh.f32 %v1140_v16 }
 0x11e   : > { %v1325_v19 = vpop.eup %1324  ;;  %915 = vst [vmem:[%s1478_s29 + $0x1a8] sm:$0xff] %v1323_v18  ;;  %1350 = vtanh.f32 %v1172_v17  ;;  %v658_v20 = vpop.f32.mrf.mxu0 }
 0x11f   : > { %v786_v21 = vpop.f32.mrf.mxu1  ;;  %v1327_v22 = vpop.eup %1326  ;;  %888 = vst [vmem:[%s1478_s29 + $0xd0] sm:$0xff] %v1325_v19  ;;  %1352 = vtanh.f32 %v658_v20 }
 0x120   : > { %v1329_v23 = vpop.eup %1328  ;;  %920 = vst [vmem:[%s1478_s29 + $0x1d0] sm:$0xff] %v1327_v22  ;;  %1354 = vtanh.f32 %v786_v21 }
 0x121   : > { %v1331_v24 = vpop.eup %1330  ;;  %886 = vst [vmem:[%s1478_s29 + $0xc0] sm:$0xff] %v1329_v23 }
 0x122   : > { %v1333_v25 = vpop.eup %1332  ;;  %918 = vst [vmem:[%s1478_s29 + $0x1c0] sm:$0xff] %v1331_v24 }
 0x123   : > { %v1335_v26 = vpop.eup %1334  ;;  %889 = vst [vmem:[%s1478_s29 + $0xd8] sm:$0xff] %v1333_v25 }
 0x124   : > { %v1337_v27 = vpop.eup %1336  ;;  %921 = vst [vmem:[%s1478_s29 + $0x1d8] sm:$0xff] %v1335_v26 }
 0x125   : > { %v1339_v28 = vpop.eup %1338  ;;  %887 = vst [vmem:[%s1478_s29 + $0xc8] sm:$0xff] %v1337_v27 }
 0x126   : > { %v1341_v29 = vpop.eup %1340  ;;  %919 = vst [vmem:[%s1478_s29 + $0x1c8] sm:$0xff] %v1339_v28 }
 0x127   : > { %v1343_v30 = vpop.eup %1342  ;;  %892 = vst [vmem:[%s1478_s29 + $0xf0] sm:$0xff] %v1341_v29 }
 0x128   : > { %v1345_v31 = vpop.eup %1344  ;;  %924 = vst [vmem:[%s1478_s29 + $0x1f0] sm:$0xff] %v1343_v30 }
 0x129   : > { %v1347_v32 = vpop.eup %1346  ;;  %890 = vst [vmem:[%s1478_s29 + $0xe0] sm:$0xff] %v1345_v31 }
 0x12a   : > { %v1349_v33 = vpop.eup %1348  ;;  %922 = vst [vmem:[%s1478_s29 + $0x1e0] sm:$0xff] %v1347_v32 }
 0x12b   : > { %v1351_v34 = vpop.eup %1350  ;;  %893 = vst [vmem:[%s1478_s29 + $0xf8] sm:$0xff] %v1349_v33 }
 0x12c   : > { %v1353_v35 = vpop.eup %1352  ;;  %925 = vst [vmem:[%s1478_s29 + $0x1f8] sm:$0xff] %v1351_v34 }
 0x12d   : > { %v1355_v36 = vpop.eup %1354  ;;  %891 = vst [vmem:[%s1478_s29 + $0xe8] sm:$0xff] %v1353_v35 }
 0x12e   : > { %923 = vst [vmem:[%s1478_s29 + $0x1e8] sm:$0xff] %v1355_v36 }
 0x12f PF: > { %s12_s9 = sadd.s32 1, %s1362_s9  }
 0x130   : > { %p9_p4 = scmp.ge.s32.totalorder %s12_s9, 6  }
 0x132   :  { %11 = sbr.rel (!%p9_p4) target bundleno = 1 (0x1), region = 58 }

</bundles_post_ra>
